<compile_context>
chip_gen: v6e
topology: v6e:2x2x1
jax: 0.10.0
libtpu: 0.0.40
codegen_flags: <defaults>
</compile_context>

<pallas_src>
import math
import functools

import jax
import jax.numpy as jnp
from jax.experimental import pallas as pl
from jax.experimental.pallas import tpu as pltpu

LN_EPS = 1e-5  # PyTorch nn.LayerNorm default


def _layer_norm(x, gamma, beta):
    mu = jnp.mean(x, axis=-1, keepdims=True)
    var = jnp.mean((x - mu) ** 2, axis=-1, keepdims=True)
    return (x - mu) * jax.lax.rsqrt(var + LN_EPS) * gamma + beta


# ----------------------------------------------------------------------------
# Per-head attention, batched over the block dimension.
#   Q3/K3/V3: (block_b, Nq, D) / (block_b, Nk, D) / (block_b, Nk, D)
#   attn_sc : VMEM scratch (block_b*Nq, D) -- per-head outputs are written into
#             disjoint lane slices (no lane concatenation of head chunks).
# ----------------------------------------------------------------------------
def _attention_heads(Q3, K3, V3, attn_sc, *, num_heads, scale):
    b, nq, D = Q3.shape
    ds_ = D // num_heads
    for h in range(num_heads):                      # static unroll: 4 iterations
        lo = h * ds_
        Qh = Q3[:, :, lo:lo + ds_]                  # (b, nq, ds)
        Kh = K3[:, :, lo:lo + ds_]                  # (b, nk, ds)
        Vh = V3[:, :, lo:lo + ds_]
        logits = jnp.einsum("bqd,bkd->bqk", Qh, Kh,
                            preferred_element_type=jnp.float32) * scale
        m = jnp.max(logits, axis=-1, keepdims=True)
        e = jnp.exp(logits - m)
        # Exact reciprocal keeps the tight f32 self-check valid (approx=True
        # would push this onto the EUP but loosen the tolerance).
        inv = pl.reciprocal(jnp.sum(e, axis=-1, keepdims=True))
        ctx = jnp.einsum("bqk,bkd->bqd", e * inv, Vh,
                         preferred_element_type=jnp.float32)   # (b, nq, ds)
        attn_sc[:, lo:lo + ds_] = ctx.reshape(b * nq, ds_)


# ----------------------------------------------------------------------------
# Fused kernel: embed -> PMA -> SAB for block_b batch items per grid step.
# Weight slab columns:   [0:D) pma_wq | [D:3D) pma_wk|wv | [3D:4D) pma_wo |
#                        [4D:7D) sab_wq|wk|wv | [7D:8D) sab_wo
# Vec rows: 0 emb_b | 1..8 pma bq,bk,bv,bo,g0,b0,g1,b1 | 9..16 sab (same order)
# ----------------------------------------------------------------------------
def _set_transformer_kernel(x_ref, seeds_ref, ew_ref, w_ref, vec_ref, o_ref,
                            attn_sc, *, num_heads, num_seeds, block_b, n_pts):
    D = seeds_ref.shape[-1]
    scale = 1.0 / math.sqrt(D)                      # dim_V scaling
    rows_p = block_b * num_seeds

    # ---- initial Linear embed: one (block_b*N, din) @ (din, D) matmul ------
    H = jnp.dot(x_ref[...], ew_ref[...],
                preferred_element_type=jnp.float32) + vec_ref[0:1, :]

    # ---- PMA: seeds attend to the embedded set -----------------------------
    # Q projection of the seeds is batch-invariant -> computed once per step.
    Qp = jnp.dot(seeds_ref[...], w_ref[:, 0:D],
                 preferred_element_type=jnp.float32) + vec_ref[1:2, :]   # (num_seeds, D)
    # Fused K|V projection: one (block_b*N, D) @ (D, 2D) matmul.
    KV = jnp.dot(H, w_ref[:, D:3 * D], preferred_element_type=jnp.float32)
    K = (KV[:, 0:D] + vec_ref[2:3, :]).reshape(block_b, n_pts, D)
    V = (KV[:, D:2 * D] + vec_ref[3:4, :]).reshape(block_b, n_pts, D)
    Q3 = jnp.broadcast_to(Qp[None], (block_b, num_seeds, D))
    _attention_heads(Q3, K, V, attn_sc, num_heads=num_heads, scale=scale)
    O = Q3.reshape(rows_p, D) + attn_sc[...]
    O = _layer_norm(O, vec_ref[5:6, :], vec_ref[6:7, :])
    ff = jnp.dot(O, w_ref[:, 3 * D:4 * D],
                 preferred_element_type=jnp.float32) + vec_ref[4:5, :]
    O = O + jnp.maximum(ff, 0.0)
    P = _layer_norm(O, vec_ref[7:8, :], vec_ref[8:9, :])                 # (rows_p, D)

    # ---- SAB: self-attention over the pooled seed vectors ------------------
    # Fused Q|K|V projection: one (block_b*num_seeds, D) @ (D, 3D) matmul.
    QKV = jnp.dot(P, w_ref[:, 4 * D:7 * D], preferred_element_type=jnp.float32)
    Q = QKV[:, 0:D] + vec_ref[9:10, :]                                   # (rows_p, D)
    K = (QKV[:, D:2 * D] + vec_ref[10:11, :]).reshape(block_b, num_seeds, D)
    V = (QKV[:, 2 * D:3 * D] + vec_ref[11:12, :]).reshape(block_b, num_seeds, D)
    _attention_heads(Q.reshape(block_b, num_seeds, D), K, V, attn_sc,
                     num_heads=num_heads, scale=scale)
    O = Q + attn_sc[...]
    O = _layer_norm(O, vec_ref[13:14, :], vec_ref[14:15, :])
    ff = jnp.dot(O, w_ref[:, 7 * D:8 * D],
                 preferred_element_type=jnp.float32) + vec_ref[12:13, :]
    O = O + jnp.maximum(ff, 0.0)
    O = _layer_norm(O, vec_ref[15:16, :], vec_ref[16:17, :])

    # One contiguous (block_b*num_seeds, D) slab store per grid step; the host
    # reshape to (B, num_seeds*D) is a free row-major re-view.
    o_ref[...] = O


def set_transformer_forward(params, X, num_heads, X_mask=None, *, block_b=8):
    # TODO(synk): X_mask (key-padding mask inside PMA attention) not implemented;
    #             only X_mask=None is supported here.
    assert X_mask is None
    B, N, din = X.shape
    seeds = params["seeds"][0]                      # (num_seeds, D)
    num_seeds, D = seeds.shape
    assert D % num_heads == 0
    assert N % 8 == 0 and num_seeds % 8 == 0, "sublane-aligned set sizes expected"
    # block_b*N = 128 fills the MXU height on v5e (use 16 on v6e/v7x if B allows);
    # keep >= 2 grid steps so the "parallel" axis feeds both v7x TensorCores.
    while B % block_b:
        block_b //= 2
    grid = B // block_b

    # Fused (D, 8D) weight slab: one DMA descriptor, sliced at point of use.
    w_all = jnp.concatenate(
        [params["pma"]["wq"], params["pma"]["wk"], params["pma"]["wv"], params["pma"]["wo"],
         params["sab"]["wq"], params["sab"]["wk"], params["sab"]["wv"], params["sab"]["wo"]],
        axis=1)                                     # (D, 8D)

    def mab_vecs(p):
        return [p["bq"], p["bk"], p["bv"], p["bo"], p["g0"], p["b0"], p["g1"], p["b1"]]

    vecs = jnp.concatenate([params["embed_b"], *mab_vecs(params["pma"]),
                            *mab_vecs(params["sab"])], axis=0)            # (17, D)

    X2 = X.reshape(B * N, din)                      # free host reshape

    flops_item = (2 * N * din * D + 4 * N * D * D + 4 * num_seeds * N * D
                  + 2 * num_seeds * D * D + 6 * num_seeds * D * D
                  + 4 * num_seeds * num_seeds * D + 2 * num_seeds * D * D)
    cost = pl.CostEstimate(
        flops=B * flops_item + grid * 2 * num_seeds * D * D,
        transcendentals=B * num_heads * num_seeds * (N + num_seeds),
        bytes_accessed=4 * (X2.size + B * num_seeds * D
                            + grid * (w_all.size + vecs.size + seeds.size
                                      + params["embed_w"].size)))

    kernel = functools.partial(_set_transformer_kernel, num_heads=num_heads,
                               num_seeds=num_seeds, block_b=block_b, n_pts=N)
    out = pl.pallas_call(
        kernel,
        out_shape=jax.ShapeDtypeStruct((B * num_seeds, D), jnp.float32),
        grid=(grid,),
        in_specs=[
            pl.BlockSpec((block_b * N, din), lambda b: (b, 0)),
            pl.BlockSpec(seeds.shape, lambda b: (0, 0)),
            pl.BlockSpec(params["embed_w"].shape, lambda b: (0, 0)),
            pl.BlockSpec(w_all.shape, lambda b: (0, 0)),
            pl.BlockSpec(vecs.shape, lambda b: (0, 0)),
        ],
        out_specs=pl.BlockSpec((block_b * num_seeds, D), lambda b: (b, 0)),
        scratch_shapes=[pltpu.VMEM((block_b * num_seeds, D), jnp.float32)],
        compiler_params=pltpu.CompilerParams(
            dimension_semantics=("parallel",)),     # batch axis -> both TCs on v7x
        cost_estimate=cost,
    )(X2, seeds, params["embed_w"], w_all, vecs)
    return out.reshape(B, num_seeds * D)            # free row-major re-view


# ----------------------------------------------------------------------------
# Pure-JAX reference (same math) for verification
# ----------------------------------------------------------------------------
def _ref_mab(q, k, p, num_heads):
    if q.shape[0] == 1 and k.shape[0] > 1:
        q = jnp.broadcast_to(q, (k.shape[0],) + q.shape[1:])
    Q = q @ p["wq"] + p["bq"]
    K = k @ p["wk"] + p["bk"]
    V = k @ p["wv"] + p["bv"]
    B, Nq, D = Q.shape
    ds = D // num_heads
    Qh = Q.reshape(B, Nq, num_heads, ds)
    Kh = K.reshape(B, -1, num_heads, ds)
    Vh = V.reshape(B, -1, num_heads, ds)
    logits = jnp.einsum("bqhd,bkhd->bhqk", Qh, Kh) / math.sqrt(D)
    A = jax.nn.softmax(logits, axis=-1)
    attn = jnp.einsum("bhqk,bkhd->bqhd", A, Vh).reshape(B, Nq, D)
    O = Q + attn
    O = _layer_norm(O, p["g0"], p["b0"])
    O = O + jnp.maximum(O @ p["wo"] + p["bo"], 0.0)
    O = _layer_norm(O, p["g1"], p["b1"])
    return O


def _ref_forward(params, X, num_heads):
    H = X @ params["embed_w"] + params["embed_b"]
    P = _ref_mab(params["seeds"], H, params["pma"], num_heads)
    S = _ref_mab(P, P, params["sab"], num_heads)
    return S.reshape(X.shape[0], -1)


# ----------------------------------------------------------------------------
# Deterministic parameter init
# ----------------------------------------------------------------------------
def init_params(key, input_dim, model_dim, num_seeds):
    def w(k, shape, scale=0.1):
        return (scale * jax.random.normal(k, shape)).astype(jnp.float32)

    def mab_params(k, dq, dk, D):
        ks = jax.random.split(k, 8)
        return dict(
            wq=w(ks[0], (dq, D)), bq=w(ks[1], (1, D), 0.02),
            wk=w(ks[2], (dk, D)), bk=w(ks[3], (1, D), 0.02),
            wv=w(ks[4], (dk, D)), bv=w(ks[5], (1, D), 0.02),
            wo=w(ks[6], (D, D)), bo=w(ks[7], (1, D), 0.02),
            g0=jnp.ones((1, D), jnp.float32), b0=jnp.zeros((1, D), jnp.float32),
            g1=jnp.ones((1, D), jnp.float32), b1=jnp.zeros((1, D), jnp.float32),
        )

    ke, kb, ks, kp, ka = jax.random.split(key, 5)
    return dict(
        embed_w=w(ke, (input_dim, model_dim)),
        embed_b=w(kb, (1, model_dim), 0.02),
        seeds=w(ks, (1, num_seeds, model_dim)),
        pma=mab_params(kp, model_dim, model_dim, model_dim),
        sab=mab_params(ka, model_dim, model_dim, model_dim),
    )


if __name__ == "__main__":
    B, N = 16, 16                 # B=16 with block_b=8 -> 2 grid steps
    input_dim, model_dim = 4, 32
    num_seeds, num_heads = 8, 4   # small num_seeds (module default is 100)
    # NOTE: output_dim and `activation` of the original module are unused in forward.

    key = jax.random.PRNGKey(0)
    kp, kx = jax.random.split(key)
    params = init_params(kp, input_dim, model_dim, num_seeds)
    X = jax.random.normal(kx, (B, N, input_dim), dtype=jnp.float32)

    out = set_transformer_forward(params, X, num_heads, X_mask=None, block_b=8)
    out = jax.block_until_ready(out)

    ref = _ref_forward(params, X, num_heads)
    assert out.shape == (B, num_seeds * model_dim), out.shape
    err = float(jnp.max(jnp.abs(out - ref)))
    assert jnp.allclose(out, ref, rtol=1e-4, atol=1e-4), err
    print("KERNEL_OK")
</pallas_src>

<mosaic_0001>
module attributes {stable_mosaic.version = 11 : i64} {
  func.func @_set_transformer_kernel(%arg0: i32, %arg1: memref<128x4xf32, #tpu.memory_space<vmem>>, %arg2: memref<8x32xf32, #tpu.memory_space<vmem>>, %arg3: memref<4x32xf32, #tpu.memory_space<vmem>>, %arg4: memref<32x256xf32, #tpu.memory_space<vmem>>, %arg5: memref<17x32xf32, #tpu.memory_space<vmem>>, %arg6: memref<64x32xf32, #tpu.memory_space<vmem>>, %arg7: memref<64x32xf32, #tpu.memory_space<vmem>>) attributes {dimension_semantics = [#tpu.dimension_semantics<parallel>], iteration_bounds = array<i64: 2>, scalar_prefetch = 0 : i64, scratch_operands = 1 : i64, tpu.core_type = #tpu.core_type<tc>, window_params = [{transform_indices = @transform_0, window_bounds = array<i64: 128, 4>}, {pipeline_mode = #tpu.pipeline_mode<synchronous>, transform_indices = @transform_1, window_bounds = array<i64: 8, 32>}, {pipeline_mode = #tpu.pipeline_mode<synchronous>, transform_indices = @transform_2, window_bounds = array<i64: 4, 32>}, {pipeline_mode = #tpu.pipeline_mode<synchronous>, transform_indices = @transform_3, window_bounds = array<i64: 32, 256>}, {pipeline_mode = #tpu.pipeline_mode<synchronous>, transform_indices = @transform_4, window_bounds = array<i64: 17, 32>}, {transform_indices = @transform_5, window_bounds = array<i64: 64, 32>}]} {
    %c0 = arith.constant 0 : index
    %c0_0 = arith.constant 0 : index
    %0 = vector.load %arg1[%c0, %c0_0] : memref<128x4xf32, #tpu.memory_space<vmem>>, vector<128x4xf32>
    %c0_1 = arith.constant 0 : index
    %c0_2 = arith.constant 0 : index
    %1 = vector.load %arg3[%c0_1, %c0_2] : memref<4x32xf32, #tpu.memory_space<vmem>>, vector<4x32xf32>
    %cst = arith.constant dense<0.000000e+00> : vector<128x32xf32>
    %2 = tpu.matmul %0, %1, %cst {dimension_numbers = #tpu.dot_dimension_numbers<[1], [0], [0], [1], [0, 0, 1, 1], [], []>} : vector<128x4xf32>, vector<4x32xf32>, vector<128x32xf32> -> vector<128x32xf32>
    %c0_3 = arith.constant 0 : index
    %c0_4 = arith.constant 0 : index
    %3 = vector.load %arg5[%c0_3, %c0_4] : memref<17x32xf32, #tpu.memory_space<vmem>>, vector<1x32xf32>
    %4 = vector.broadcast %3 : vector<1x32xf32> to vector<128x32xf32>
    %5 = arith.addf %2, %4 : vector<128x32xf32>
    %c0_5 = arith.constant 0 : index
    %c0_6 = arith.constant 0 : index
    %6 = vector.load %arg2[%c0_5, %c0_6] : memref<8x32xf32, #tpu.memory_space<vmem>>, vector<8x32xf32>
    %c0_7 = arith.constant 0 : index
    %c0_8 = arith.constant 0 : index
    %7 = vector.load %arg4[%c0_7, %c0_8] : memref<32x256xf32, #tpu.memory_space<vmem>>, vector<32x32xf32>
    %cst_9 = arith.constant dense<0.000000e+00> : vector<8x32xf32>
    %8 = tpu.matmul %6, %7, %cst_9 {dimension_numbers = #tpu.dot_dimension_numbers<[1], [0], [0], [1], [0, 0, 1, 1], [], []>} : vector<8x32xf32>, vector<32x32xf32>, vector<8x32xf32> -> vector<8x32xf32>
    %c1 = arith.constant 1 : index
    %c0_10 = arith.constant 0 : index
    %9 = vector.load %arg5[%c1, %c0_10] : memref<17x32xf32, #tpu.memory_space<vmem>>, vector<1x32xf32>
    %10 = vector.broadcast %9 : vector<1x32xf32> to vector<8x32xf32>
    %11 = arith.addf %8, %10 : vector<8x32xf32>
    %c0_11 = arith.constant 0 : index
    %c32 = arith.constant 32 : index
    %12 = vector.load %arg4[%c0_11, %c32] : memref<32x256xf32, #tpu.memory_space<vmem>>, vector<32x64xf32>
    %cst_12 = arith.constant dense<0.000000e+00> : vector<128x64xf32>
    %13 = tpu.matmul %5, %12, %cst_12 {dimension_numbers = #tpu.dot_dimension_numbers<[1], [0], [0], [1], [0, 0, 1, 1], [], []>} : vector<128x32xf32>, vector<32x64xf32>, vector<128x64xf32> -> vector<128x64xf32>
    %14 = vector.extract_strided_slice %13 {offsets = [0, 0], sizes = [128, 32], strides = [1, 1]} : vector<128x64xf32> to vector<128x32xf32>
    %c2 = arith.constant 2 : index
    %c0_13 = arith.constant 0 : index
    %15 = vector.load %arg5[%c2, %c0_13] : memref<17x32xf32, #tpu.memory_space<vmem>>, vector<1x32xf32>
    %16 = vector.broadcast %15 : vector<1x32xf32> to vector<128x32xf32>
    %17 = arith.addf %14, %16 : vector<128x32xf32>
    %18 = vector.shape_cast %17 : vector<128x32xf32> to vector<8x16x32xf32>
    %19 = vector.extract_strided_slice %13 {offsets = [0, 32], sizes = [128, 32], strides = [1, 1]} : vector<128x64xf32> to vector<128x32xf32>
    %c3 = arith.constant 3 : index
    %c0_14 = arith.constant 0 : index
    %20 = vector.load %arg5[%c3, %c0_14] : memref<17x32xf32, #tpu.memory_space<vmem>>, vector<1x32xf32>
    %21 = vector.broadcast %20 : vector<1x32xf32> to vector<128x32xf32>
    %22 = arith.addf %19, %21 : vector<128x32xf32>
    %23 = vector.shape_cast %22 : vector<128x32xf32> to vector<8x16x32xf32>
    %24 = vector.shape_cast %11 : vector<8x32xf32> to vector<1x8x32xf32>
    %25 = vector.shape_cast %24 : vector<1x8x32xf32> to vector<1x8x32xf32>
    %26 = vector.broadcast %25 : vector<1x8x32xf32> to vector<8x8x32xf32>
    %27 = vector.extract_strided_slice %26 {offsets = [0, 0, 0], sizes = [8, 8, 8], strides = [1, 1, 1]} : vector<8x8x32xf32> to vector<8x8x8xf32>
    %28 = vector.extract_strided_slice %18 {offsets = [0, 0, 0], sizes = [8, 16, 8], strides = [1, 1, 1]} : vector<8x16x32xf32> to vector<8x16x8xf32>
    %29 = vector.extract_strided_slice %23 {offsets = [0, 0, 0], sizes = [8, 16, 8], strides = [1, 1, 1]} : vector<8x16x32xf32> to vector<8x16x8xf32>
    "tpu.trace_start"() <{level = 10 : i32, message = "bqd,bkd->bqk"}> : () -> ()
    %cst_15 = arith.constant dense<0.000000e+00> : vector<8x8x16xf32>
    %30 = tpu.matmul %27, %28, %cst_15 {dimension_numbers = #tpu.dot_dimension_numbers<[2], [2], [1], [1], [0, 0, 0, 1, 1, 1], [0], [0]>} : vector<8x8x8xf32>, vector<8x16x8xf32>, vector<8x8x16xf32> -> vector<8x8x16xf32>
    "tpu.trace_stop"() : () -> ()
    %cst_16 = arith.constant 0.176776692 : f32
    %31 = vector.broadcast %cst_16 : f32 to vector<8x8x16xf32>
    %32 = arith.mulf %30, %31 : vector<8x8x16xf32>
    %cst_17 = arith.constant dense<0xFF800000> : vector<8x8xf32>
    %33 = vector.multi_reduction <maximumf>, %32, %cst_17 [2] : vector<8x8x16xf32> to vector<8x8xf32>
    %34 = vector.shape_cast %33 : vector<8x8xf32> to vector<8x8x1xf32>
    %35 = vector.broadcast %34 : vector<8x8x1xf32> to vector<8x8x16xf32>
    %36 = arith.subf %32, %35 : vector<8x8x16xf32>
    %37 = math.exp %36 : vector<8x8x16xf32>
    %cst_18 = arith.constant dense<0.000000e+00> : vector<8x8xf32>
    %38 = vector.multi_reduction <add>, %37, %cst_18 [2] : vector<8x8x16xf32> to vector<8x8xf32>
    %39 = vector.shape_cast %38 : vector<8x8xf32> to vector<8x8x1xf32>
    %40 = tpu.reciprocal %39 : vector<8x8x1xf32> -> vector<8x8x1xf32>
    %41 = vector.broadcast %40 : vector<8x8x1xf32> to vector<8x8x16xf32>
    %42 = arith.mulf %37, %41 : vector<8x8x16xf32>
    "tpu.trace_start"() <{level = 10 : i32, message = "bqk,bkd->bqd"}> : () -> ()
    %cst_19 = arith.constant dense<0.000000e+00> : vector<8x8x8xf32>
    %43 = tpu.matmul %42, %29, %cst_19 {dimension_numbers = #tpu.dot_dimension_numbers<[2], [1], [1], [2], [0, 0, 0, 1, 1, 2], [0], [0]>} : vector<8x8x16xf32>, vector<8x16x8xf32>, vector<8x8x8xf32> -> vector<8x8x8xf32>
    "tpu.trace_stop"() : () -> ()
    %44 = vector.shape_cast %43 : vector<8x8x8xf32> to vector<64x8xf32>
    %c0_20 = arith.constant 0 : index
    %c0_21 = arith.constant 0 : index
    %45 = vector.load %arg7[%c0_20, %c0_21] : memref<64x32xf32, #tpu.memory_space<vmem>>, vector<64x8xf32>
    tpu.vector_store %arg7[%c0_20, %c0_21], %44 {strides = array<i32>} : memref<64x32xf32, #tpu.memory_space<vmem>>, vector<64x8xf32>,
    %46 = vector.extract_strided_slice %26 {offsets = [0, 0, 8], sizes = [8, 8, 8], strides = [1, 1, 1]} : vector<8x8x32xf32> to vector<8x8x8xf32>
    %47 = vector.extract_strided_slice %18 {offsets = [0, 0, 8], sizes = [8, 16, 8], strides = [1, 1, 1]} : vector<8x16x32xf32> to vector<8x16x8xf32>
    %48 = vector.extract_strided_slice %23 {offsets = [0, 0, 8], sizes = [8, 16, 8], strides = [1, 1, 1]} : vector<8x16x32xf32> to vector<8x16x8xf32>
    "tpu.trace_start"() <{level = 10 : i32, message = "bqd,bkd->bqk"}> : () -> ()
    %cst_22 = arith.constant dense<0.000000e+00> : vector<8x8x16xf32>
    %49 = tpu.matmul %46, %47, %cst_22 {dimension_numbers = #tpu.dot_dimension_numbers<[2], [2], [1], [1], [0, 0, 0, 1, 1, 1], [0], [0]>} : vector<8x8x8xf32>, vector<8x16x8xf32>, vector<8x8x16xf32> -> vector<8x8x16xf32>
    "tpu.trace_stop"() : () -> ()
    %cst_23 = arith.constant 0.176776692 : f32
    %50 = vector.broadcast %cst_23 : f32 to vector<8x8x16xf32>
    %51 = arith.mulf %49, %50 : vector<8x8x16xf32>
    %cst_24 = arith.constant dense<0xFF800000> : vector<8x8xf32>
    %52 = vector.multi_reduction <maximumf>, %51, %cst_24 [2] : vector<8x8x16xf32> to vector<8x8xf32>
    %53 = vector.shape_cast %52 : vector<8x8xf32> to vector<8x8x1xf32>
    %54 = vector.broadcast %53 : vector<8x8x1xf32> to vector<8x8x16xf32>
    %55 = arith.subf %51, %54 : vector<8x8x16xf32>
    %56 = math.exp %55 : vector<8x8x16xf32>
    %cst_25 = arith.constant dense<0.000000e+00> : vector<8x8xf32>
    %57 = vector.multi_reduction <add>, %56, %cst_25 [2] : vector<8x8x16xf32> to vector<8x8xf32>
    %58 = vector.shape_cast %57 : vector<8x8xf32> to vector<8x8x1xf32>
    %59 = tpu.reciprocal %58 : vector<8x8x1xf32> -> vector<8x8x1xf32>
    %60 = vector.broadcast %59 : vector<8x8x1xf32> to vector<8x8x16xf32>
    %61 = arith.mulf %56, %60 : vector<8x8x16xf32>
    "tpu.trace_start"() <{level = 10 : i32, message = "bqk,bkd->bqd"}> : () -> ()
    %cst_26 = arith.constant dense<0.000000e+00> : vector<8x8x8xf32>
    %62 = tpu.matmul %61, %48, %cst_26 {dimension_numbers = #tpu.dot_dimension_numbers<[2], [1], [1], [2], [0, 0, 0, 1, 1, 2], [0], [0]>} : vector<8x8x16xf32>, vector<8x16x8xf32>, vector<8x8x8xf32> -> vector<8x8x8xf32>
    "tpu.trace_stop"() : () -> ()
    %63 = vector.shape_cast %62 : vector<8x8x8xf32> to vector<64x8xf32>
    %c0_27 = arith.constant 0 : index
    %c8 = arith.constant 8 : index
    %64 = vector.load %arg7[%c0_27, %c8] : memref<64x32xf32, #tpu.memory_space<vmem>>, vector<64x8xf32>
    tpu.vector_store %arg7[%c0_27, %c8], %63 {strides = array<i32>} : memref<64x32xf32, #tpu.memory_space<vmem>>, vector<64x8xf32>,
    %65 = vector.extract_strided_slice %26 {offsets = [0, 0, 16], sizes = [8, 8, 8], strides = [1, 1, 1]} : vector<8x8x32xf32> to vector<8x8x8xf32>
    %66 = vector.extract_strided_slice %18 {offsets = [0, 0, 16], sizes = [8, 16, 8], strides = [1, 1, 1]} : vector<8x16x32xf32> to vector<8x16x8xf32>
    %67 = vector.extract_strided_slice %23 {offsets = [0, 0, 16], sizes = [8, 16, 8], strides = [1, 1, 1]} : vector<8x16x32xf32> to vector<8x16x8xf32>
    "tpu.trace_start"() <{level = 10 : i32, message = "bqd,bkd->bqk"}> : () -> ()
    %cst_28 = arith.constant dense<0.000000e+00> : vector<8x8x16xf32>
    %68 = tpu.matmul %65, %66, %cst_28 {dimension_numbers = #tpu.dot_dimension_numbers<[2], [2], [1], [1], [0, 0, 0, 1, 1, 1], [0], [0]>} : vector<8x8x8xf32>, vector<8x16x8xf32>, vector<8x8x16xf32> -> vector<8x8x16xf32>
    "tpu.trace_stop"() : () -> ()
    %cst_29 = arith.constant 0.176776692 : f32
    %69 = vector.broadcast %cst_29 : f32 to vector<8x8x16xf32>
    %70 = arith.mulf %68, %69 : vector<8x8x16xf32>
    %cst_30 = arith.constant dense<0xFF800000> : vector<8x8xf32>
    %71 = vector.multi_reduction <maximumf>, %70, %cst_30 [2] : vector<8x8x16xf32> to vector<8x8xf32>
    %72 = vector.shape_cast %71 : vector<8x8xf32> to vector<8x8x1xf32>
    %73 = vector.broadcast %72 : vector<8x8x1xf32> to vector<8x8x16xf32>
    %74 = arith.subf %70, %73 : vector<8x8x16xf32>
    %75 = math.exp %74 : vector<8x8x16xf32>
    %cst_31 = arith.constant dense<0.000000e+00> : vector<8x8xf32>
    %76 = vector.multi_reduction <add>, %75, %cst_31 [2] : vector<8x8x16xf32> to vector<8x8xf32>
    %77 = vector.shape_cast %76 : vector<8x8xf32> to vector<8x8x1xf32>
    %78 = tpu.reciprocal %77 : vector<8x8x1xf32> -> vector<8x8x1xf32>
    %79 = vector.broadcast %78 : vector<8x8x1xf32> to vector<8x8x16xf32>
    %80 = arith.mulf %75, %79 : vector<8x8x16xf32>
    "tpu.trace_start"() <{level = 10 : i32, message = "bqk,bkd->bqd"}> : () -> ()
    %cst_32 = arith.constant dense<0.000000e+00> : vector<8x8x8xf32>
    %81 = tpu.matmul %80, %67, %cst_32 {dimension_numbers = #tpu.dot_dimension_numbers<[2], [1], [1], [2], [0, 0, 0, 1, 1, 2], [0], [0]>} : vector<8x8x16xf32>, vector<8x16x8xf32>, vector<8x8x8xf32> -> vector<8x8x8xf32>
    "tpu.trace_stop"() : () -> ()
    %82 = vector.shape_cast %81 : vector<8x8x8xf32> to vector<64x8xf32>
    %c0_33 = arith.constant 0 : index
    %c16 = arith.constant 16 : index
    %83 = vector.load %arg7[%c0_33, %c16] : memref<64x32xf32, #tpu.memory_space<vmem>>, vector<64x8xf32>
    tpu.vector_store %arg7[%c0_33, %c16], %82 {strides = array<i32>} : memref<64x32xf32, #tpu.memory_space<vmem>>, vector<64x8xf32>,
    %84 = vector.extract_strided_slice %26 {offsets = [0, 0, 24], sizes = [8, 8, 8], strides = [1, 1, 1]} : vector<8x8x32xf32> to vector<8x8x8xf32>
    %85 = vector.extract_strided_slice %18 {offsets = [0, 0, 24], sizes = [8, 16, 8], strides = [1, 1, 1]} : vector<8x16x32xf32> to vector<8x16x8xf32>
    %86 = vector.extract_strided_slice %23 {offsets = [0, 0, 24], sizes = [8, 16, 8], strides = [1, 1, 1]} : vector<8x16x32xf32> to vector<8x16x8xf32>
    "tpu.trace_start"() <{level = 10 : i32, message = "bqd,bkd->bqk"}> : () -> ()
    %cst_34 = arith.constant dense<0.000000e+00> : vector<8x8x16xf32>
    %87 = tpu.matmul %84, %85, %cst_34 {dimension_numbers = #tpu.dot_dimension_numbers<[2], [2], [1], [1], [0, 0, 0, 1, 1, 1], [0], [0]>} : vector<8x8x8xf32>, vector<8x16x8xf32>, vector<8x8x16xf32> -> vector<8x8x16xf32>
    "tpu.trace_stop"() : () -> ()
    %cst_35 = arith.constant 0.176776692 : f32
    %88 = vector.broadcast %cst_35 : f32 to vector<8x8x16xf32>
    %89 = arith.mulf %87, %88 : vector<8x8x16xf32>
    %cst_36 = arith.constant dense<0xFF800000> : vector<8x8xf32>
    %90 = vector.multi_reduction <maximumf>, %89, %cst_36 [2] : vector<8x8x16xf32> to vector<8x8xf32>
    %91 = vector.shape_cast %90 : vector<8x8xf32> to vector<8x8x1xf32>
    %92 = vector.broadcast %91 : vector<8x8x1xf32> to vector<8x8x16xf32>
    %93 = arith.subf %89, %92 : vector<8x8x16xf32>
    %94 = math.exp %93 : vector<8x8x16xf32>
    %cst_37 = arith.constant dense<0.000000e+00> : vector<8x8xf32>
    %95 = vector.multi_reduction <add>, %94, %cst_37 [2] : vector<8x8x16xf32> to vector<8x8xf32>
    %96 = vector.shape_cast %95 : vector<8x8xf32> to vector<8x8x1xf32>
    %97 = tpu.reciprocal %96 : vector<8x8x1xf32> -> vector<8x8x1xf32>
    %98 = vector.broadcast %97 : vector<8x8x1xf32> to vector<8x8x16xf32>
    %99 = arith.mulf %94, %98 : vector<8x8x16xf32>
    "tpu.trace_start"() <{level = 10 : i32, message = "bqk,bkd->bqd"}> : () -> ()
    %cst_38 = arith.constant dense<0.000000e+00> : vector<8x8x8xf32>
    %100 = tpu.matmul %99, %86, %cst_38 {dimension_numbers = #tpu.dot_dimension_numbers<[2], [1], [1], [2], [0, 0, 0, 1, 1, 2], [0], [0]>} : vector<8x8x16xf32>, vector<8x16x8xf32>, vector<8x8x8xf32> -> vector<8x8x8xf32>
    "tpu.trace_stop"() : () -> ()
    %101 = vector.shape_cast %100 : vector<8x8x8xf32> to vector<64x8xf32>
    %c0_39 = arith.constant 0 : index
    %c24 = arith.constant 24 : index
    %102 = vector.load %arg7[%c0_39, %c24] : memref<64x32xf32, #tpu.memory_space<vmem>>, vector<64x8xf32>
    tpu.vector_store %arg7[%c0_39, %c24], %101 {strides = array<i32>} : memref<64x32xf32, #tpu.memory_space<vmem>>, vector<64x8xf32>,
    %103 = vector.shape_cast %26 : vector<8x8x32xf32> to vector<64x32xf32>
    %c0_40 = arith.constant 0 : index
    %c0_41 = arith.constant 0 : index
    %104 = vector.load %arg7[%c0_40, %c0_41] : memref<64x32xf32, #tpu.memory_space<vmem>>, vector<64x32xf32>
    %105 = arith.addf %103, %104 : vector<64x32xf32>
    %c5 = arith.constant 5 : index
    %c0_42 = arith.constant 0 : index
    %106 = vector.load %arg5[%c5, %c0_42] : memref<17x32xf32, #tpu.memory_space<vmem>>, vector<1x32xf32>
    %c6 = arith.constant 6 : index
    %c0_43 = arith.constant 0 : index
    %107 = vector.load %arg5[%c6, %c0_43] : memref<17x32xf32, #tpu.memory_space<vmem>>, vector<1x32xf32>
    %cst_44 = arith.constant dense<0.000000e+00> : vector<64xf32>
    %108 = vector.multi_reduction <add>, %105, %cst_44 [1] : vector<64x32xf32> to vector<64xf32>
    %109 = vector.shape_cast %108 : vector<64xf32> to vector<64x1xf32>
    %cst_45 = arith.constant 3.200000e+01 : f32
    %110 = vector.broadcast %cst_45 : f32 to vector<64x1xf32>
    %111 = arith.divf %109, %110 : vector<64x1xf32>
    %112 = vector.broadcast %111 : vector<64x1xf32> to vector<64x32xf32>
    %113 = arith.subf %105, %112 : vector<64x32xf32>
    %114 = arith.mulf %113, %113 : vector<64x32xf32>
    %cst_46 = arith.constant dense<0.000000e+00> : vector<64xf32>
    %115 = vector.multi_reduction <add>, %114, %cst_46 [1] : vector<64x32xf32> to vector<64xf32>
    %116 = vector.shape_cast %115 : vector<64xf32> to vector<64x1xf32>
    %cst_47 = arith.constant 3.200000e+01 : f32
    %117 = vector.broadcast %cst_47 : f32 to vector<64x1xf32>
    %118 = arith.divf %116, %117 : vector<64x1xf32>
    %119 = vector.broadcast %111 : vector<64x1xf32> to vector<64x32xf32>
    %120 = arith.subf %105, %119 : vector<64x32xf32>
    %cst_48 = arith.constant 9.99999974E-6 : f32
    %121 = vector.broadcast %cst_48 : f32 to vector<64x1xf32>
    %122 = arith.addf %118, %121 : vector<64x1xf32>
    %123 = math.rsqrt %122 : vector<64x1xf32>
    %124 = vector.broadcast %123 : vector<64x1xf32> to vector<64x32xf32>
    %125 = arith.mulf %120, %124 : vector<64x32xf32>
    %126 = vector.broadcast %106 : vector<1x32xf32> to vector<64x32xf32>
    %127 = arith.mulf %125, %126 : vector<64x32xf32>
    %128 = vector.broadcast %107 : vector<1x32xf32> to vector<64x32xf32>
    %129 = arith.addf %127, %128 : vector<64x32xf32>
    %c0_49 = arith.constant 0 : index
    %c96 = arith.constant 96 : index
    %130 = vector.load %arg4[%c0_49, %c96] : memref<32x256xf32, #tpu.memory_space<vmem>>, vector<32x32xf32>
    %cst_50 = arith.constant dense<0.000000e+00> : vector<64x32xf32>
    %131 = tpu.matmul %129, %130, %cst_50 {dimension_numbers = #tpu.dot_dimension_numbers<[1], [0], [0], [1], [0, 0, 1, 1], [], []>} : vector<64x32xf32>, vector<32x32xf32>, vector<64x32xf32> -> vector<64x32xf32>
    %c4 = arith.constant 4 : index
    %c0_51 = arith.constant 0 : index
    %132 = vector.load %arg5[%c4, %c0_51] : memref<17x32xf32, #tpu.memory_space<vmem>>, vector<1x32xf32>
    %133 = vector.broadcast %132 : vector<1x32xf32> to vector<64x32xf32>
    %134 = arith.addf %131, %133 : vector<64x32xf32>
    %cst_52 = arith.constant 0.000000e+00 : f32
    %135 = vector.broadcast %cst_52 : f32 to vector<64x32xf32>
    %136 = arith.maximumf %134, %135 : vector<64x32xf32>
    %137 = arith.addf %129, %136 : vector<64x32xf32>
    %c7 = arith.constant 7 : index
    %c0_53 = arith.constant 0 : index
    %138 = vector.load %arg5[%c7, %c0_53] : memref<17x32xf32, #tpu.memory_space<vmem>>, vector<1x32xf32>
    %c8_54 = arith.constant 8 : index
    %c0_55 = arith.constant 0 : index
    %139 = vector.load %arg5[%c8_54, %c0_55] : memref<17x32xf32, #tpu.memory_space<vmem>>, vector<1x32xf32>
    %cst_56 = arith.constant dense<0.000000e+00> : vector<64xf32>
    %140 = vector.multi_reduction <add>, %137, %cst_56 [1] : vector<64x32xf32> to vector<64xf32>
    %141 = vector.shape_cast %140 : vector<64xf32> to vector<64x1xf32>
    %cst_57 = arith.constant 3.200000e+01 : f32
    %142 = vector.broadcast %cst_57 : f32 to vector<64x1xf32>
    %143 = arith.divf %141, %142 : vector<64x1xf32>
    %144 = vector.broadcast %143 : vector<64x1xf32> to vector<64x32xf32>
    %145 = arith.subf %137, %144 : vector<64x32xf32>
    %146 = arith.mulf %145, %145 : vector<64x32xf32>
    %cst_58 = arith.constant dense<0.000000e+00> : vector<64xf32>
    %147 = vector.multi_reduction <add>, %146, %cst_58 [1] : vector<64x32xf32> to vector<64xf32>
    %148 = vector.shape_cast %147 : vector<64xf32> to vector<64x1xf32>
    %cst_59 = arith.constant 3.200000e+01 : f32
    %149 = vector.broadcast %cst_59 : f32 to vector<64x1xf32>
    %150 = arith.divf %148, %149 : vector<64x1xf32>
    %151 = vector.broadcast %143 : vector<64x1xf32> to vector<64x32xf32>
    %152 = arith.subf %137, %151 : vector<64x32xf32>
    %cst_60 = arith.constant 9.99999974E-6 : f32
    %153 = vector.broadcast %cst_60 : f32 to vector<64x1xf32>
    %154 = arith.addf %150, %153 : vector<64x1xf32>
    %155 = math.rsqrt %154 : vector<64x1xf32>
    %156 = vector.broadcast %155 : vector<64x1xf32> to vector<64x32xf32>
    %157 = arith.mulf %152, %156 : vector<64x32xf32>
    %158 = vector.broadcast %138 : vector<1x32xf32> to vector<64x32xf32>
    %159 = arith.mulf %157, %158 : vector<64x32xf32>
    %160 = vector.broadcast %139 : vector<1x32xf32> to vector<64x32xf32>
    %161 = arith.addf %159, %160 : vector<64x32xf32>
    %c0_61 = arith.constant 0 : index
    %c128 = arith.constant 128 : index
    %162 = vector.load %arg4[%c0_61, %c128] : memref<32x256xf32, #tpu.memory_space<vmem>>, vector<32x96xf32>
    %cst_62 = arith.constant dense<0.000000e+00> : vector<64x96xf32>
    %163 = tpu.matmul %161, %162, %cst_62 {dimension_numbers = #tpu.dot_dimension_numbers<[1], [0], [0], [1], [0, 0, 1, 1], [], []>} : vector<64x32xf32>, vector<32x96xf32>, vector<64x96xf32> -> vector<64x96xf32>
    %164 = vector.extract_strided_slice %163 {offsets = [0, 0], sizes = [64, 32], strides = [1, 1]} : vector<64x96xf32> to vector<64x32xf32>
    %c9 = arith.constant 9 : index
    %c0_63 = arith.constant 0 : index
    %165 = vector.load %arg5[%c9, %c0_63] : memref<17x32xf32, #tpu.memory_space<vmem>>, vector<1x32xf32>
    %166 = vector.broadcast %165 : vector<1x32xf32> to vector<64x32xf32>
    %167 = arith.addf %164, %166 : vector<64x32xf32>
    %168 = vector.extract_strided_slice %163 {offsets = [0, 32], sizes = [64, 32], strides = [1, 1]} : vector<64x96xf32> to vector<64x32xf32>
    %c10 = arith.constant 10 : index
    %c0_64 = arith.constant 0 : index
    %169 = vector.load %arg5[%c10, %c0_64] : memref<17x32xf32, #tpu.memory_space<vmem>>, vector<1x32xf32>
    %170 = vector.broadcast %169 : vector<1x32xf32> to vector<64x32xf32>
    %171 = arith.addf %168, %170 : vector<64x32xf32>
    %172 = vector.shape_cast %171 : vector<64x32xf32> to vector<8x8x32xf32>
    %173 = vector.extract_strided_slice %163 {offsets = [0, 64], sizes = [64, 32], strides = [1, 1]} : vector<64x96xf32> to vector<64x32xf32>
    %c11 = arith.constant 11 : index
    %c0_65 = arith.constant 0 : index
    %174 = vector.load %arg5[%c11, %c0_65] : memref<17x32xf32, #tpu.memory_space<vmem>>, vector<1x32xf32>
    %175 = vector.broadcast %174 : vector<1x32xf32> to vector<64x32xf32>
    %176 = arith.addf %173, %175 : vector<64x32xf32>
    %177 = vector.shape_cast %176 : vector<64x32xf32> to vector<8x8x32xf32>
    %178 = vector.shape_cast %167 : vector<64x32xf32> to vector<8x8x32xf32>
    %179 = vector.extract_strided_slice %178 {offsets = [0, 0, 0], sizes = [8, 8, 8], strides = [1, 1, 1]} : vector<8x8x32xf32> to vector<8x8x8xf32>
    %180 = vector.extract_strided_slice %172 {offsets = [0, 0, 0], sizes = [8, 8, 8], strides = [1, 1, 1]} : vector<8x8x32xf32> to vector<8x8x8xf32>
    %181 = vector.extract_strided_slice %177 {offsets = [0, 0, 0], sizes = [8, 8, 8], strides = [1, 1, 1]} : vector<8x8x32xf32> to vector<8x8x8xf32>
    "tpu.trace_start"() <{level = 10 : i32, message = "bqd,bkd->bqk"}> : () -> ()
    %cst_66 = arith.constant dense<0.000000e+00> : vector<8x8x8xf32>
    %182 = tpu.matmul %179, %180, %cst_66 {dimension_numbers = #tpu.dot_dimension_numbers<[2], [2], [1], [1], [0, 0, 0, 1, 1, 1], [0], [0]>} : vector<8x8x8xf32>, vector<8x8x8xf32>, vector<8x8x8xf32> -> vector<8x8x8xf32>
    "tpu.trace_stop"() : () -> ()
    %cst_67 = arith.constant 0.176776692 : f32
    %183 = vector.broadcast %cst_67 : f32 to vector<8x8x8xf32>
    %184 = arith.mulf %182, %183 : vector<8x8x8xf32>
    %cst_68 = arith.constant dense<0xFF800000> : vector<8x8xf32>
    %185 = vector.multi_reduction <maximumf>, %184, %cst_68 [2] : vector<8x8x8xf32> to vector<8x8xf32>
    %186 = vector.shape_cast %185 : vector<8x8xf32> to vector<8x8x1xf32>
    %187 = vector.broadcast %186 : vector<8x8x1xf32> to vector<8x8x8xf32>
    %188 = arith.subf %184, %187 : vector<8x8x8xf32>
    %189 = math.exp %188 : vector<8x8x8xf32>
    %cst_69 = arith.constant dense<0.000000e+00> : vector<8x8xf32>
    %190 = vector.multi_reduction <add>, %189, %cst_69 [2] : vector<8x8x8xf32> to vector<8x8xf32>
    %191 = vector.shape_cast %190 : vector<8x8xf32> to vector<8x8x1xf32>
    %192 = tpu.reciprocal %191 : vector<8x8x1xf32> -> vector<8x8x1xf32>
    %193 = vector.broadcast %192 : vector<8x8x1xf32> to vector<8x8x8xf32>
    %194 = arith.mulf %189, %193 : vector<8x8x8xf32>
    "tpu.trace_start"() <{level = 10 : i32, message = "bqk,bkd->bqd"}> : () -> ()
    %cst_70 = arith.constant dense<0.000000e+00> : vector<8x8x8xf32>
    %195 = tpu.matmul %194, %181, %cst_70 {dimension_numbers = #tpu.dot_dimension_numbers<[2], [1], [1], [2], [0, 0, 0, 1, 1, 2], [0], [0]>} : vector<8x8x8xf32>, vector<8x8x8xf32>, vector<8x8x8xf32> -> vector<8x8x8xf32>
    "tpu.trace_stop"() : () -> ()
    %196 = vector.shape_cast %195 : vector<8x8x8xf32> to vector<64x8xf32>
    %c0_71 = arith.constant 0 : index
    %c0_72 = arith.constant 0 : index
    %197 = vector.load %arg7[%c0_71, %c0_72] : memref<64x32xf32, #tpu.memory_space<vmem>>, vector<64x8xf32>
    tpu.vector_store %arg7[%c0_71, %c0_72], %196 {strides = array<i32>} : memref<64x32xf32, #tpu.memory_space<vmem>>, vector<64x8xf32>,
    %198 = vector.extract_strided_slice %178 {offsets = [0, 0, 8], sizes = [8, 8, 8], strides = [1, 1, 1]} : vector<8x8x32xf32> to vector<8x8x8xf32>
    %199 = vector.extract_strided_slice %172 {offsets = [0, 0, 8], sizes = [8, 8, 8], strides = [1, 1, 1]} : vector<8x8x32xf32> to vector<8x8x8xf32>
    %200 = vector.extract_strided_slice %177 {offsets = [0, 0, 8], sizes = [8, 8, 8], strides = [1, 1, 1]} : vector<8x8x32xf32> to vector<8x8x8xf32>
    "tpu.trace_start"() <{level = 10 : i32, message = "bqd,bkd->bqk"}> : () -> ()
    %cst_73 = arith.constant dense<0.000000e+00> : vector<8x8x8xf32>
    %201 = tpu.matmul %198, %199, %cst_73 {dimension_numbers = #tpu.dot_dimension_numbers<[2], [2], [1], [1], [0, 0, 0, 1, 1, 1], [0], [0]>} : vector<8x8x8xf32>, vector<8x8x8xf32>, vector<8x8x8xf32> -> vector<8x8x8xf32>
    "tpu.trace_stop"() : () -> ()
    %cst_74 = arith.constant 0.176776692 : f32
    %202 = vector.broadcast %cst_74 : f32 to vector<8x8x8xf32>
    %203 = arith.mulf %201, %202 : vector<8x8x8xf32>
    %cst_75 = arith.constant dense<0xFF800000> : vector<8x8xf32>
    %204 = vector.multi_reduction <maximumf>, %203, %cst_75 [2] : vector<8x8x8xf32> to vector<8x8xf32>
    %205 = vector.shape_cast %204 : vector<8x8xf32> to vector<8x8x1xf32>
    %206 = vector.broadcast %205 : vector<8x8x1xf32> to vector<8x8x8xf32>
    %207 = arith.subf %203, %206 : vector<8x8x8xf32>
    %208 = math.exp %207 : vector<8x8x8xf32>
    %cst_76 = arith.constant dense<0.000000e+00> : vector<8x8xf32>
    %209 = vector.multi_reduction <add>, %208, %cst_76 [2] : vector<8x8x8xf32> to vector<8x8xf32>
    %210 = vector.shape_cast %209 : vector<8x8xf32> to vector<8x8x1xf32>
    %211 = tpu.reciprocal %210 : vector<8x8x1xf32> -> vector<8x8x1xf32>
    %212 = vector.broadcast %211 : vector<8x8x1xf32> to vector<8x8x8xf32>
    %213 = arith.mulf %208, %212 : vector<8x8x8xf32>
    "tpu.trace_start"() <{level = 10 : i32, message = "bqk,bkd->bqd"}> : () -> ()
    %cst_77 = arith.constant dense<0.000000e+00> : vector<8x8x8xf32>
    %214 = tpu.matmul %213, %200, %cst_77 {dimension_numbers = #tpu.dot_dimension_numbers<[2], [1], [1], [2], [0, 0, 0, 1, 1, 2], [0], [0]>} : vector<8x8x8xf32>, vector<8x8x8xf32>, vector<8x8x8xf32> -> vector<8x8x8xf32>
    "tpu.trace_stop"() : () -> ()
    %215 = vector.shape_cast %214 : vector<8x8x8xf32> to vector<64x8xf32>
    %c0_78 = arith.constant 0 : index
    %c8_79 = arith.constant 8 : index
    %216 = vector.load %arg7[%c0_78, %c8_79] : memref<64x32xf32, #tpu.memory_space<vmem>>, vector<64x8xf32>
    tpu.vector_store %arg7[%c0_78, %c8_79], %215 {strides = array<i32>} : memref<64x32xf32, #tpu.memory_space<vmem>>, vector<64x8xf32>,
    %217 = vector.extract_strided_slice %178 {offsets = [0, 0, 16], sizes = [8, 8, 8], strides = [1, 1, 1]} : vector<8x8x32xf32> to vector<8x8x8xf32>
    %218 = vector.extract_strided_slice %172 {offsets = [0, 0, 16], sizes = [8, 8, 8], strides = [1, 1, 1]} : vector<8x8x32xf32> to vector<8x8x8xf32>
    %219 = vector.extract_strided_slice %177 {offsets = [0, 0, 16], sizes = [8, 8, 8], strides = [1, 1, 1]} : vector<8x8x32xf32> to vector<8x8x8xf32>
    "tpu.trace_start"() <{level = 10 : i32, message = "bqd,bkd->bqk"}> : () -> ()
    %cst_80 = arith.constant dense<0.000000e+00> : vector<8x8x8xf32>
    %220 = tpu.matmul %217, %218, %cst_80 {dimension_numbers = #tpu.dot_dimension_numbers<[2], [2], [1], [1], [0, 0, 0, 1, 1, 1], [0], [0]>} : vector<8x8x8xf32>, vector<8x8x8xf32>, vector<8x8x8xf32> -> vector<8x8x8xf32>
    "tpu.trace_stop"() : () -> ()
    %cst_81 = arith.constant 0.176776692 : f32
    %221 = vector.broadcast %cst_81 : f32 to vector<8x8x8xf32>
    %222 = arith.mulf %220, %221 : vector<8x8x8xf32>
    %cst_82 = arith.constant dense<0xFF800000> : vector<8x8xf32>
    %223 = vector.multi_reduction <maximumf>, %222, %cst_82 [2] : vector<8x8x8xf32> to vector<8x8xf32>
    %224 = vector.shape_cast %223 : vector<8x8xf32> to vector<8x8x1xf32>
    %225 = vector.broadcast %224 : vector<8x8x1xf32> to vector<8x8x8xf32>
    %226 = arith.subf %222, %225 : vector<8x8x8xf32>
    %227 = math.exp %226 : vector<8x8x8xf32>
    %cst_83 = arith.constant dense<0.000000e+00> : vector<8x8xf32>
    %228 = vector.multi_reduction <add>, %227, %cst_83 [2] : vector<8x8x8xf32> to vector<8x8xf32>
    %229 = vector.shape_cast %228 : vector<8x8xf32> to vector<8x8x1xf32>
    %230 = tpu.reciprocal %229 : vector<8x8x1xf32> -> vector<8x8x1xf32>
    %231 = vector.broadcast %230 : vector<8x8x1xf32> to vector<8x8x8xf32>
    %232 = arith.mulf %227, %231 : vector<8x8x8xf32>
    "tpu.trace_start"() <{level = 10 : i32, message = "bqk,bkd->bqd"}> : () -> ()
    %cst_84 = arith.constant dense<0.000000e+00> : vector<8x8x8xf32>
    %233 = tpu.matmul %232, %219, %cst_84 {dimension_numbers = #tpu.dot_dimension_numbers<[2], [1], [1], [2], [0, 0, 0, 1, 1, 2], [0], [0]>} : vector<8x8x8xf32>, vector<8x8x8xf32>, vector<8x8x8xf32> -> vector<8x8x8xf32>
    "tpu.trace_stop"() : () -> ()
    %234 = vector.shape_cast %233 : vector<8x8x8xf32> to vector<64x8xf32>
    %c0_85 = arith.constant 0 : index
    %c16_86 = arith.constant 16 : index
    %235 = vector.load %arg7[%c0_85, %c16_86] : memref<64x32xf32, #tpu.memory_space<vmem>>, vector<64x8xf32>
    tpu.vector_store %arg7[%c0_85, %c16_86], %234 {strides = array<i32>} : memref<64x32xf32, #tpu.memory_space<vmem>>, vector<64x8xf32>,
    %236 = vector.extract_strided_slice %178 {offsets = [0, 0, 24], sizes = [8, 8, 8], strides = [1, 1, 1]} : vector<8x8x32xf32> to vector<8x8x8xf32>
    %237 = vector.extract_strided_slice %172 {offsets = [0, 0, 24], sizes = [8, 8, 8], strides = [1, 1, 1]} : vector<8x8x32xf32> to vector<8x8x8xf32>
    %238 = vector.extract_strided_slice %177 {offsets = [0, 0, 24], sizes = [8, 8, 8], strides = [1, 1, 1]} : vector<8x8x32xf32> to vector<8x8x8xf32>
    "tpu.trace_start"() <{level = 10 : i32, message = "bqd,bkd->bqk"}> : () -> ()
    %cst_87 = arith.constant dense<0.000000e+00> : vector<8x8x8xf32>
    %239 = tpu.matmul %236, %237, %cst_87 {dimension_numbers = #tpu.dot_dimension_numbers<[2], [2], [1], [1], [0, 0, 0, 1, 1, 1], [0], [0]>} : vector<8x8x8xf32>, vector<8x8x8xf32>, vector<8x8x8xf32> -> vector<8x8x8xf32>
    "tpu.trace_stop"() : () -> ()
    %cst_88 = arith.constant 0.176776692 : f32
    %240 = vector.broadcast %cst_88 : f32 to vector<8x8x8xf32>
    %241 = arith.mulf %239, %240 : vector<8x8x8xf32>
    %cst_89 = arith.constant dense<0xFF800000> : vector<8x8xf32>
    %242 = vector.multi_reduction <maximumf>, %241, %cst_89 [2] : vector<8x8x8xf32> to vector<8x8xf32>
    %243 = vector.shape_cast %242 : vector<8x8xf32> to vector<8x8x1xf32>
    %244 = vector.broadcast %243 : vector<8x8x1xf32> to vector<8x8x8xf32>
    %245 = arith.subf %241, %244 : vector<8x8x8xf32>
    %246 = math.exp %245 : vector<8x8x8xf32>
    %cst_90 = arith.constant dense<0.000000e+00> : vector<8x8xf32>
    %247 = vector.multi_reduction <add>, %246, %cst_90 [2] : vector<8x8x8xf32> to vector<8x8xf32>
    %248 = vector.shape_cast %247 : vector<8x8xf32> to vector<8x8x1xf32>
    %249 = tpu.reciprocal %248 : vector<8x8x1xf32> -> vector<8x8x1xf32>
    %250 = vector.broadcast %249 : vector<8x8x1xf32> to vector<8x8x8xf32>
    %251 = arith.mulf %246, %250 : vector<8x8x8xf32>
    "tpu.trace_start"() <{level = 10 : i32, message = "bqk,bkd->bqd"}> : () -> ()
    %cst_91 = arith.constant dense<0.000000e+00> : vector<8x8x8xf32>
    %252 = tpu.matmul %251, %238, %cst_91 {dimension_numbers = #tpu.dot_dimension_numbers<[2], [1], [1], [2], [0, 0, 0, 1, 1, 2], [0], [0]>} : vector<8x8x8xf32>, vector<8x8x8xf32>, vector<8x8x8xf32> -> vector<8x8x8xf32>
    "tpu.trace_stop"() : () -> ()
    %253 = vector.shape_cast %252 : vector<8x8x8xf32> to vector<64x8xf32>
    %c0_92 = arith.constant 0 : index
    %c24_93 = arith.constant 24 : index
    %254 = vector.load %arg7[%c0_92, %c24_93] : memref<64x32xf32, #tpu.memory_space<vmem>>, vector<64x8xf32>
    tpu.vector_store %arg7[%c0_92, %c24_93], %253 {strides = array<i32>} : memref<64x32xf32, #tpu.memory_space<vmem>>, vector<64x8xf32>,
    %c0_94 = arith.constant 0 : index
    %c0_95 = arith.constant 0 : index
    %255 = vector.load %arg7[%c0_94, %c0_95] : memref<64x32xf32, #tpu.memory_space<vmem>>, vector<64x32xf32>
    %256 = arith.addf %167, %255 : vector<64x32xf32>
    %c13 = arith.constant 13 : index
    %c0_96 = arith.constant 0 : index
    %257 = vector.load %arg5[%c13, %c0_96] : memref<17x32xf32, #tpu.memory_space<vmem>>, vector<1x32xf32>
    %c14 = arith.constant 14 : index
    %c0_97 = arith.constant 0 : index
    %258 = vector.load %arg5[%c14, %c0_97] : memref<17x32xf32, #tpu.memory_space<vmem>>, vector<1x32xf32>
    %cst_98 = arith.constant dense<0.000000e+00> : vector<64xf32>
    %259 = vector.multi_reduction <add>, %256, %cst_98 [1] : vector<64x32xf32> to vector<64xf32>
    %260 = vector.shape_cast %259 : vector<64xf32> to vector<64x1xf32>
    %cst_99 = arith.constant 3.200000e+01 : f32
    %261 = vector.broadcast %cst_99 : f32 to vector<64x1xf32>
    %262 = arith.divf %260, %261 : vector<64x1xf32>
    %263 = vector.broadcast %262 : vector<64x1xf32> to vector<64x32xf32>
    %264 = arith.subf %256, %263 : vector<64x32xf32>
    %265 = arith.mulf %264, %264 : vector<64x32xf32>
    %cst_100 = arith.constant dense<0.000000e+00> : vector<64xf32>
    %266 = vector.multi_reduction <add>, %265, %cst_100 [1] : vector<64x32xf32> to vector<64xf32>
    %267 = vector.shape_cast %266 : vector<64xf32> to vector<64x1xf32>
    %cst_101 = arith.constant 3.200000e+01 : f32
    %268 = vector.broadcast %cst_101 : f32 to vector<64x1xf32>
    %269 = arith.divf %267, %268 : vector<64x1xf32>
    %270 = vector.broadcast %262 : vector<64x1xf32> to vector<64x32xf32>
    %271 = arith.subf %256, %270 : vector<64x32xf32>
    %cst_102 = arith.constant 9.99999974E-6 : f32
    %272 = vector.broadcast %cst_102 : f32 to vector<64x1xf32>
    %273 = arith.addf %269, %272 : vector<64x1xf32>
    %274 = math.rsqrt %273 : vector<64x1xf32>
    %275 = vector.broadcast %274 : vector<64x1xf32> to vector<64x32xf32>
    %276 = arith.mulf %271, %275 : vector<64x32xf32>
    %277 = vector.broadcast %257 : vector<1x32xf32> to vector<64x32xf32>
    %278 = arith.mulf %276, %277 : vector<64x32xf32>
    %279 = vector.broadcast %258 : vector<1x32xf32> to vector<64x32xf32>
    %280 = arith.addf %278, %279 : vector<64x32xf32>
    %c0_103 = arith.constant 0 : index
    %c224 = arith.constant 224 : index
    %281 = vector.load %arg4[%c0_103, %c224] : memref<32x256xf32, #tpu.memory_space<vmem>>, vector<32x32xf32>
    %cst_104 = arith.constant dense<0.000000e+00> : vector<64x32xf32>
    %282 = tpu.matmul %280, %281, %cst_104 {dimension_numbers = #tpu.dot_dimension_numbers<[1], [0], [0], [1], [0, 0, 1, 1], [], []>} : vector<64x32xf32>, vector<32x32xf32>, vector<64x32xf32> -> vector<64x32xf32>
    %c12 = arith.constant 12 : index
    %c0_105 = arith.constant 0 : index
    %283 = vector.load %arg5[%c12, %c0_105] : memref<17x32xf32, #tpu.memory_space<vmem>>, vector<1x32xf32>
    %284 = vector.broadcast %283 : vector<1x32xf32> to vector<64x32xf32>
    %285 = arith.addf %282, %284 : vector<64x32xf32>
    %cst_106 = arith.constant 0.000000e+00 : f32
    %286 = vector.broadcast %cst_106 : f32 to vector<64x32xf32>
    %287 = arith.maximumf %285, %286 : vector<64x32xf32>
    %288 = arith.addf %280, %287 : vector<64x32xf32>
    %c15 = arith.constant 15 : index
    %c0_107 = arith.constant 0 : index
    %289 = vector.load %arg5[%c15, %c0_107] : memref<17x32xf32, #tpu.memory_space<vmem>>, vector<1x32xf32>
    %c16_108 = arith.constant 16 : index
    %c0_109 = arith.constant 0 : index
    %290 = vector.load %arg5[%c16_108, %c0_109] : memref<17x32xf32, #tpu.memory_space<vmem>>, vector<1x32xf32>
    %cst_110 = arith.constant dense<0.000000e+00> : vector<64xf32>
    %291 = vector.multi_reduction <add>, %288, %cst_110 [1] : vector<64x32xf32> to vector<64xf32>
    %292 = vector.shape_cast %291 : vector<64xf32> to vector<64x1xf32>
    %cst_111 = arith.constant 3.200000e+01 : f32
    %293 = vector.broadcast %cst_111 : f32 to vector<64x1xf32>
    %294 = arith.divf %292, %293 : vector<64x1xf32>
    %295 = vector.broadcast %294 : vector<64x1xf32> to vector<64x32xf32>
    %296 = arith.subf %288, %295 : vector<64x32xf32>
    %297 = arith.mulf %296, %296 : vector<64x32xf32>
    %cst_112 = arith.constant dense<0.000000e+00> : vector<64xf32>
    %298 = vector.multi_reduction <add>, %297, %cst_112 [1] : vector<64x32xf32> to vector<64xf32>
    %299 = vector.shape_cast %298 : vector<64xf32> to vector<64x1xf32>
    %cst_113 = arith.constant 3.200000e+01 : f32
    %300 = vector.broadcast %cst_113 : f32 to vector<64x1xf32>
    %301 = arith.divf %299, %300 : vector<64x1xf32>
    %302 = vector.broadcast %294 : vector<64x1xf32> to vector<64x32xf32>
    %303 = arith.subf %288, %302 : vector<64x32xf32>
    %cst_114 = arith.constant 9.99999974E-6 : f32
    %304 = vector.broadcast %cst_114 : f32 to vector<64x1xf32>
    %305 = arith.addf %301, %304 : vector<64x1xf32>
    %306 = math.rsqrt %305 : vector<64x1xf32>
    %307 = vector.broadcast %306 : vector<64x1xf32> to vector<64x32xf32>
    %308 = arith.mulf %303, %307 : vector<64x32xf32>
    %309 = vector.broadcast %289 : vector<1x32xf32> to vector<64x32xf32>
    %310 = arith.mulf %308, %309 : vector<64x32xf32>
    %311 = vector.broadcast %290 : vector<1x32xf32> to vector<64x32xf32>
    %312 = arith.addf %310, %311 : vector<64x32xf32>
    %c0_115 = arith.constant 0 : index
    %c0_116 = arith.constant 0 : index
    %313 = vector.load %arg6[%c0_115, %c0_116] : memref<64x32xf32, #tpu.memory_space<vmem>>, vector<64x32xf32>
    tpu.vector_store %arg6[%c0_115, %c0_116], %312 {strides = array<i32>} : memref<64x32xf32, #tpu.memory_space<vmem>>, vector<64x32xf32>,
    return
  }
  func.func @transform_0(%arg0: i32) -> (i32, i32) {
    %c0_i32 = arith.constant 0 : i32
    %c0_i32_0 = arith.constant 0 : i32
    return %arg0, %c0_i32 : i32, i32
  }
  func.func @transform_1(%arg0: i32) -> (i32, i32) {
    %c0_i32 = arith.constant 0 : i32
    %c0_i32_0 = arith.constant 0 : i32
    %c0_i32_1 = arith.constant 0 : i32
    return %c0_i32, %c0_i32_0 : i32, i32
  }
  func.func @transform_2(%arg0: i32) -> (i32, i32) {
    %c0_i32 = arith.constant 0 : i32
    %c0_i32_0 = arith.constant 0 : i32
    %c0_i32_1 = arith.constant 0 : i32
    return %c0_i32, %c0_i32_0 : i32, i32
  }
  func.func @transform_3(%arg0: i32) -> (i32, i32) {
    %c0_i32 = arith.constant 0 : i32
    %c0_i32_0 = arith.constant 0 : i32
    %c0_i32_1 = arith.constant 0 : i32
    return %c0_i32, %c0_i32_0 : i32, i32
  }
  func.func @transform_4(%arg0: i32) -> (i32, i32) {
    %c0_i32 = arith.constant 0 : i32
    %c0_i32_0 = arith.constant 0 : i32
    %c0_i32_1 = arith.constant 0 : i32
    return %c0_i32, %c0_i32_0 : i32, i32
  }
  func.func @transform_5(%arg0: i32) -> (i32, i32) {
    %c0_i32 = arith.constant 0 : i32
    %c0_i32_0 = arith.constant 0 : i32
    return %arg0, %c0_i32 : i32, i32
  }
}

</mosaic_0001>

<bundles_post_ra>
// kernel: tpu_custom_call.1
= control target key start
LH: loop header
LB: loop body
LE: loop exit
PB: predicated region body
PF: predicated region fallthrough
CT: control target
= control target key end

     0   :  { %s14933_s18 = smov 0   ;;  %s17619_s0 = inlined_call_operand.vmem [shape: f32[256,4], index: 0, kind: input, shape index: {}]   ;;  %s17620_s1 = inlined_call_operand.vmem [shape: f32[8,32], index: 1, kind: input, shape index: {}]   ;;  %s17621_s2 = inlined_call_operand.vmem [shape: f32[4,32], index: 2, kind: input, shape index: {}]   ;;  %s17622_s3 = inlined_call_operand.vmem [shape: f32[32,256], index: 3, kind: input, shape index: {}]   ;;  %s17623_s4 = inlined_call_operand.vmem [shape: f32[17,32], index: 4, kind: input, shape index: {}]   ;;  %s17624_s5 = inlined_call_operand.vmem [shape: f32[128,32], index: 5, kind: output, shape index: {}]  }
   0x1 LB: > { %s12928_s19 = sadd.s32 4294967295, %s14884_s18   ;;  %p12932_p0 = scmp.ge.s32.totalorder %s14884_s18, 1  ;;  %s14884_s18 = sphi %s14933_s18, %s15_s18  }
   0x2   : > { %p188_p1 = scmp.lt.s32.totalorder %s14884_s18, 3 }
   0x4   : > { %p189_p2 = pnand %p12932_p0, %p188_p1 }
   0x5   : > { %s12933_s22 = sshll.u32 (!%p189_p2), %s12928_s19, 4  ;;  %s14886_s27 = smov (!%p189_p2), 96  }
   0x6   : > { %192 = sbr.rel (%p189_p2) target bundleno = 7804 (0x1e7c), region = 40  ;;  %p217_p3 = scmp.lt.s32.totalorder (!%p189_p2), %s12933_s22, 31 }
   0x7   : > { %s14889_s23 = smov (!%p189_p2), 32   ;;  %s14890_s24 = smov (!%p189_p2), 120  }
   0x8   : > { %s14891_s25 = smov (!%p189_p2), 88   ;;  %s14892_s26 = smov (!%p189_p2), 112  }
   0x9   : > { %s14893_s28 = smov (!%p189_p2), 80   ;;  %s14894_s29 = smov (!%p189_p2), 104  }
   0xa   : > { %s14895_s30 = smov (!%p189_p2), 72   ;;  %s14896_s6 = smov (!%p189_p2), 8  }
   0xb   : > { %v244_v0 = vld [vmem:[%s17621_s2] sm:$0xf]  ;;  %vm299_vm0 = vcmask 1043456   ;;  %v452_v1 = vld [vmem:[%s17622_s3 + $0x30] sm:$0xff]  ;;  %s17626_s22 = smov (!%p217_p3, %s12933_s22), 31  ;;  %vm250_vm1 = vcmask 31744  }
   0xc   : > { %13636 = vmatprep.subr.msk.mxu0 %vm299_vm0, %v244_v0  ;;  %v450_v2 = vld [vmem:[%s17622_s3 + $0x10] sm:$0xff]  ;;  %542 = vrot.lane.b32.xlu0 %v452_v1, %s14886_s27  ;;  %v451_v3 = vld [vmem:[%s17622_s3 + $0x20] sm:$0xff]  ;;  %s12934_s7 = sshll.u32 %s17626_s22, 3  ;;  %v14887_v21 = vmov 0.0   ;;  %vm458_vm2 = vcmask 261120   ;;  %vm14888_vm3 = vmmov 0  }
   0xd   : > { %13637 = vmatpush3.msk.msra.mxu0 %vm299_vm0, %v244_v0  ;;  %538 = vrot.lane.b32.xlu1 %v450_v2, %s14886_s27  ;;  %v449_v4 = vld [vmem:[%s17622_s3] sm:$0xff]  ;;  %s14963_s10 = scalar_lea.vmem %s17619_s0, %s12934_s7  ;;  %vm787_vm4 = vcmask 64512   ;;  %vm1407_vm5 = vcmask 130048   ;;  %s14897_s7 = smov 16   ;;  %vm3540_vm6 = vcmask 130112   ;;  %vm4937_vm7 = vcmask 195712  }
   0xe   : > { %v228_v5 = vld [vmem:[%s14963_s10] sm:$0xff]  ;;  %v229_v6 = vld [vmem:[%s14963_s10 + $0x8] sm:$0xff]  ;;  %v230_v7 = vld [vmem:[%s14963_s10 + $0x10] sm:$0xff]  ;;  %13662 = vmatprep.subr.mxu0 %v14887_v21  ;;  %s14898_s8 = smov 24   ;;  %vm6334_vm8 = vcmask 261312   ;;  %s14899_s16 = smov 64  }
   0xf   : > { %13638 = vmatprep.mubr.msk.f32.mxu0 %vm250_vm1, %v228_v5  ;;  %v231_v8 = vld [vmem:[%s14963_s10 + $0x18] sm:$0xff]  ;;  %v232_v9 = vld [vmem:[%s14963_s10 + $0x20] sm:$0xff]  ;;  %v233_v10 = vld [vmem:[%s14963_s10 + $0x28] sm:$0xff]  ;;  %s12935_s12 = sshll.u32 %s12928_s19, 3 }
  0x10   : > { %540 = vrot.lane.b32.xlu0 %v451_v3, %s14886_s27  ;;  %13639 = vmatmul.mubr.msk.f32.vlgmr.msra.gmra.mxu0 %vm250_vm1, %v229_v6  ;;  %v234_v11 = vld [vmem:[%s14963_s10 + $0x30] sm:$0xff]  ;;  %v235_v12 = vld [vmem:[%s14963_s10 + $0x38] sm:$0xff]  ;;  %v236_v13 = vld [vmem:[%s14963_s10 + $0x40] sm:$0xff]  ;;  %p223_p4 = scmp.lt.s32.totalorder %s12935_s12, 15 }
  0x11   : > { %536 = vrot.lane.b32.xlu1 %v449_v4, %s14886_s27  ;;  %13641 = vmatprep.mubr.msk.f32.mxu0 %vm250_vm1, %v230_v7  ;;  %v237_v14 = vld [vmem:[%s14963_s10 + $0x48] sm:$0xff]  ;;  %v238_v15 = vld [vmem:[%s14963_s10 + $0x50] sm:$0xff]  ;;  %v239_v16 = vld [vmem:[%s14963_s10 + $0x58] sm:$0xff] }
  0x12   : > { %v240_v17 = vld [vmem:[%s14963_s10 + $0x60] sm:$0xff]  ;;  %v241_v18 = vld [vmem:[%s14963_s10 + $0x68] sm:$0xff]  ;;  %v242_v19 = vld [vmem:[%s14963_s10 + $0x70] sm:$0xff]  ;;  %13663 = vmatpush3.msra.mxu0 %v452_v1  ;;  %s17628_s12 = smov (!%p223_p4, %s12935_s12), 15 }
  0x13   : > { %v243_v20 = vld [vmem:[%s14963_s10 + $0x78] sm:$0xff]  ;;  %13664 = vmatprep.subr.mxu0 %v14887_v21  ;;  %v448_v22 = vld [vmem:[%s17620_s1] sm:$0xff]  ;;  %s12936_s19 = sshll.u32 %s17628_s12, 3 }
  0x14   : > { %13642 = vmatmul.mubr.msk.f32.gmra.mxu0 %vm250_vm1, %v231_v8  ;;  %v12937_v28 = vld [vmem:[%s17623_s4] ss:$0 sm:$0xff]  ;;  %v15037_v62 = vld [vmem:[%s17623_s4 + $0x2] ss:$0 sm:$0xff] }
  0x15   : > { %13644 = vmatprep.mubr.msk.f32.mxu0 %vm250_vm1, %v232_v9  ;;  %13665 = vmatpush3.msra.mxu0 %v451_v3 }
  0x16   : > { %13666 = vmatprep.subr.mxu0 %v14887_v21 }
  0x17   : > { %13667 = vmatpush3.msra.mxu0 %v450_v2  ;;  %v12955_v2 = vld [vmem:[%s17623_s4 + $0x1] ss:$0 sm:$0xff] }
  0x18   : > { %13645 = vmatmul.mubr.msk.f32.gmra.mxu0 %vm250_vm1, %v233_v10  ;;  %13668 = vmatprep.subr.mxu0 %v14887_v21 }
  0x19   : > { %13647 = vmatprep.mubr.msk.f32.mxu0 %vm250_vm1, %v234_v11  ;;  %13669 = vmatpush3.msra.mxu0 %v449_v4 }
  0x1a   : > { %13705 = vmatprep.subr.mxu0 %v14887_v21 }
  0x1c   : > { %13648 = vmatmul.mubr.msk.f32.gmra.mxu0 %vm250_vm1, %v235_v12 }
  0x1d   : > { %13650 = vmatprep.mubr.msk.f32.mxu0 %vm250_vm1, %v236_v13 }
  0x20   : > { %13651 = vmatmul.mubr.msk.f32.gmra.mxu0 %vm250_vm1, %v237_v14 }
  0x21   : > { %13653 = vmatprep.mubr.msk.f32.mxu0 %vm250_vm1, %v238_v15 }
  0x24   : > { %13654 = vmatmul.mubr.msk.f32.gmra.mxu0 %vm250_vm1, %v239_v16 }
  0x25   : > { %13656 = vmatprep.mubr.msk.f32.mxu0 %vm250_vm1, %v240_v17 }
  0x28   : > { %13657 = vmatmul.mubr.msk.f32.gmra.mxu0 %vm250_vm1, %v241_v18 }
  0x29   : > { %13659 = vmatprep.mubr.msk.f32.mxu0 %vm250_vm1, %v242_v19 }
  0x2c   : > { %13660 = vmatmul.mubr.msk.f32.gmra.mxu0 %vm250_vm1, %v243_v20 }
  0x2d   : > { %13670 = vmatprep.mubr.msk.f32.mxu0 %vm14888_vm3, %v14887_v21 }
  0x30   : > { %13671 = vmatmul.mubr.msk.f32.vlgmr.msra.gmra.mxu0 %vm458_vm2, %v448_v22 }
  0x31   : > { %13709 = vmatprep.mubr.msk.f32.mxu0 %vm14888_vm3, %v14887_v21 }
  0x7e   : > { %v543_v23 = vpop.permute.xlu0 %542 }
  0x7f   : > { %13673 = vmatprep.subr.mxu1 %v543_v23  ;;  %v539_v24 = vpop.permute.xlu1 %538 }
  0x80   : > { %13674 = vmatpush3.msra.mxu1 %v543_v23 }
  0x82   : > { %v541_v25 = vpop.permute.xlu0 %540 }
  0x83   : > { %13675 = vmatprep.subr.mxu1 %v541_v25  ;;  %v537_v26 = vpop.permute.xlu1 %536 }
  0x84   : > { %13676 = vmatpush3.msra.mxu1 %v541_v25 }
  0x85   : > { %13677 = vmatprep.subr.mxu1 %v539_v24 }
  0x86   : > { %13678 = vmatpush3.msra.mxu1 %v539_v24 }
  0x87   : > { %13679 = vmatprep.subr.mxu1 %v537_v26 }
  0x88   : > { %13680 = vmatpush3.msra.mxu1 %v537_v26 }
  0x89   : > { %13719 = vmatprep.subr.mxu1 %v14887_v21 }
  0xd0   : > { %v13640_v27 = vpop.f32.mrf.mxu0 }
  0xd1   : > { %v375_v31 = vadd.f32 %v13640_v27, %v12937_v28 }
  0xd2   : > { %v369_v29 = vpop.f32.mrf.mxu0 }
  0xd3   : > { %v370_v30 = vadd.f32 %v12937_v28, %v369_v29 }
  0xd4   : > { %v13643_v32 = vpop.f32.mrf.mxu0 }
  0xd5   : > { %13681 = vmatprep.mubr.msk.f32.mxu1 %vm458_vm2, %v370_v30  ;;  %v385_v35 = vadd.f32 %v13643_v32, %v12937_v28 }
  0xd6   : > { %v379_v33 = vpop.f32.mrf.mxu0  ;;  %13682 = vmatmul.mubr.msk.f32.vlgmr.msra.gmra.mxu1 %vm458_vm2, %v375_v31 }
  0xd7   : > { %v380_v34 = vadd.f32 %v12937_v28, %v379_v33 }
  0xd8   : > { %v13646_v36 = vpop.f32.mrf.mxu0 }
  0xd9   : > { %13684 = vmatprep.mubr.msk.f32.mxu1 %vm458_vm2, %v380_v34  ;;  %v395_v39 = vadd.f32 %v13646_v36, %v12937_v28 }
  0xda   : > { %v389_v37 = vpop.f32.mrf.mxu0  ;;  %13685 = vmatmul.mubr.msk.f32.gmra.mxu1 %vm458_vm2, %v385_v35 }
  0xdb   : > { %v390_v38 = vadd.f32 %v12937_v28, %v389_v37 }
  0xdc   : > { %v13649_v40 = vpop.f32.mrf.mxu0 }
  0xdd   : > { %13687 = vmatprep.mubr.msk.f32.mxu1 %vm458_vm2, %v390_v38  ;;  %v405_v43 = vadd.f32 %v13649_v40, %v12937_v28 }
  0xde   : > { %v399_v41 = vpop.f32.mrf.mxu0  ;;  %13688 = vmatmul.mubr.msk.f32.gmra.mxu1 %vm458_vm2, %v395_v39 }
  0xdf   : > { %v400_v42 = vadd.f32 %v12937_v28, %v399_v41 }
  0xe0   : > { %v13652_v44 = vpop.f32.mrf.mxu0 }
  0xe1   : > { %13690 = vmatprep.mubr.msk.f32.mxu1 %vm458_vm2, %v400_v42  ;;  %v415_v47 = vadd.f32 %v13652_v44, %v12937_v28 }
  0xe2   : > { %v409_v45 = vpop.f32.mrf.mxu0  ;;  %13691 = vmatmul.mubr.msk.f32.gmra.mxu1 %vm458_vm2, %v405_v43 }
  0xe3   : > { %v410_v46 = vadd.f32 %v12937_v28, %v409_v45 }
  0xe4   : > { %v13655_v48 = vpop.f32.mrf.mxu0 }
  0xe5   : > { %13693 = vmatprep.mubr.msk.f32.mxu1 %vm458_vm2, %v410_v46  ;;  %v425_v51 = vadd.f32 %v13655_v48, %v12937_v28 }
  0xe6   : > { %v419_v49 = vpop.f32.mrf.mxu0  ;;  %13694 = vmatmul.mubr.msk.f32.gmra.mxu1 %vm458_vm2, %v415_v47 }
  0xe7   : > { %v420_v50 = vadd.f32 %v12937_v28, %v419_v49 }
  0xe8   : > { %v13658_v52 = vpop.f32.mrf.mxu0 }
  0xe9   : > { %13696 = vmatprep.mubr.msk.f32.mxu1 %vm458_vm2, %v420_v50  ;;  %v435_v55 = vadd.f32 %v13658_v52, %v12937_v28 }
  0xea   : > { %v429_v53 = vpop.f32.mrf.mxu0  ;;  %13697 = vmatmul.mubr.msk.f32.gmra.mxu1 %vm458_vm2, %v425_v51 }
  0xeb   : > { %v430_v54 = vadd.f32 %v12937_v28, %v429_v53 }
  0xec   : > { %v13661_v56 = vpop.f32.mrf.mxu0 }
  0xed   : > { %13699 = vmatprep.mubr.msk.f32.mxu1 %vm458_vm2, %v430_v54  ;;  %v445_v57 = vadd.f32 %v13661_v56, %v12937_v28 }
  0xee   : > { %13700 = vmatmul.mubr.msk.f32.gmra.mxu1 %vm458_vm2, %v435_v55  ;;  %v439_v58 = vpop.f32.mrf.mxu0 }
  0xef   : > { %v440_v59 = vadd.f32 %v12937_v28, %v439_v58 }
  0xf0   : > { %v528_v60 = vpop.f32.mrf.mxu0 }
  0xf1   : > { %13702 = vmatprep.mubr.msk.f32.mxu1 %vm458_vm2, %v440_v59  ;;  %v15061_v6 = vadd.f32 %v12955_v2, %v528_v60 }
  0xf2   : > { %13703 = vmatmul.mubr.msk.f32.gmra.mxu1 %vm458_vm2, %v445_v57  ;;  %v13672_v61 = vpop.f32.mrf.mxu0 }
  0xf3   : > { %13723 = vmatprep.mubr.msk.f32.mxu1 %vm14888_vm3, %v14887_v21 }
 0x196   : > { %v15039_v63 = vpop.f32.mrf.mxu1 }
 0x197   : > { %v15043_v0 = vadd.f32 %v15039_v63, %v15037_v62 }
 0x198   : > { %v15045_v1 = vpop.f32.mrf.mxu1 }
 0x199   : > { %13706 = vmatpush3.xpose.msk.msra.mxu0 %vm787_vm4, %v15043_v0  ;;  %v15057_v4 = vadd.f32 %v15037_v62, %v15045_v1 }
 0x19a   : > { %v15052_v3 = vpop.f32.mrf.mxu1  ;;  %13707 = vmatprep.subr.mxu0 %v14887_v21 }
 0x19b   : > { %v15070_v8 = vadd.f32 %v15052_v3, %v15037_v62 }
 0x19c   : > { %v15059_v5 = vpop.f32.mrf.mxu1 }
 0x19d   : > { %13708 = vmatpush3.xpose.msk.msra.mxu0 %vm787_vm4, %v15057_v4  ;;  %v15090_v12 = vadd.f32 %v15037_v62, %v15059_v5 }
 0x19e   : > { %v15065_v7 = vpop.f32.mrf.mxu1  ;;  %13712 = vmatprep.subr.mxu0 %v14887_v21 }
 0x19f   : > { %v15074_v9 = vadd.f32 %v15065_v7, %v15037_v62 }
 0x1a0   : > { %v15076_v10 = vpop.f32.mrf.mxu1  ;;  %13710 = vmatmul.mubr.msk.f32.vlgmr.msra.gmra.mxu0 %vm787_vm4, %v15061_v6 }
 0x1a1   : > { %13713 = vmatpush3.xpose.msk.msra.mxu0 %vm787_vm4, %v15070_v8  ;;  %13720 = vmatpush3.xpose.msk.msra.mxu1 %vm787_vm4, %v15074_v9  ;;  %v15094_v13 = vadd.f32 %v15037_v62, %v15076_v10 }
 0x1a2   : > { %v15084_v11 = vpop.f32.mrf.mxu1  ;;  %13714 = vmatprep.subr.mxu0 %v14887_v21  ;;  %13721 = vmatprep.subr.mxu1 %v14887_v21 }
 0x1a3   : > { %13716 = vmatprep.mubr.msk.f32.mxu0 %vm14888_vm3, %v14887_v21  ;;  %v15110_v16 = vadd.f32 %v15084_v11, %v15037_v62 }
 0x1a4   : > { %v15098_v14 = vpop.f32.mrf.mxu1 }
 0x1a5   : > { %13715 = vmatpush3.xpose.msk.msra.mxu0 %vm787_vm4, %v15090_v12  ;;  %13722 = vmatpush3.xpose.msk.msra.mxu1 %vm787_vm4, %v15094_v13  ;;  %v15132_v20 = vadd.f32 %v15037_v62, %v15098_v14 }
 0x1a6   : > { %v15104_v15 = vpop.f32.mrf.mxu1  ;;  %13726 = vmatprep.subr.mxu0 %v14887_v21  ;;  %13733 = vmatprep.subr.mxu1 %v14887_v21 }
 0x1a7   : > { %v15114_v17 = vadd.f32 %v15104_v15, %v15037_v62 }
 0x1a8   : > { %v15116_v18 = vpop.f32.mrf.mxu1  ;;  %13717 = vmatmul.mubr.msk.f32.vlgmr.msra.gmra.mxu0 %vm787_vm4, %v15061_v6  ;;  %13724 = vmatmul.mubr.msk.f32.vlgmr.msra.gmra.mxu1 %vm787_vm4, %v15061_v6 }
 0x1a9   : > { %13727 = vmatpush3.xpose.msk.msra.mxu0 %vm787_vm4, %v15110_v16  ;;  %13734 = vmatpush3.xpose.msk.msra.mxu1 %vm787_vm4, %v15114_v17  ;;  %v15136_v22 = vadd.f32 %v15037_v62, %v15116_v18 }
 0x1aa   : > { %v15126_v19 = vpop.f32.mrf.mxu1  ;;  %13728 = vmatprep.subr.mxu0 %v14887_v21  ;;  %13735 = vmatprep.subr.mxu1 %v14887_v21 }
 0x1ab   : > { %13730 = vmatprep.mubr.msk.f32.mxu0 %vm14888_vm3, %v14887_v21  ;;  %13737 = vmatprep.mubr.msk.f32.mxu1 %vm14888_vm3, %v14887_v21  ;;  %v15154_v25 = vadd.f32 %v15126_v19, %v15037_v62 }
 0x1ac   : > { %v15142_v23 = vpop.f32.mrf.mxu1 }
 0x1ad   : > { %13729 = vmatpush3.xpose.msk.msra.mxu0 %vm787_vm4, %v15132_v20  ;;  %13736 = vmatpush3.xpose.msk.msra.mxu1 %vm787_vm4, %v15136_v22  ;;  %v15176_v29 = vadd.f32 %v15037_v62, %v15142_v23 }
 0x1ae   : > { %v15148_v24 = vpop.f32.mrf.mxu1  ;;  %13740 = vmatprep.subr.mxu0 %v14887_v21  ;;  %13747 = vmatprep.subr.mxu1 %v14887_v21 }
 0x1af   : > { %v15158_v26 = vadd.f32 %v15148_v24, %v15037_v62 }
 0x1b0   : > { %13731 = vmatmul.mubr.msk.f32.vlgmr.msra.gmra.mxu0 %vm787_vm4, %v15061_v6  ;;  %13738 = vmatmul.mubr.msk.f32.vlgmr.msra.gmra.mxu1 %vm787_vm4, %v15061_v6  ;;  %v15164_v27 = vpop.f32.mrf.mxu1 }
 0x1b1   : > { %13741 = vmatpush3.xpose.msk.msra.mxu0 %vm787_vm4, %v15154_v25  ;;  %13748 = vmatpush3.xpose.msk.msra.mxu1 %vm787_vm4, %v15158_v26  ;;  %v15180_v30 = vadd.f32 %v15037_v62, %v15164_v27 }
 0x1b2   : > { %13742 = vmatprep.subr.mxu0 %v14887_v21  ;;  %13749 = vmatprep.subr.mxu1 %v14887_v21  ;;  %v15172_v28 = vpop.f32.mrf.mxu1 }
 0x1b3   : > { %13744 = vmatprep.mubr.msk.f32.mxu0 %vm14888_vm3, %v14887_v21  ;;  %13751 = vmatprep.mubr.msk.f32.mxu1 %vm14888_vm3, %v14887_v21  ;;  %v15192_v31 = vadd.f32 %v15172_v28, %v15037_v62 }
 0x1b4   : > { %v15195_v32 = vpop.f32.mrf.mxu1 }
 0x1b5   : > { %13743 = vmatpush3.xpose.msk.msra.mxu0 %vm787_vm4, %v15176_v29  ;;  %13750 = vmatpush3.xpose.msk.msra.mxu1 %vm787_vm4, %v15180_v30  ;;  %v15206_v33 = vadd.f32 %v15037_v62, %v15195_v32 }
 0x1b6   : > { %13754 = vmatprep.subr.mxu0 %v14887_v21  ;;  %13761 = vmatprep.subr.mxu1 %v14887_v21 }
 0x1b8   : > { %13745 = vmatmul.mubr.msk.f32.vlgmr.msra.gmra.mxu0 %vm787_vm4, %v15061_v6  ;;  %13752 = vmatmul.mubr.msk.f32.vlgmr.msra.gmra.mxu1 %vm787_vm4, %v15061_v6 }
 0x1b9   : > { %13755 = vmatpush3.xpose.msk.msra.mxu0 %vm787_vm4, %v15192_v31  ;;  %13758 = vmatprep.mubr.msk.f32.mxu0 %vm14888_vm3, %v14887_v21 }
 0x1ba   : > { %13756 = vmatprep.subr.mxu0 %v14887_v21  ;;  %13765 = vmatprep.mubr.msk.f32.mxu1 %vm14888_vm3, %v14887_v21 }
 0x1bd   : > { %13757 = vmatpush3.xpose.msk.msra.mxu0 %vm787_vm4, %v15206_v33 }
 0x1be   : > { %13768 = vmatprep.subr.mxu0 %v14887_v21 }
 0x1c0   : > { %13759 = vmatmul.mubr.msk.f32.vlgmr.msra.gmra.mxu0 %vm787_vm4, %v15061_v6 }
 0x1c1   : > { %13772 = vmatprep.mubr.msk.f32.mxu0 %vm14888_vm3, %v14887_v21 }
 0x260   : > { %v863_v34 = vpop.f32.mrf.mxu0 }
 0x261   : > { %v15220_v35 = vmul.f32 0.17677669, %v863_v34  ;;  %v12974_v34 = vld [vmem:[%s17623_s4 + $0x3] ss:$0 sm:$0xff] }
 0x262   : > { %v13711_v36 = vpop.f32.mrf.mxu0 }
 0x263   : > { %v1408_v37 = vsel %vm1407_vm5, %v15220_v35, -inf }
 0x264   : > { %1409 = vmax.xlane.f32.xlu0 %v1408_v37 }
 0x268   : > { %v939_v38 = vpop.f32.mrf.mxu0  ;;  %v1015_v39 = vpop.f32.mrf.mxu1 }
 0x269   : > { %v15224_v40 = vmul.f32 0.17677669, %v939_v38  ;;  %v15226_v41 = vmul.f32 0.17677669, %v1015_v39 }
 0x26a   : > { %v13718_v42 = vpop.f32.mrf.mxu0  ;;  %v13725_v43 = vpop.f32.mrf.mxu1 }
 0x26b   : > { %v1411_v44 = vsel %vm1407_vm5, %v15224_v40, -inf  ;;  %v1414_v45 = vsel %vm1407_vm5, %v15226_v41, -inf }
 0x26c   : > { %1412 = vmax.xlane.f32.xlu1 %v1411_v44  ;;  %1415 = vmax.xlane.f32.xlu0 %v1414_v45 }
 0x270   : > { %v1091_v46 = vpop.f32.mrf.mxu0  ;;  %v1167_v47 = vpop.f32.mrf.mxu1 }
 0x271   : > { %v15232_v48 = vmul.f32 0.17677669, %v1091_v46  ;;  %v1403_v49 = vmul.f32 0.17677669, %v1167_v47 }
 0x272   : > { %v13732_v50 = vpop.f32.mrf.mxu0  ;;  %v13739_v51 = vpop.f32.mrf.mxu1 }
 0x273   : > { %v1417_v52 = vsel %vm1407_vm5, %v15232_v48, -inf  ;;  %v1420_v53 = vsel %vm1407_vm5, %v1403_v49, -inf }
 0x274   : > { %1418 = vmax.xlane.f32.xlu0 %v1417_v52  ;;  %1421 = vmax.xlane.f32.xlu1 %v1420_v53 }
 0x278   : > { %v1243_v54 = vpop.f32.mrf.mxu0  ;;  %v1319_v55 = vpop.f32.mrf.mxu1 }
 0x279   : > { %v15237_v56 = vmul.f32 0.17677669, %v1243_v54  ;;  %v15239_v57 = vmul.f32 0.17677669, %v1319_v55 }
 0x27a   : > { %v13746_v58 = vpop.f32.mrf.mxu0  ;;  %v13753_v59 = vpop.f32.mrf.mxu1 }
 0x27b   : > { %v1423_v60 = vsel %vm1407_vm5, %v15237_v56, -inf  ;;  %v1426_v61 = vsel %vm1407_vm5, %v15239_v57, -inf }
 0x27c   : > { %1424 = vmax.xlane.f32.xlu0 %v1423_v60  ;;  %1427 = vmax.xlane.f32.xlu1 %v1426_v61 }
 0x280   : > { %v1395_v62 = vpop.f32.mrf.mxu0 }
 0x282   : > { %v13760_v2 = vpop.f32.mrf.mxu0 }
 0x28d   : > { %768 = vrot.lane.b32.xlu1 %v12974_v34, %s14889_s23 }
 0x2f5   : > { %v1413_v36 = vpop.xlane.xlu1 %1412 }
 0x2f6   : > { %v1433_v52 = vsub.f32 %v15224_v40, %v1413_v36 }
 0x2f8   : > { %v1442_v54 = vmul.f32 1.442695, %v1433_v52 }
 0x2fd   : > { %v1422_v37 = vpop.xlane.xlu1 %1421 }
 0x305   : > { %v15249_v38 = vpop.xlane.xlu1 %1427 }
 0x306   : > { %v1438_v2 = vsub.f32 %v15239_v57, %v15249_v38 }
 0x309   : > { %v769_v39 = vpop.permute.xlu1 %768 }
 0x30a   : > { %v15252_v42 = vadd.f32 %v15039_v63, %v769_v39  ;;  %v15255_v43 = vadd.f32 %v769_v39, %v15045_v1  ;;  %v15262_v44 = vadd.f32 %v15052_v3, %v769_v39  ;;  %v15265_v45 = vadd.f32 %v769_v39, %v15098_v14 }
 0x30b   : > { %v15272_v63 = vadd.f32 %v769_v39, %v15059_v5  ;;  %v15275_v1 = vadd.f32 %v15126_v19, %v769_v39  ;;  %v15282_v3 = vadd.f32 %v15065_v7, %v769_v39  ;;  %v15285_v14 = vadd.f32 %v769_v39, %v15142_v23 }
 0x30c   : > { %1500 = vrot.lane.b32.xlu0 %v15252_v42, %s14886_s27  ;;  %1498 = vrot.lane.b32.xlu1 %v15255_v43, %s14886_s27  ;;  %v15292_v5 = vadd.f32 %v15084_v11, %v769_v39  ;;  %v15295_v19 = vadd.f32 %v15172_v28, %v769_v39  ;;  %v15302_v7 = vadd.f32 %v769_v39, %v15076_v10 }
 0x30d   : > { %v15305_v23 = vadd.f32 %v769_v39, %v15195_v32  ;;  %v15312_v11 = vadd.f32 %v15104_v15, %v769_v39  ;;  %v1436_v10 = vsub.f32 %v1403_v49, %v1422_v37  ;;  %v15318_v32 = vmul.f32 0.17677669, %v1395_v62 }
 0x30e   : > { %v15327_v50 = vadd.f32 %v769_v39, %v15116_v18  ;;  %v15334_v49 = vadd.f32 %v15148_v24, %v769_v39  ;;  %v15341_v51 = vadd.f32 %v769_v39, %v15164_v27  ;;  %v1410_v18 = vpop.xlane.xlu0 %1409  ;;  %v1452_v37 = vmul.f32 1.442695, %v1438_v2 }
 0x30f   : > { %v1448_v28 = vmul.f32 1.442695, %v1436_v10  ;;  %v1429_v46 = vsel %vm1407_vm5, %v15318_v32, -inf  ;;  %v1432_v24 = vsub.f32 %v15220_v35, %v1410_v18 }
 0x310   : > { %1581 = vrot.lane.b32.xlu0 %v15262_v44, %s14886_s27  ;;  %1741 = vrot.lane.b32.xlu1 %v15265_v45, %s14886_s27 }
 0x311   : > { %14558 = vpow2.f32 %v1448_v28  ;;  %v1440_v27 = vmul.f32 1.442695, %v1432_v24 }
 0x312   : > { %v1416_v53 = vpop.xlane.xlu0 %1415 }
 0x313   : > { %14560 = vpow2.f32 %v1440_v27  ;;  %v1434_v55 = vsub.f32 %v15226_v41, %v1416_v53 }
 0x314   : > { %1579 = vrot.lane.b32.xlu0 %v15272_v63, %s14886_s27  ;;  %1905 = vrot.lane.b32.xlu1 %v15275_v1, %s14886_s27  ;;  %14562 = vpow2.f32 %v1442_v54 }
 0x315   : > { %v1444_v35 = vmul.f32 1.442695, %v1434_v55 }
 0x316   : > { %v1419_v58 = vpop.xlane.xlu0 %1418 }
 0x317   : > { %v1435_v59 = vsub.f32 %v15232_v48, %v1419_v58  ;;  %14564 = vpow2.f32 %v1444_v35 }
 0x318   : > { %1662 = vrot.lane.b32.xlu0 %v15282_v3, %s14886_s27  ;;  %1903 = vrot.lane.b32.xlu1 %v15285_v14, %s14886_s27 }
 0x319   : > { %v1446_v40 = vmul.f32 1.442695, %v1435_v59 }
 0x31a   : > { %v1425_v60 = vpop.xlane.xlu0 %1424 }
 0x31b   : > { %v1437_v61 = vsub.f32 %v15237_v56, %v1425_v60  ;;  %14566 = vpow2.f32 %v1446_v40 }
 0x31c   : > { %1743 = vrot.lane.b32.xlu0 %v15292_v5, %s14886_s27  ;;  %2067 = vrot.lane.b32.xlu1 %v15295_v19, %s14886_s27 }
 0x31d   : > { %v1450_v41 = vmul.f32 1.442695, %v1437_v61 }
 0x31e   : > { %v15322_v47 = vpop.eup %14558 }
 0x31f   : > { %v1468_v15 = vsel %vm1407_vm5, %v15322_v47, 0.0  ;;  %14568 = vpow2.f32 %v1450_v41 }
 0x320   : > { %1660 = vrot.lane.b32.xlu0 %v15302_v7, %s14886_s27  ;;  %2065 = vrot.lane.b32.xlu1 %v15305_v23, %s14886_s27  ;;  %v15368_v34 = vpop.eup %14560  ;;  %14570 = vpow2.f32 %v1452_v37 }
 0x321   : > { %v1456_v56 = vsel %vm1407_vm5, %v15368_v34, 0.0  ;;  %v15374_v39 = vpop.eup %14562 }
 0x322   : > { %v1459_v38 = vsel %vm1407_vm5, %v15374_v39, 0.0 }
 0x324   : > { %1824 = vrot.lane.b32.xlu0 %v15312_v11, %s14886_s27  ;;  %2236 = vrot.lane.b32.xlu1 %v15070_v8, %s14890_s24  ;;  %v15379_v10 = vpop.eup %14564 }
 0x325   : > { %v1462_v28 = vsel %vm1407_vm5, %v15379_v10, 0.0 }
 0x343   : > { %1430 = vmax.xlane.f32.xlu0 %v1429_v46  ;;  %v15384_v46 = vpop.eup %14566 }
 0x344   : > { %v15388_v18 = vpop.eup %14568 }
 0x345   : > { %v1471_v24 = vsel %vm1407_vm5, %v15388_v18, 0.0  ;;  %v15392_v27 = vpop.eup %14570 }
 0x346   : > { %v1474_v52 = vsel %vm1407_vm5, %v15392_v27, 0.0 }
 0x348   : > { %1469 = vadd.xlane.f32.xlu1 %v1468_v15  ;;  %v1465_v15 = vsel %vm1407_vm5, %v15384_v46, 0.0 }
 0x359   : > { %2234 = vrot.lane.b32.xlu1 %v15090_v12, %s14890_s24  ;;  %1822 = vrot.lane.b32.xlu0 %v15327_v50, %s14886_s27 }
 0x35d   : > { %2314 = vrot.lane.b32.xlu1 %v15074_v9, %s14890_s24  ;;  %1986 = vrot.lane.b32.xlu0 %v15334_v49, %s14886_s27 }
 0x361   : > { %2312 = vrot.lane.b32.xlu1 %v15094_v13, %s14890_s24  ;;  %1984 = vrot.lane.b32.xlu0 %v15341_v51, %s14886_s27 }
 0x365   : > { %2470 = vrot.lane.b32.xlu1 %v15114_v17, %s14890_s24  ;;  %2156 = vrot.lane.b32.xlu0 %v15043_v0, %s14890_s24 }
 0x369   : > { %2468 = vrot.lane.b32.xlu1 %v15136_v22, %s14890_s24 }
 0x36d   : > { %2626 = vrot.lane.b32.xlu1 %v15158_v26, %s14890_s24 }
 0x371   : > { %2624 = vrot.lane.b32.xlu1 %v15180_v30, %s14890_s24 }
 0x375   : > { %2957 = vrot.lane.b32.xlu1 %v15262_v44, %s14891_s25 }
 0x379   : > { %2876 = vrot.lane.b32.xlu1 %v15255_v43, %s14891_s25 }
 0x37e   : > { %v1501_v62 = vpop.permute.xlu0 %1500  ;;  %v1499_v36 = vpop.permute.xlu1 %1498 }
 0x37f   : > { %13762 = vmatpush3.msra.mxu1 %v1501_v62 }
 0x380   : > { %13763 = vmatprep.subr.mxu1 %v14887_v21 }
 0x381   : > { %13764 = vmatpush3.msra.mxu1 %v1499_v36 }
 0x382   : > { %v1582_v48 = vpop.permute.xlu0 %1581  ;;  %13775 = vmatprep.subr.mxu1 %v14887_v21  ;;  %v1742_v62 = vpop.permute.xlu1 %1741 }
 0x383   : > { %13769 = vmatpush3.msra.mxu0 %v1582_v48 }
 0x384   : > { %1457 = vadd.xlane.f32.xlu0 %v1456_v56  ;;  %13770 = vmatprep.subr.mxu0 %v14887_v21 }
 0x386   : > { %v1580_v57 = vpop.permute.xlu0 %1579  ;;  %v1906_v2 = vpop.permute.xlu1 %1905 }
 0x387   : > { %13771 = vmatpush3.msra.mxu0 %v1580_v57 }
 0x388   : > { %1460 = vadd.xlane.f32.xlu0 %v1459_v38  ;;  %13782 = vmatprep.subr.mxu0 %v14887_v21 }
 0x38a   : > { %v1663_v53 = vpop.permute.xlu0 %1662 }
 0x38c   : > { %1463 = vadd.xlane.f32.xlu0 %v1462_v28 }
 0x38e   : > { %v1744_v54 = vpop.permute.xlu0 %1743 }
 0x390   : > { %1466 = vadd.xlane.f32.xlu0 %v1465_v15 }
 0x392   : > { %v1661_v55 = vpop.permute.xlu0 %1660 }
 0x394   : > { %1472 = vadd.xlane.f32.xlu0 %v1471_v24 }
 0x396   : > { %v1825_v58 = vpop.permute.xlu0 %1824 }
 0x398   : > { %1475 = vadd.xlane.f32.xlu0 %v1474_v52 }
 0x3cc   : > { %v1431_v35 = vpop.xlane.xlu0 %1430 }
 0x3cd   : > { %v1439_v59 = vsub.f32 %v15318_v32, %v1431_v35  ;;  %v1904_v32 = vpop.permute.xlu1 %1903 }
 0x3cf   : > { %v1454_v60 = vmul.f32 1.442695, %v1439_v59 }
 0x3d0   : > { %v1823_v41 = vpop.permute.xlu0 %1822 }
 0x3d1   : > { %14572 = vpow2.f32 %v1454_v60  ;;  %v15409_v37 = vpop.permute.xlu1 %2067 }
 0x3d4   : > { %v1987_v36 = vpop.permute.xlu0 %1986 }
 0x3d5   : > { %v15417_v57 = vpop.permute.xlu1 %2065 }
 0x3d8   : > { %v1985_v48 = vpop.permute.xlu0 %1984 }
 0x3d9   : > { %v15421_v15 = vpop.permute.xlu1 %2236 }
 0x3dc   : > { %v15413_v56 = vpop.permute.xlu0 %2156 }
 0x3dd   : > { %v1470_v52 = vpop.xlane.xlu1 %1469 }
 0x3de   : > { %v15397_v40 = vpop.eup %14572 }
 0x3df   : > { %v1477_v61 = vsel %vm1407_vm5, %v15397_v40, 0.0 }
 0x3e0   : > { %1478 = vadd.xlane.f32.xlu0 %v1477_v61 }
 0x3f6   : > { %2154 = vrot.lane.b32.xlu0 %v15057_v4, %s14890_s24 }
 0x3fa   : > { %2152 = vrot.lane.b32.xlu0 %v15061_v6, %s14890_s24 }
 0x3fe   : > { %2392 = vrot.lane.b32.xlu0 %v15110_v16, %s14890_s24 }
 0x402   : > { %2390 = vrot.lane.b32.xlu0 %v15132_v20, %s14890_s24 }
 0x406   : > { %2548 = vrot.lane.b32.xlu0 %v15154_v25, %s14890_s24 }
 0x40a   : > { %2546 = vrot.lane.b32.xlu0 %v15176_v29, %s14890_s24 }
 0x40d   : > { %v1458_v38 = vpop.xlane.xlu0 %1457 }
 0x40e   : > { %14574 = vrcp.f32 %v1458_v38  ;;  %2704 = vrot.lane.b32.xlu0 %v15192_v31, %s14890_s24 }
 0x411   : > { %v1461_v28 = vpop.xlane.xlu0 %1460 }
 0x412   : > { %14576 = vrcp.f32 %v1461_v28  ;;  %2702 = vrot.lane.b32.xlu0 %v15206_v33, %s14890_s24 }
 0x415   : > { %v1464_v24 = vpop.xlane.xlu0 %1463 }
 0x416   : > { %14578 = vrcp.f32 %v1464_v24  ;;  %2878 = vrot.lane.b32.xlu0 %v15252_v42, %s14891_s25 }
 0x417   : > { %14580 = vrcp.f32 %v1470_v52 }
 0x419   : > { %v1467_v35 = vpop.xlane.xlu0 %1466 }
 0x41a   : > { %14582 = vrcp.f32 %v1467_v35 }
 0x41b   : > { %v14575_v59 = vpop.eup %14574 }
 0x41c   : > { %v1488_v60 = vmul.f32 %v14575_v59, %v15368_v34 }
 0x41d   : > { %v1473_v61 = vpop.xlane.xlu0 %1472 }
 0x41e   : > { %14584 = vrcp.f32 %v1473_v61  ;;  %13766 = vmatmul.mubr.msk.f32.vlgmr.msra.gmra.mxu1 %vm1407_vm5, %v1488_v60 }
 0x41f   : > { %v14577_v38 = vpop.eup %14576  ;;  %13776 = vmatpush3.msra.mxu1 %v1663_v53  ;;  %13779 = vmatprep.mubr.msk.f32.mxu1 %vm14888_vm3, %v14887_v21 }
 0x420   : > { %13777 = vmatprep.subr.mxu1 %v14887_v21  ;;  %v1489_v28 = vmul.f32 %v14577_v38, %v15374_v39 }
 0x421   : > { %13778 = vmatpush3.msra.mxu1 %v1661_v55  ;;  %v1476_v24 = vpop.xlane.xlu0 %1475 }
 0x422   : > { %14586 = vrcp.f32 %v1476_v24  ;;  %13773 = vmatmul.mubr.msk.f32.vlgmr.msra.gmra.mxu0 %vm1407_vm5, %v1489_v28  ;;  %13789 = vmatprep.subr.mxu1 %v14887_v21 }
 0x423   : > { %v14579_v34 = vpop.eup %14578  ;;  %13783 = vmatpush3.msra.mxu0 %v1744_v54  ;;  %13786 = vmatprep.mubr.msk.f32.mxu0 %vm14888_vm3, %v14887_v21 }
 0x424   : > { %13784 = vmatprep.subr.mxu0 %v14887_v21  ;;  %v1490_v53 = vmul.f32 %v14579_v34, %v15379_v10  ;;  %v14581_v52 = vpop.eup %14580 }
 0x425   : > { %13785 = vmatpush3.msra.mxu0 %v1742_v62  ;;  %v1492_v55 = vmul.f32 %v14581_v52, %v15322_v47 }
 0x426   : > { %13780 = vmatmul.mubr.msk.f32.vlgmr.msra.gmra.mxu1 %vm1407_vm5, %v1490_v53  ;;  %13796 = vmatprep.subr.mxu0 %v14887_v21 }
 0x427   : > { %v14583_v39 = vpop.eup %14582  ;;  %13790 = vmatpush3.msra.mxu1 %v1825_v58  ;;  %13793 = vmatprep.mubr.msk.f32.mxu1 %vm14888_vm3, %v14887_v21 }
 0x428   : > { %13791 = vmatprep.subr.mxu1 %v14887_v21  ;;  %v1491_v54 = vmul.f32 %v14583_v39, %v15384_v46 }
 0x429   : > { %13792 = vmatpush3.msra.mxu1 %v1823_v41 }
 0x42a   : > { %13803 = vmatprep.subr.mxu1 %v14887_v21  ;;  %13787 = vmatmul.mubr.msk.f32.vlgmr.msra.gmra.mxu0 %vm1407_vm5, %v1491_v54 }
 0x42b   : > { %v14585_v10 = vpop.eup %14584  ;;  %13794 = vmatmul.mubr.msk.f32.vlgmr.msra.gmra.mxu1 %vm1407_vm5, %v1492_v55  ;;  %13797 = vmatpush3.msra.mxu0 %v1906_v2 }
 0x42c   : > { %13804 = vmatpush3.msra.mxu1 %v1987_v36  ;;  %13798 = vmatprep.subr.mxu0 %v14887_v21  ;;  %v1493_v58 = vmul.f32 %v14585_v10, %v15388_v18  ;;  %v2235_v18 = vpop.permute.xlu1 %2234 }
 0x42d   : > { %13805 = vmatprep.subr.mxu1 %v14887_v21  ;;  %13799 = vmatpush3.msra.mxu0 %v1904_v32 }
 0x42e   : > { %13806 = vmatpush3.msra.mxu1 %v1985_v48  ;;  %13800 = vmatprep.mubr.msk.f32.mxu0 %vm14888_vm3, %v14887_v21 }
 0x42f   : > { %v14587_v47 = vpop.eup %14586  ;;  %13810 = vmatprep.subr.mxu0 %v14887_v21  ;;  %13801 = vmatmul.mubr.msk.f32.vlgmr.msra.gmra.mxu0 %vm1407_vm5, %v1493_v58 }
 0x430   : > { %13811 = vmatpush3.msra.mxu0 %v15409_v37  ;;  %13807 = vmatprep.mubr.msk.f32.mxu1 %vm14888_vm3, %v14887_v21  ;;  %v1494_v46 = vmul.f32 %v14587_v47, %v15392_v27  ;;  %v2315_v27 = vpop.permute.xlu1 %2314 }
 0x431   : > { %13812 = vmatprep.subr.mxu0 %v14887_v21  ;;  %13817 = vmatprep.subr.mxu1 %v14887_v21 }
 0x432   : > { %13813 = vmatpush3.msra.mxu0 %v15417_v57  ;;  %13808 = vmatmul.mubr.msk.f32.vlgmr.msra.gmra.mxu1 %vm1407_vm5, %v1494_v46 }
 0x433   : > { %13818 = vmatpush3.xpose.msk.msra.mxu1 %vm787_vm4, %v15413_v56  ;;  %13821 = vmatprep.mubr.msk.f32.mxu1 %vm14888_vm3, %v14887_v21 }
 0x434   : > { %13819 = vmatprep.subr.mxu1 %v14887_v21  ;;  %13814 = vmatprep.mubr.msk.f32.mxu0 %vm14888_vm3, %v14887_v21  ;;  %v2313_v41 = vpop.permute.xlu1 %2312 }
 0x435   : > { %13824 = vmatprep.subr.mxu0 %v14887_v21 }
 0x438   : > { %v2471_v36 = vpop.permute.xlu1 %2470 }
 0x43c   : > { %v2469_v56 = vpop.permute.xlu1 %2468 }
 0x440   : > { %v2627_v59 = vpop.permute.xlu1 %2626 }
 0x469   : > { %v1479_v62 = vpop.xlane.xlu0 %1478 }
 0x46a   : > { %14588 = vrcp.f32 %v1479_v62 }
 0x46d   : > { %v2155_v2 = vpop.permute.xlu0 %2154 }
 0x46e   : > { %13820 = vmatpush3.xpose.msk.msra.mxu1 %vm787_vm4, %v2155_v2 }
 0x46f   : > { %13831 = vmatprep.subr.mxu1 %v14887_v21 }
 0x471   : > { %v15474_v32 = vpop.permute.xlu0 %2152 }
 0x472   : > { %13822 = vmatmul.mubr.msk.f32.vlgmr.msra.gmra.mxu1 %vm787_vm4, %v15474_v32 }
 0x473   : > { %13832 = vmatpush3.xpose.msk.msra.mxu1 %vm787_vm4, %v2315_v27  ;;  %13835 = vmatprep.mubr.msk.f32.mxu1 %vm14888_vm3, %v14887_v21 }
 0x474   : > { %13833 = vmatprep.subr.mxu1 %v14887_v21 }
 0x475   : > { %v2393_v48 = vpop.permute.xlu0 %2392 }
 0x477   : > { %v14589_v37 = vpop.eup %14588  ;;  %13834 = vmatpush3.xpose.msk.msra.mxu1 %vm787_vm4, %v2313_v41 }
 0x478   : > { %13845 = vmatprep.subr.mxu1 %v14887_v21  ;;  %v1495_v57 = vmul.f32 %v14589_v37, %v15397_v40 }
 0x479   : > { %v2391_v35 = vpop.permute.xlu0 %2390 }
 0x47a   : > { %13836 = vmatmul.mubr.msk.f32.vlgmr.msra.gmra.mxu1 %vm787_vm4, %v15474_v32  ;;  %13815 = vmatmul.mubr.msk.f32.vlgmr.msra.gmra.mxu0 %vm1407_vm5, %v1495_v57 }
 0x47b   : > { %13825 = vmatpush3.xpose.msk.msra.mxu0 %vm787_vm4, %v15421_v15  ;;  %13846 = vmatpush3.xpose.msk.msra.mxu1 %vm787_vm4, %v2471_v36  ;;  %v2625_v15 = vpop.permute.xlu1 %2624 }
 0x47c   : > { %13826 = vmatprep.subr.mxu0 %v14887_v21  ;;  %13847 = vmatprep.subr.mxu1 %v14887_v21 }
 0x47d   : > { %v2549_v60 = vpop.permute.xlu0 %2548  ;;  %13828 = vmatprep.mubr.msk.f32.mxu0 %vm14888_vm3, %v14887_v21  ;;  %13849 = vmatprep.mubr.msk.f32.mxu1 %vm14888_vm3, %v14887_v21 }
 0x47f   : > { %13827 = vmatpush3.xpose.msk.msra.mxu0 %vm787_vm4, %v2235_v18  ;;  %13848 = vmatpush3.xpose.msk.msra.mxu1 %vm787_vm4, %v2469_v56  ;;  %v2958_v38 = vpop.permute.xlu1 %2957 }
 0x480   : > { %13838 = vmatprep.subr.mxu0 %v14887_v21  ;;  %13859 = vmatprep.subr.mxu1 %v14887_v21 }
 0x481   : > { %v2547_v40 = vpop.permute.xlu0 %2546 }
 0x482   : > { %13829 = vmatmul.mubr.msk.f32.vlgmr.msra.gmra.mxu0 %vm787_vm4, %v15474_v32  ;;  %13850 = vmatmul.mubr.msk.f32.vlgmr.msra.gmra.mxu1 %vm787_vm4, %v15474_v32 }
 0x483   : > { %13839 = vmatpush3.xpose.msk.msra.mxu0 %vm787_vm4, %v2393_v48  ;;  %13860 = vmatpush3.xpose.msk.msra.mxu1 %vm787_vm4, %v2627_v59  ;;  %v2877_v34 = vpop.permute.xlu1 %2876 }
 0x484   : > { %13840 = vmatprep.subr.mxu0 %v14887_v21  ;;  %13861 = vmatprep.subr.mxu1 %v14887_v21 }
 0x485   : > { %v2705_v61 = vpop.permute.xlu0 %2704  ;;  %13842 = vmatprep.mubr.msk.f32.mxu0 %vm14888_vm3, %v14887_v21  ;;  %13863 = vmatprep.mubr.msk.f32.mxu1 %vm14888_vm3, %v14887_v21 }
 0x487   : > { %13841 = vmatpush3.xpose.msk.msra.mxu0 %vm787_vm4, %v2391_v35  ;;  %13862 = vmatpush3.xpose.msk.msra.mxu1 %vm787_vm4, %v2625_v15 }
 0x488   : > { %13852 = vmatprep.subr.mxu0 %v14887_v21  ;;  %13873 = vmatprep.subr.mxu1 %v14887_v21 }
 0x489   : > { %v2703_v28 = vpop.permute.xlu0 %2702 }
 0x48a   : > { %13843 = vmatmul.mubr.msk.f32.vlgmr.msra.gmra.mxu0 %vm787_vm4, %v15474_v32  ;;  %13864 = vmatmul.mubr.msk.f32.vlgmr.msra.gmra.mxu1 %vm787_vm4, %v15474_v32 }
 0x48b   : > { %13853 = vmatpush3.xpose.msk.msra.mxu0 %vm787_vm4, %v2549_v60  ;;  %13856 = vmatprep.mubr.msk.f32.mxu0 %vm14888_vm3, %v14887_v21 }
 0x48c   : > { %13854 = vmatprep.subr.mxu0 %v14887_v21  ;;  %13877 = vmatprep.mubr.msk.f32.mxu1 %vm14888_vm3, %v14887_v21 }
 0x48d   : > { %v2879_v24 = vpop.permute.xlu0 %2878 }
 0x48e   : > { %13874 = vmatpush3.msra.mxu1 %v2879_v24 }
 0x48f   : > { %13855 = vmatpush3.xpose.msk.msra.mxu0 %vm787_vm4, %v2547_v40  ;;  %13875 = vmatprep.subr.mxu1 %v14887_v21 }
 0x490   : > { %13876 = vmatpush3.msra.mxu1 %v2877_v34  ;;  %13866 = vmatprep.subr.mxu0 %v14887_v21 }
 0x491   : > { %13887 = vmatprep.subr.mxu1 %v14887_v21 }
 0x492   : > { %13857 = vmatmul.mubr.msk.f32.vlgmr.msra.gmra.mxu0 %vm787_vm4, %v15474_v32 }
 0x493   : > { %13867 = vmatpush3.xpose.msk.msra.mxu0 %vm787_vm4, %v2705_v61  ;;  %13870 = vmatprep.mubr.msk.f32.mxu0 %vm14888_vm3, %v14887_v21 }
 0x494   : > { %13868 = vmatprep.subr.mxu0 %v14887_v21 }
 0x497   : > { %13869 = vmatpush3.xpose.msk.msra.mxu0 %vm787_vm4, %v2703_v28 }
 0x498   : > { %13880 = vmatprep.subr.mxu0 %v14887_v21 }
 0x49a   : > { %13871 = vmatmul.mubr.msk.f32.vlgmr.msra.gmra.mxu0 %vm787_vm4, %v15474_v32 }
 0x49b   : > { %13881 = vmatpush3.msra.mxu0 %v2958_v38  ;;  %13884 = vmatprep.mubr.msk.f32.mxu0 %vm14888_vm3, %v14887_v21 }
 0x49c   : > { %13882 = vmatprep.subr.mxu0 %v14887_v21 }
 0x4de   : > { %v1573_v53 = vpop.f32.mrf.mxu1 }
 0x4df   : > { %2144 = vst.msk [vmem:[#allocation2] sm:$0xff] %vm787_vm4, %v1573_v53 }
 0x4e0   : > { %v13767_v52 = vpop.f32.mrf.mxu1 }
 0x4e2   : > { %v1654_v39 = vpop.f32.mrf.mxu0 }
 0x4e3   : > { %2145 = vst.msk [vmem:[#allocation2 + $0x8] sm:$0xff] %vm787_vm4, %v1654_v39 }
 0x4e4   : > { %v13774_v54 = vpop.f32.mrf.mxu0 }
 0x4e6   : > { %v1735_v55 = vpop.f32.mrf.mxu1 }
 0x4e7   : > { %2146 = vst.msk [vmem:[#allocation2 + $0x10] sm:$0xff] %vm787_vm4, %v1735_v55 }
 0x4e8   : > { %v13781_v10 = vpop.f32.mrf.mxu1 }
 0x4ea   : > { %v1816_v58 = vpop.f32.mrf.mxu0 }
 0x4eb   : > { %2147 = vst.msk [vmem:[#allocation2 + $0x18] sm:$0xff] %vm787_vm4, %v1816_v58  ;;  %v1897_v47 = vpop.f32.mrf.mxu1 }
 0x4ec   : > { %2148 = vst.msk [vmem:[#allocation2 + $0x20] sm:$0xff] %vm787_vm4, %v1897_v47  ;;  %v13788_v46 = vpop.f32.mrf.mxu0 }
 0x4ed   : > { %v13795_v18 = vpop.f32.mrf.mxu1 }
 0x4ef   : > { %v1978_v27 = vpop.f32.mrf.mxu0 }
 0x4f0   : > { %2149 = vst.msk [vmem:[#allocation2 + $0x28] sm:$0xff] %vm787_vm4, %v1978_v27 }
 0x4f1   : > { %v13802_v62 = vpop.f32.mrf.mxu0 }
 0x4f2   : > { %v2059_v41 = vpop.f32.mrf.mxu1 }
 0x4f3   : > { %2150 = vst.msk [vmem:[#allocation2 + $0x30] sm:$0xff] %vm787_vm4, %v2059_v41 }
 0x4f4   : > { %v13809_v2 = vpop.f32.mrf.mxu1 }
 0x532   : > { %v2230_v36 = vpop.f32.mrf.mxu1 }
 0x533   : > { %v2780_v32 = vmul.f32 0.17677669, %v2230_v36 }
 0x534   : > { %v13823_v48 = vpop.f32.mrf.mxu1 }
 0x535   : > { %v2788_v37 = vsel %vm1407_vm5, %v2780_v32, -inf }
 0x536   : > { %2789 = vmax.xlane.f32.xlu1 %v2788_v37 }
 0x53a   : > { %v2386_v56 = vpop.f32.mrf.mxu1  ;;  %v2140_v57 = vpop.f32.mrf.mxu0 }
 0x53b   : > { %2151 = vst.msk [vmem:[#allocation2 + $0x38] sm:$0xff] %vm787_vm4, %v2140_v57  ;;  %v2782_v28 = vmul.f32 0.17677669, %v2386_v56 }
 0x53c   : > { %v13837_v35 = vpop.f32.mrf.mxu1  ;;  %v13816_v59 = vpop.f32.mrf.mxu0 }
 0x53d   : > { %v2794_v53 = vsel %vm1407_vm5, %v2782_v28, -inf }
 0x542   : > { %v2308_v60 = vpop.f32.mrf.mxu0  ;;  %v2542_v40 = vpop.f32.mrf.mxu1 }
 0x543   : > { %v2781_v15 = vmul.f32 0.17677669, %v2308_v60  ;;  %v2784_v34 = vmul.f32 0.17677669, %v2542_v40 }
 0x544   : > { %v13830_v61 = vpop.f32.mrf.mxu0  ;;  %v13851_v38 = vpop.f32.mrf.mxu1 }
 0x545   : > { %v2791_v24 = vsel %vm1407_vm5, %v2781_v15, -inf  ;;  %v2800_v47 = vsel %vm1407_vm5, %v2784_v34, -inf }
 0x546   : > { %2792 = vmax.xlane.f32.xlu0 %v2791_v24 }
 0x54a   : > { %v2698_v52 = vpop.f32.mrf.mxu1  ;;  %2795 = vmax.xlane.f32.xlu0 %v2794_v53  ;;  %v2464_v39 = vpop.f32.mrf.mxu0 }
 0x54b   : > { %v2783_v54 = vmul.f32 0.17677669, %v2464_v39  ;;  %v2786_v58 = vmul.f32 0.17677669, %v2698_v52 }
 0x54c   : > { %v13844_v55 = vpop.f32.mrf.mxu0  ;;  %v13865_v10 = vpop.f32.mrf.mxu1 }
 0x54d   : > { %v2797_v46 = vsel %vm1407_vm5, %v2783_v54, -inf  ;;  %v2806_v18 = vsel %vm1407_vm5, %v2786_v58, -inf }
 0x54e   : > { %2801 = vmax.xlane.f32.xlu0 %v2800_v47  ;;  %2798 = vmax.xlane.f32.xlu1 %v2797_v46 }
 0x552   : > { %2807 = vmax.xlane.f32.xlu0 %v2806_v18  ;;  %v2620_v27 = vpop.f32.mrf.mxu0 }
 0x553   : > { %v2785_v62 = vmul.f32 0.17677669, %v2620_v27 }
 0x554   : > { %v13858_v41 = vpop.f32.mrf.mxu0 }
 0x555   : > { %v2803_v2 = vsel %vm1407_vm5, %v2785_v62, -inf }
 0x556   : > { %2804 = vmax.xlane.f32.xlu1 %v2803_v2 }
 0x55a   : > { %v2776_v36 = vpop.f32.mrf.mxu0 }
 0x55b   : > { %v15585_v37 = vmul.f32 0.17677669, %v2776_v36 }
 0x55c   : > { %v13872_v48 = vpop.f32.mrf.mxu0 }
 0x55d   : > { %v2809_v56 = vsel %vm1407_vm5, %v15585_v37, -inf }
 0x567   : > { %3036 = vrot.lane.b32.xlu1 %v15282_v3, %s14891_s25 }
 0x568   : > { %2955 = vrot.lane.b32.xlu0 %v15272_v63, %s14891_s25 }
 0x56b   : > { %3034 = vrot.lane.b32.xlu1 %v15302_v7, %s14891_s25 }
 0x56c   : > { %3115 = vrot.lane.b32.xlu0 %v15292_v5, %s14891_s25 }
 0x56f   : > { %3194 = vrot.lane.b32.xlu1 %v15312_v11, %s14891_s25 }
 0x570   : > { %3113 = vrot.lane.b32.xlu0 %v15265_v45, %s14891_s25 }
 0x573   : > { %3192 = vrot.lane.b32.xlu1 %v15327_v50, %s14891_s25 }
 0x574   : > { %3273 = vrot.lane.b32.xlu0 %v15275_v1, %s14891_s25 }
 0x577   : > { %3352 = vrot.lane.b32.xlu1 %v15334_v49, %s14891_s25 }
 0x578   : > { %3271 = vrot.lane.b32.xlu0 %v15285_v14, %s14891_s25 }
 0x57b   : > { %3350 = vrot.lane.b32.xlu1 %v15341_v51, %s14891_s25 }
 0x57c   : > { %3431 = vrot.lane.b32.xlu0 %v15295_v19, %s14891_s25 }
 0x580   : > { %3429 = vrot.lane.b32.xlu0 %v15305_v23, %s14891_s25 }
 0x59f   : > { %2810 = vmax.xlane.f32.xlu1 %v2809_v56 }
 0x5b0   : > { %3553 = vrot.lane.b32.xlu1 %v15043_v0, %s14892_s26 }
 0x5bf   : > { %v2790_v57 = vpop.xlane.xlu1 %2789 }
 0x5c0   : > { %v2812_v35 = vsub.f32 %v2780_v32, %v2790_v57 }
 0x5c2   : > { %v2820_v59 = vmul.f32 1.442695, %v2812_v35 }
 0x5c4   : > { %14590 = vpow2.f32 %v2820_v59 }
 0x5cf   : > { %v2793_v60 = vpop.xlane.xlu0 %2792 }
 0x5d0   : > { %v2813_v40 = vsub.f32 %v2781_v15, %v2793_v60 }
 0x5d1   : > { %v15591_v61 = vpop.eup %14590 }
 0x5d2   : > { %v2822_v38 = vmul.f32 1.442695, %v2813_v40  ;;  %v2836_v24 = vsel %vm1407_vm5, %v15591_v61, 0.0 }
 0x5d3   : > { %v2796_v53 = vpop.xlane.xlu0 %2795  ;;  %2837 = vadd.xlane.f32.xlu0 %v2836_v24 }
 0x5d4   : > { %14592 = vpow2.f32 %v2822_v38  ;;  %v2814_v52 = vsub.f32 %v2782_v28, %v2796_v53 }
 0x5d6   : > { %v2824_v39 = vmul.f32 1.442695, %v2814_v52 }
 0x5d7   : > { %v2802_v55 = vpop.xlane.xlu0 %2801  ;;  %v2799_v10 = vpop.xlane.xlu1 %2798 }
 0x5d8   : > { %14594 = vpow2.f32 %v2824_v39  ;;  %v2816_v47 = vsub.f32 %v2784_v34, %v2802_v55  ;;  %v2815_v32 = vsub.f32 %v2783_v54, %v2799_v10 }
 0x5da   : > { %v2828_v46 = vmul.f32 1.442695, %v2816_v47  ;;  %v2826_v18 = vmul.f32 1.442695, %v2815_v32 }
 0x5db   : > { %v2808_v27 = vpop.xlane.xlu0 %2807 }
 0x5dc   : > { %14596 = vpow2.f32 %v2828_v46  ;;  %v2818_v15 = vsub.f32 %v2786_v58, %v2808_v27 }
 0x5dd   : > { %14598 = vpow2.f32 %v2826_v18 }
 0x5de   : > { %v2832_v41 = vmul.f32 1.442695, %v2818_v15 }
 0x5df   : > { %v2956_v2 = vpop.permute.xlu0 %2955  ;;  %v2805_v36 = vpop.xlane.xlu1 %2804 }
 0x5e0   : > { %14600 = vpow2.f32 %v2832_v41  ;;  %v2817_v48 = vsub.f32 %v2785_v62, %v2805_v36  ;;  %13883 = vmatpush3.msra.mxu0 %v2956_v2 }
 0x5e1   : > { %v15595_v56 = vpop.eup %14592  ;;  %13894 = vmatprep.subr.mxu0 %v14887_v21 }
 0x5e2   : > { %v2830_v28 = vmul.f32 1.442695, %v2817_v48  ;;  %v2839_v34 = vsel %vm1407_vm5, %v15595_v56, 0.0 }
 0x5e3   : > { %2840 = vadd.xlane.f32.xlu1 %v2839_v34  ;;  %v3037_v53 = vpop.permute.xlu1 %3036  ;;  %v3116_v15 = vpop.permute.xlu0 %3115 }
 0x5e4   : > { %14602 = vpow2.f32 %v2830_v28 }
 0x5e5   : > { %v15600_v54 = vpop.eup %14594 }
 0x5e6   : > { %v2842_v58 = vsel %vm1407_vm5, %v15600_v54, 0.0 }
 0x5e7   : > { %2843 = vadd.xlane.f32.xlu0 %v2842_v58  ;;  %v3035_v52 = vpop.permute.xlu1 %3034  ;;  %v3114_v2 = vpop.permute.xlu0 %3113 }
 0x5e9   : > { %v15604_v57 = vpop.eup %14596 }
 0x5ea   : > { %v15606_v62 = vpop.eup %14598  ;;  %v2848_v35 = vsel %vm1407_vm5, %v15604_v57, 0.0 }
 0x5eb   : > { %2849 = vadd.xlane.f32.xlu0 %v2848_v35  ;;  %v2845_v59 = vsel %vm1407_vm5, %v15606_v62, 0.0  ;;  %v15632_v39 = vpop.permute.xlu1 %3194  ;;  %v3274_v36 = vpop.permute.xlu0 %3273 }
 0x5ec   : > { %2846 = vadd.xlane.f32.xlu1 %v2845_v59 }
 0x5ed   : > { %v15612_v60 = vpop.eup %14600 }
 0x5ee   : > { %v2854_v40 = vsel %vm1407_vm5, %v15612_v60, 0.0 }
 0x5ef   : > { %2855 = vadd.xlane.f32.xlu0 %v2854_v40  ;;  %v15636_v55 = vpop.permute.xlu1 %3192  ;;  %v15655_v48 = vpop.permute.xlu0 %3271 }
 0x5f1   : > { %v15616_v38 = vpop.eup %14602 }
 0x5f2   : > { %v2851_v24 = vsel %vm1407_vm5, %v15616_v38, 0.0 }
 0x5f3   : > { %2852 = vadd.xlane.f32.xlu1 %v2851_v24  ;;  %v15642_v10 = vpop.permute.xlu1 %3352 }
 0x5f7   : > { %v15646_v47 = vpop.permute.xlu1 %3350 }
 0x604   : > { %3551 = vrot.lane.b32.xlu1 %v15057_v4, %s14892_s26 }
 0x605   : > { %3633 = vrot.lane.b32.xlu0 %v15070_v8, %s14892_s26 }
 0x608   : > { %3549 = vrot.lane.b32.xlu1 %v15061_v6, %s14892_s26 }
 0x609   : > { %3631 = vrot.lane.b32.xlu0 %v15090_v12, %s14892_s26 }
 0x60d   : > { %3711 = vrot.lane.b32.xlu0 %v15074_v9, %s14892_s26 }
 0x611   : > { %3709 = vrot.lane.b32.xlu0 %v15094_v13, %s14892_s26 }
 0x615   : > { %3867 = vrot.lane.b32.xlu0 %v15114_v17, %s14892_s26 }
 0x619   : > { %3865 = vrot.lane.b32.xlu0 %v15136_v22, %s14892_s26 }
 0x61d   : > { %4023 = vrot.lane.b32.xlu0 %v15158_v26, %s14892_s26 }
 0x621   : > { %4021 = vrot.lane.b32.xlu0 %v15180_v30, %s14892_s26 }
 0x625   : > { %4354 = vrot.lane.b32.xlu0 %v15262_v44, %s14893_s28 }
 0x628   : > { %v2811_v32 = vpop.xlane.xlu1 %2810 }
 0x629   : > { %v2819_v46 = vsub.f32 %v15585_v37, %v2811_v32  ;;  %v15661_v37 = vpop.permute.xlu0 %3431 }
 0x62b   : > { %v2834_v18 = vmul.f32 1.442695, %v2819_v46 }
 0x62c   : > { %v3554_v58 = vpop.permute.xlu1 %3553 }
 0x62d   : > { %14604 = vpow2.f32 %v2834_v18  ;;  %v15665_v28 = vpop.permute.xlu0 %3429 }
 0x63a   : > { %v15651_v27 = vpop.eup %14604 }
 0x63b   : > { %v2857_v41 = vsel %vm1407_vm5, %v15651_v27, 0.0 }
 0x63c   : > { %2858 = vadd.xlane.f32.xlu1 %v2857_v41 }
 0x64d   : > { %3789 = vrot.lane.b32.xlu1 %v15110_v16, %s14892_s26 }
 0x651   : > { %3787 = vrot.lane.b32.xlu1 %v15132_v20, %s14892_s26 }
 0x655   : > { %3945 = vrot.lane.b32.xlu1 %v15154_v25, %s14892_s26 }
 0x659   : > { %3943 = vrot.lane.b32.xlu1 %v15176_v29, %s14892_s26 }
 0x65c   : > { %v2838_v34 = vpop.xlane.xlu0 %2837 }
 0x65d   : > { %14606 = vrcp.f32 %v2838_v34  ;;  %4101 = vrot.lane.b32.xlu1 %v15192_v31, %s14892_s26 }
 0x661   : > { %4099 = vrot.lane.b32.xlu1 %v15206_v33, %s14892_s26 }
 0x665   : > { %4275 = vrot.lane.b32.xlu1 %v15252_v42, %s14893_s28 }
 0x669   : > { %4273 = vrot.lane.b32.xlu1 %v15255_v43, %s14893_s28 }
 0x66a   : > { %v14607_v35 = vpop.eup %14606 }
 0x66b   : > { %v2868_v59 = vmul.f32 %v14607_v35, %v15591_v61 }
 0x66c   : > { %v2841_v40 = vpop.xlane.xlu1 %2840 }
 0x66d   : > { %14608 = vrcp.f32 %v2841_v40  ;;  %4352 = vrot.lane.b32.xlu1 %v15272_v63, %s14893_s28  ;;  %13878 = vmatmul.mubr.msk.f32.vlgmr.msra.gmra.mxu1 %vm1407_vm5, %v2868_v59 }
 0x66e   : > { %13888 = vmatpush3.msra.mxu1 %v3037_v53  ;;  %13891 = vmatprep.mubr.msk.f32.mxu1 %vm14888_vm3, %v14887_v21 }
 0x66f   : > { %13889 = vmatprep.subr.mxu1 %v14887_v21 }
 0x670   : > { %v2844_v24 = vpop.xlane.xlu0 %2843  ;;  %13890 = vmatpush3.msra.mxu1 %v3035_v52 }
 0x671   : > { %14610 = vrcp.f32 %v2844_v24  ;;  %13901 = vmatprep.subr.mxu1 %v14887_v21 }
 0x674   : > { %v2850_v32 = vpop.xlane.xlu0 %2849 }
 0x675   : > { %14612 = vrcp.f32 %v2850_v32  ;;  %v2847_v61 = vpop.xlane.xlu1 %2846 }
 0x676   : > { %14614 = vrcp.f32 %v2847_v61 }
 0x678   : > { %v2856_v46 = vpop.xlane.xlu0 %2855 }
 0x679   : > { %14616 = vrcp.f32 %v2856_v46 }
 0x67a   : > { %v14609_v18 = vpop.eup %14608 }
 0x67b   : > { %v2869_v41 = vmul.f32 %v14609_v18, %v15595_v56 }
 0x67c   : > { %v15686_v53 = vpop.permute.xlu0 %3633  ;;  %v2853_v34 = vpop.xlane.xlu1 %2852 }
 0x67d   : > { %14618 = vrcp.f32 %v2853_v34  ;;  %13885 = vmatmul.mubr.msk.f32.vlgmr.msra.gmra.mxu0 %vm1407_vm5, %v2869_v41 }
 0x67e   : > { %v14611_v35 = vpop.eup %14610  ;;  %13895 = vmatpush3.msra.mxu0 %v3116_v15  ;;  %13898 = vmatprep.mubr.msk.f32.mxu0 %vm14888_vm3, %v14887_v21 }
 0x67f   : > { %13896 = vmatprep.subr.mxu0 %v14887_v21  ;;  %v2870_v52 = vmul.f32 %v14611_v35, %v15600_v54 }
 0x680   : > { %13897 = vmatpush3.msra.mxu0 %v3114_v2  ;;  %v15695_v59 = vpop.permute.xlu0 %3631 }
 0x681   : > { %13892 = vmatmul.mubr.msk.f32.vlgmr.msra.gmra.mxu1 %vm1407_vm5, %v2870_v52  ;;  %13908 = vmatprep.subr.mxu0 %v14887_v21 }
 0x682   : > { %v14613_v56 = vpop.eup %14612  ;;  %13902 = vmatpush3.msra.mxu1 %v15632_v39  ;;  %13905 = vmatprep.mubr.msk.f32.mxu1 %vm14888_vm3, %v14887_v21 }
 0x683   : > { %v14615_v15 = vpop.eup %14614  ;;  %13903 = vmatprep.subr.mxu1 %v14887_v21  ;;  %v2872_v40 = vmul.f32 %v14613_v56, %v15604_v57 }
 0x684   : > { %13904 = vmatpush3.msra.mxu1 %v15636_v55  ;;  %v2871_v54 = vmul.f32 %v14615_v15, %v15606_v62  ;;  %v3712_v24 = vpop.permute.xlu0 %3711  ;;  %v3552_v62 = vpop.permute.xlu1 %3551 }
 0x685   : > { %13915 = vmatprep.subr.mxu1 %v14887_v21  ;;  %13906 = vmatmul.mubr.msk.f32.vlgmr.msra.gmra.mxu1 %vm1407_vm5, %v2872_v40 }
 0x686   : > { %v14617_v2 = vpop.eup %14616  ;;  %13899 = vmatmul.mubr.msk.f32.vlgmr.msra.gmra.mxu0 %vm1407_vm5, %v2871_v54  ;;  %13916 = vmatpush3.msra.mxu1 %v15642_v10 }
 0x687   : > { %13909 = vmatpush3.msra.mxu0 %v3274_v36  ;;  %13917 = vmatprep.subr.mxu1 %v14887_v21  ;;  %v2874_v39 = vmul.f32 %v14617_v2, %v15612_v60 }
 0x688   : > { %13910 = vmatprep.subr.mxu0 %v14887_v21  ;;  %13918 = vmatpush3.msra.mxu1 %v15646_v47  ;;  %v3710_v55 = vpop.permute.xlu0 %3709 }
 0x689   : > { %13911 = vmatpush3.msra.mxu0 %v15655_v48  ;;  %13919 = vmatprep.mubr.msk.f32.mxu1 %vm14888_vm3, %v14887_v21 }
 0x68a   : > { %v14619_v57 = vpop.eup %14618  ;;  %13929 = vmatprep.subr.mxu1 %v14887_v21  ;;  %13920 = vmatmul.mubr.msk.f32.vlgmr.msra.gmra.mxu1 %vm1407_vm5, %v2874_v39 }
 0x68b   : > { %13930 = vmatpush3.xpose.msk.msra.mxu1 %vm787_vm4, %v3554_v58  ;;  %13912 = vmatprep.mubr.msk.f32.mxu0 %vm14888_vm3, %v14887_v21  ;;  %v2873_v60 = vmul.f32 %v14619_v57, %v15616_v38  ;;  %v15733_v38 = vpop.permute.xlu1 %3549 }
 0x68c   : > { %13922 = vmatprep.subr.mxu0 %v14887_v21  ;;  %13931 = vmatprep.subr.mxu1 %v14887_v21  ;;  %v3868_v10 = vpop.permute.xlu0 %3867 }
 0x68d   : > { %13913 = vmatmul.mubr.msk.f32.vlgmr.msra.gmra.mxu0 %vm1407_vm5, %v2873_v60  ;;  %13933 = vmatprep.mubr.msk.f32.mxu1 %vm14888_vm3, %v14887_v21 }
 0x68e   : > { %13923 = vmatpush3.msra.mxu0 %v15661_v37  ;;  %13926 = vmatprep.mubr.msk.f32.mxu0 %vm14888_vm3, %v14887_v21 }
 0x68f   : > { %13932 = vmatpush3.xpose.msk.msra.mxu1 %vm787_vm4, %v3552_v62  ;;  %13924 = vmatprep.subr.mxu0 %v14887_v21 }
 0x690   : > { %13925 = vmatpush3.msra.mxu0 %v15665_v28  ;;  %13943 = vmatprep.subr.mxu1 %v14887_v21  ;;  %v3866_v47 = vpop.permute.xlu0 %3865 }
 0x691   : > { %13936 = vmatprep.subr.mxu0 %v14887_v21 }
 0x692   : > { %13934 = vmatmul.mubr.msk.f32.vlgmr.msra.gmra.mxu1 %vm787_vm4, %v15733_v38 }
 0x693   : > { %13944 = vmatpush3.xpose.msk.msra.mxu1 %vm787_vm4, %v3712_v24  ;;  %13947 = vmatprep.mubr.msk.f32.mxu1 %vm14888_vm3, %v14887_v21 }
 0x694   : > { %13945 = vmatprep.subr.mxu1 %v14887_v21  ;;  %v4024_v36 = vpop.permute.xlu0 %4023 }
 0x697   : > { %13946 = vmatpush3.xpose.msk.msra.mxu1 %vm787_vm4, %v3710_v55 }
 0x698   : > { %13957 = vmatprep.subr.mxu1 %v14887_v21  ;;  %v4022_v48 = vpop.permute.xlu0 %4021 }
 0x69a   : > { %13948 = vmatmul.mubr.msk.f32.vlgmr.msra.gmra.mxu1 %vm787_vm4, %v15733_v38 }
 0x69b   : > { %13958 = vmatpush3.xpose.msk.msra.mxu1 %vm787_vm4, %v3868_v10  ;;  %13961 = vmatprep.mubr.msk.f32.mxu1 %vm14888_vm3, %v14887_v21 }
 0x69c   : > { %13959 = vmatprep.subr.mxu1 %v14887_v21  ;;  %v4355_v35 = vpop.permute.xlu0 %4354 }
 0x69f   : > { %13960 = vmatpush3.xpose.msk.msra.mxu1 %vm787_vm4, %v3866_v47 }
 0x6a0   : > { %13971 = vmatprep.subr.mxu1 %v14887_v21 }
 0x6a2   : > { %13962 = vmatmul.mubr.msk.f32.vlgmr.msra.gmra.mxu1 %vm787_vm4, %v15733_v38 }
 0x6a3   : > { %13972 = vmatpush3.xpose.msk.msra.mxu1 %vm787_vm4, %v4024_v36  ;;  %13975 = vmatprep.mubr.msk.f32.mxu1 %vm14888_vm3, %v14887_v21 }
 0x6a4   : > { %13973 = vmatprep.subr.mxu1 %v14887_v21 }
 0x6a7   : > { %13974 = vmatpush3.xpose.msk.msra.mxu1 %vm787_vm4, %v4022_v48 }
 0x6a8   : > { %13985 = vmatprep.subr.mxu1 %v14887_v21 }
 0x6aa   : > { %13976 = vmatmul.mubr.msk.f32.vlgmr.msra.gmra.mxu1 %vm787_vm4, %v15733_v38 }
 0x6ab   : > { %13989 = vmatprep.mubr.msk.f32.mxu1 %vm14888_vm3, %v14887_v21 }
 0x6c5   : > { %v2859_v37 = vpop.xlane.xlu1 %2858 }
 0x6c6   : > { %14620 = vrcp.f32 %v2859_v37 }
 0x6c9   : > { %v3790_v28 = vpop.permute.xlu1 %3789 }
 0x6cd   : > { %v3788_v58 = vpop.permute.xlu1 %3787 }
 0x6d1   : > { %v3946_v32 = vpop.permute.xlu1 %3945 }
 0x6d3   : > { %v14621_v61 = vpop.eup %14620 }
 0x6d4   : > { %v2875_v46 = vmul.f32 %v14621_v61, %v15651_v27 }
 0x6d5   : > { %v3944_v18 = vpop.permute.xlu1 %3943 }
 0x6d6   : > { %13927 = vmatmul.mubr.msk.f32.vlgmr.msra.gmra.mxu0 %vm1407_vm5, %v2875_v46 }
 0x6d7   : > { %13937 = vmatpush3.xpose.msk.msra.mxu0 %vm787_vm4, %v15686_v53  ;;  %13940 = vmatprep.mubr.msk.f32.mxu0 %vm14888_vm3, %v14887_v21 }
 0x6d8   : > { %13938 = vmatprep.subr.mxu0 %v14887_v21 }
 0x6d9   : > { %v4102_v41 = vpop.permute.xlu1 %4101 }
 0x6db   : > { %13939 = vmatpush3.xpose.msk.msra.mxu0 %vm787_vm4, %v15695_v59 }
 0x6dc   : > { %13950 = vmatprep.subr.mxu0 %v14887_v21 }
 0x6dd   : > { %v4100_v34 = vpop.permute.xlu1 %4099 }
 0x6de   : > { %13941 = vmatmul.mubr.msk.f32.vlgmr.msra.gmra.mxu0 %vm787_vm4, %v15733_v38 }
 0x6df   : > { %13951 = vmatpush3.xpose.msk.msra.mxu0 %vm787_vm4, %v3790_v28  ;;  %13954 = vmatprep.mubr.msk.f32.mxu0 %vm14888_vm3, %v14887_v21 }
 0x6e0   : > { %13952 = vmatprep.subr.mxu0 %v14887_v21 }
 0x6e1   : > { %v4276_v27 = vpop.permute.xlu1 %4275 }
 0x6e2   : > { %13986 = vmatpush3.msra.mxu1 %v4276_v27 }
 0x6e3   : > { %13953 = vmatpush3.xpose.msk.msra.mxu0 %vm787_vm4, %v3788_v58  ;;  %13987 = vmatprep.subr.mxu1 %v14887_v21 }
 0x6e4   : > { %13964 = vmatprep.subr.mxu0 %v14887_v21 }
 0x6e5   : > { %v4274_v53 = vpop.permute.xlu1 %4273 }
 0x6e6   : > { %13955 = vmatmul.mubr.msk.f32.vlgmr.msra.gmra.mxu0 %vm787_vm4, %v15733_v38  ;;  %13988 = vmatpush3.msra.mxu1 %v4274_v53 }
 0x6e7   : > { %13965 = vmatpush3.xpose.msk.msra.mxu0 %vm787_vm4, %v3946_v32  ;;  %13968 = vmatprep.mubr.msk.f32.mxu0 %vm14888_vm3, %v14887_v21 }
 0x6e8   : > { %13966 = vmatprep.subr.mxu0 %v14887_v21  ;;  %13999 = vmatprep.subr.mxu1 %v14887_v21 }
 0x6e9   : > { %v4353_v52 = vpop.permute.xlu1 %4352 }
 0x6eb   : > { %13967 = vmatpush3.xpose.msk.msra.mxu0 %vm787_vm4, %v3944_v18 }
 0x6ec   : > { %13978 = vmatprep.subr.mxu0 %v14887_v21 }
 0x6ee   : > { %13969 = vmatmul.mubr.msk.f32.vlgmr.msra.gmra.mxu0 %vm787_vm4, %v15733_v38 }
 0x6ef   : > { %13979 = vmatpush3.xpose.msk.msra.mxu0 %vm787_vm4, %v4102_v41  ;;  %13982 = vmatprep.mubr.msk.f32.mxu0 %vm14888_vm3, %v14887_v21 }
 0x6f0   : > { %13980 = vmatprep.subr.mxu0 %v14887_v21 }
 0x6f3   : > { %13981 = vmatpush3.xpose.msk.msra.mxu0 %vm787_vm4, %v4100_v34 }
 0x6f4   : > { %13992 = vmatprep.subr.mxu0 %v14887_v21 }
 0x6f6   : > { %13983 = vmatmul.mubr.msk.f32.vlgmr.msra.gmra.mxu0 %vm787_vm4, %v15733_v38 }
 0x6f7   : > { %13993 = vmatpush3.msra.mxu0 %v4355_v35  ;;  %13996 = vmatprep.mubr.msk.f32.mxu0 %vm14888_vm3, %v14887_v21 }
 0x6f8   : > { %13994 = vmatprep.subr.mxu0 %v14887_v21 }
 0x6f9   : > { %13995 = vmatpush3.msra.mxu0 %v4353_v52 }
 0x6fa   : > { %14006 = vmatprep.subr.mxu0 %v14887_v21 }
 0x72d   : > { %v15806_v56 = vpop.f32.mrf.mxu1 }
 0x72f   : > { %v13879_v59 = vpop.f32.mrf.mxu1 }
 0x73d   : > { %v15808_v15 = vpop.f32.mrf.mxu0 }
 0x73f   : > { %v13886_v40 = vpop.f32.mrf.mxu0 }
 0x741   : > { %v15810_v54 = vpop.f32.mrf.mxu1 }
 0x743   : > { %v13893_v2 = vpop.f32.mrf.mxu1 }
 0x745   : > { %v15812_v39 = vpop.f32.mrf.mxu1 }
 0x746   : > { %v15814_v24 = vpop.f32.mrf.mxu0 }
 0x747   : > { %v13907_v57 = vpop.f32.mrf.mxu1 }
 0x748   : > { %v13900_v62 = vpop.f32.mrf.mxu0 }
 0x74a   : > { %v15816_v60 = vpop.f32.mrf.mxu1 }
 0x74c   : > { %v13921_v55 = vpop.f32.mrf.mxu1 }
 0x74d   : > { %v15818_v38 = vpop.f32.mrf.mxu0 }
 0x74f   : > { %v13914_v10 = vpop.f32.mrf.mxu0 }
 0x752   : > { %v3627_v47 = vpop.f32.mrf.mxu1 }
 0x753   : > { %v4177_v36 = vmul.f32 0.17677669, %v3627_v47 }
 0x754   : > { %v13935_v48 = vpop.f32.mrf.mxu1 }
 0x755   : > { %v4185_v37 = vsel %vm1407_vm5, %v4177_v36, -inf }
 0x756   : > { %4186 = vmax.xlane.f32.xlu0 %v4185_v37 }
 0x75a   : > { %v3783_v28 = vpop.f32.mrf.mxu1 }
 0x75b   : > { %v4179_v58 = vmul.f32 0.17677669, %v3783_v28 }
 0x75c   : > { %v13949_v32 = vpop.f32.mrf.mxu1 }
 0x75d   : > { %v4191_v61 = vsel %vm1407_vm5, %v4179_v58, -inf }
 0x75e   : > { %4192 = vmax.xlane.f32.xlu0 %v4191_v61 }
 0x762   : > { %v3939_v46 = vpop.f32.mrf.mxu1 }
 0x763   : > { %v4181_v40 = vmul.f32 0.17677669, %v3939_v46 }
 0x764   : > { %v13963_v18 = vpop.f32.mrf.mxu1 }
 0x765   : > { %v4197_v62 = vsel %vm1407_vm5, %v4181_v40, -inf }
 0x76a   : > { %v4095_v41 = vpop.f32.mrf.mxu1 }
 0x76b   : > { %v4183_v57 = vmul.f32 0.17677669, %v4095_v41 }
 0x76c   : > { %v13977_v34 = vpop.f32.mrf.mxu1 }
 0x76d   : > { %v4203_v48 = vsel %vm1407_vm5, %v4183_v57, -inf }
 0x796   : > { %v15822_v27 = vpop.f32.mrf.mxu0 }
 0x798   : > { %v13928_v53 = vpop.f32.mrf.mxu0 }
 0x79e   : > { %v3705_v35 = vpop.f32.mrf.mxu0 }
 0x79f   : > { %v4178_v52 = vmul.f32 0.17677669, %v3705_v35 }
 0x7a0   : > { %v13942_v59 = vpop.f32.mrf.mxu0 }
 0x7a1   : > { %v4188_v2 = vsel %vm1407_vm5, %v4178_v52, -inf }
 0x7a2   : > { %4189 = vmax.xlane.f32.xlu1 %v4188_v2 }
 0x7a6   : > { %4198 = vmax.xlane.f32.xlu1 %v4197_v62  ;;  %v3861_v55 = vpop.f32.mrf.mxu0 }
 0x7a7   : > { %v4180_v10 = vmul.f32 0.17677669, %v3861_v55 }
 0x7a8   : > { %v13956_v47 = vpop.f32.mrf.mxu0 }
 0x7a9   : > { %v4194_v37 = vsel %vm1407_vm5, %v4180_v10, -inf }
 0x7aa   : > { %4204 = vmax.xlane.f32.xlu1 %v4203_v48  ;;  %4195 = vmax.xlane.f32.xlu0 %v4194_v37 }
 0x7ae   : > { %v4017_v28 = vpop.f32.mrf.mxu0 }
 0x7af   : > { %v4182_v32 = vmul.f32 0.17677669, %v4017_v28 }
 0x7b0   : > { %v13970_v61 = vpop.f32.mrf.mxu0 }
 0x7b1   : > { %v4200_v46 = vsel %vm1407_vm5, %v4182_v32, -inf }
 0x7b2   : > { %4201 = vmax.xlane.f32.xlu0 %v4200_v46 }
 0x7b6   : > { %v4173_v18 = vpop.f32.mrf.mxu0 }
 0x7b7   : > { %v15829_v41 = vmul.f32 0.17677669, %v4173_v18 }
 0x7b8   : > { %v13984_v34 = vpop.f32.mrf.mxu0 }
 0x7b9   : > { %v4206_v53 = vsel %vm1407_vm5, %v15829_v41, -inf }
 0x7ba   : > { %4207 = vmax.xlane.f32.xlu0 %v4206_v53 }
 0x7bb   : > { %4512 = vrot.lane.b32.xlu1 %v15292_v5, %s14893_s28 }
 0x7bf   : > { %4510 = vrot.lane.b32.xlu1 %v15265_v45, %s14893_s28 }
 0x7c3   : > { %4670 = vrot.lane.b32.xlu1 %v15275_v1, %s14893_s28 }
 0x7c7   : > { %4668 = vrot.lane.b32.xlu1 %v15285_v14, %s14893_s28 }
 0x7cb   : > { %4828 = vrot.lane.b32.xlu1 %v15295_v19, %s14893_s28 }
 0x7cf   : > { %4826 = vrot.lane.b32.xlu1 %v15305_v23, %s14893_s28 }
 0x7d0   : > { %4433 = vrot.lane.b32.xlu0 %v15282_v3, %s14893_s28 }
 0x7d3   : > { %5030 = vrot.lane.b32.xlu1 %v15070_v8, %s14894_s29 }
 0x7d4   : > { %4431 = vrot.lane.b32.xlu0 %v15302_v7, %s14893_s28 }
 0x7d8   : > { %4591 = vrot.lane.b32.xlu0 %v15312_v11, %s14893_s28 }
 0x7dc   : > { %4589 = vrot.lane.b32.xlu0 %v15327_v50, %s14893_s28 }
 0x7df   : > { %v4187_v35 = vpop.xlane.xlu0 %4186 }
 0x7e0   : > { %v4209_v59 = vsub.f32 %v4177_v36, %v4187_v35  ;;  %4749 = vrot.lane.b32.xlu0 %v15334_v49, %s14893_s28 }
 0x7e2   : > { %v4217_v2 = vmul.f32 1.442695, %v4209_v59 }
 0x7e4   : > { %4747 = vrot.lane.b32.xlu0 %v15341_v51, %s14893_s28  ;;  %14622 = vpow2.f32 %v4217_v2 }
 0x7e7   : > { %v4193_v8 = vpop.xlane.xlu0 %4192 }
 0x7e8   : > { %v4211_v62 = vsub.f32 %v4179_v58, %v4193_v8  ;;  %4950 = vrot.lane.b32.xlu0 %v15043_v0, %s14894_s29 }
 0x7ea   : > { %v4221_v55 = vmul.f32 1.442695, %v4211_v62 }
 0x7ec   : > { %14624 = vpow2.f32 %v4221_v55 }
 0x7f1   : > { %v15861_v47 = vpop.eup %14622 }
 0x7f2   : > { %v4233_v36 = vsel %vm1407_vm5, %v15861_v47, 0.0 }
 0x7f7   : > { %4234 = vadd.xlane.f32.xlu1 %v4233_v36 }
 0x7f9   : > { %v15865_v48 = vpop.eup %14624 }
 0x7fa   : > { %v4239_v37 = vsel %vm1407_vm5, %v15865_v48, 0.0 }
 0x7fb   : > { %4240 = vadd.xlane.f32.xlu1 %v4239_v37 }
 0x82b   : > { %v4190_v28 = vpop.xlane.xlu1 %4189 }
 0x82c   : > { %v4210_v61 = vsub.f32 %v4178_v52, %v4190_v28 }
 0x82e   : > { %v4219_v58 = vmul.f32 1.442695, %v4210_v61 }
 0x82f   : > { %v4199_v46 = vpop.xlane.xlu1 %4198 }
 0x830   : > { %14626 = vpow2.f32 %v4219_v58  ;;  %v4213_v0 = vsub.f32 %v4181_v40, %v4199_v46 }
 0x832   : > { %v4225_v18 = vmul.f32 1.442695, %v4213_v0 }
 0x833   : > { %v4205_v34 = vpop.xlane.xlu1 %4204  ;;  %v4196_v53 = vpop.xlane.xlu0 %4195 }
 0x834   : > { %14628 = vpow2.f32 %v4225_v18  ;;  %v4215_v35 = vsub.f32 %v4183_v57, %v4205_v34  ;;  %v4212_v59 = vsub.f32 %v4180_v10, %v4196_v53 }
 0x836   : > { %v4229_v2 = vmul.f32 1.442695, %v4215_v35  ;;  %v4223_v8 = vmul.f32 1.442695, %v4212_v59 }
 0x837   : > { %v15894_v35 = vpop.permute.xlu1 %4512 }
 0x838   : > { %14630 = vpow2.f32 %v4229_v2 }
 0x839   : > { %14632 = vpow2.f32 %v4223_v8 }
 0x83b   : > { %v4202_v62 = vpop.xlane.xlu0 %4201  ;;  %v15900_v59 = vpop.permute.xlu1 %4510 }
 0x83c   : > { %v4214_v55 = vsub.f32 %v4182_v32, %v4202_v62 }
 0x83d   : > { %v15869_v36 = vpop.eup %14626 }
 0x83e   : > { %v4227_v37 = vmul.f32 1.442695, %v4214_v55  ;;  %v4236_v52 = vsel %vm1407_vm5, %v15869_v36, 0.0 }
 0x83f   : > { %4237 = vadd.xlane.f32.xlu0 %v4236_v52  ;;  %v15904_v2 = vpop.permute.xlu1 %4670 }
 0x840   : > { %14634 = vpow2.f32 %v4227_v37 }
 0x841   : > { %v15873_v40 = vpop.eup %14628 }
 0x842   : > { %v4245_v57 = vsel %vm1407_vm5, %v15873_v40, 0.0 }
 0x843   : > { %4246 = vadd.xlane.f32.xlu1 %v4245_v57  ;;  %v4208_v10 = vpop.xlane.xlu0 %4207  ;;  %v15910_v8 = vpop.permute.xlu1 %4668 }
 0x844   : > { %v4216_v28 = vsub.f32 %v15829_v41, %v4208_v10 }
 0x845   : > { %v15878_v61 = vpop.eup %14630 }
 0x846   : > { %v15880_v32 = vpop.eup %14632  ;;  %v4231_v58 = vmul.f32 1.442695, %v4216_v28  ;;  %v4251_v46 = vsel %vm1407_vm5, %v15878_v61, 0.0 }
 0x847   : > { %4252 = vadd.xlane.f32.xlu1 %v4251_v46  ;;  %v4242_v0 = vsel %vm1407_vm5, %v15880_v32, 0.0 }
 0x848   : > { %14636 = vpow2.f32 %v4231_v58  ;;  %4243 = vadd.xlane.f32.xlu0 %v4242_v0 }
 0x84d   : > { %v15886_v18 = vpop.eup %14634 }
 0x84e   : > { %v4248_v34 = vsel %vm1407_vm5, %v15886_v18, 0.0 }
 0x84f   : > { %4249 = vadd.xlane.f32.xlu0 %v4248_v34 }
 0x855   : > { %v15890_v41 = vpop.eup %14636 }
 0x856   : > { %v4254_v53 = vsel %vm1407_vm5, %v15890_v41, 0.0 }
 0x857   : > { %4255 = vadd.xlane.f32.xlu0 %v4254_v53 }
 0x858   : > { %5028 = vrot.lane.b32.xlu1 %v15090_v12, %s14894_s29 }
 0x85c   : > { %5108 = vrot.lane.b32.xlu1 %v15074_v9, %s14894_s29  ;;  %v15916_v9 = vpop.permute.xlu1 %4828 }
 0x860   : > { %5106 = vrot.lane.b32.xlu1 %v15094_v13, %s14894_s29  ;;  %v15924_v12 = vpop.permute.xlu1 %4826 }
 0x864   : > { %5264 = vrot.lane.b32.xlu1 %v15114_v17, %s14894_s29  ;;  %v15928_v13 = vpop.permute.xlu1 %5030 }
 0x868   : > { %5262 = vrot.lane.b32.xlu1 %v15136_v22, %s14894_s29  ;;  %v4434_v22 = vpop.permute.xlu0 %4433 }
 0x86c   : > { %5420 = vrot.lane.b32.xlu1 %v15158_v26, %s14894_s29 }
 0x86d   : > { %4948 = vrot.lane.b32.xlu0 %v15057_v4, %s14894_s29 }
 0x870   : > { %5418 = vrot.lane.b32.xlu1 %v15180_v30, %s14894_s29 }
 0x871   : > { %4946 = vrot.lane.b32.xlu0 %v15061_v6, %s14894_s29 }
 0x875   : > { %5186 = vrot.lane.b32.xlu0 %v15110_v16, %s14894_s29  ;;  %v4432_v16 = vpop.permute.xlu0 %4431 }
 0x879   : > { %5184 = vrot.lane.b32.xlu0 %v15132_v20, %s14894_s29  ;;  %v4592_v30 = vpop.permute.xlu0 %4591 }
 0x87d   : > { %5342 = vrot.lane.b32.xlu0 %v15154_v25, %s14894_s29 }
 0x880   : > { %v4235_v4 = vpop.xlane.xlu1 %4234 }
 0x881   : > { %14638 = vrcp.f32 %v4235_v4  ;;  %5340 = vrot.lane.b32.xlu0 %v15176_v29, %s14894_s29 }
 0x884   : > { %v4241_v17 = vpop.xlane.xlu1 %4240 }
 0x885   : > { %14640 = vrcp.f32 %v4241_v17  ;;  %5498 = vrot.lane.b32.xlu0 %v15192_v31, %s14894_s29  ;;  %v4590_v31 = vpop.permute.xlu0 %4589 }
 0x889   : > { %5496 = vrot.lane.b32.xlu0 %v15206_v33, %s14894_s29  ;;  %v4750_v33 = vpop.permute.xlu0 %4749 }
 0x88e   : > { %v14639_v20 = vpop.eup %14638 }
 0x88f   : > { %v4265_v26 = vmul.f32 %v14639_v20, %v15861_v47  ;;  %v4748_v47 = vpop.permute.xlu0 %4747 }
 0x891   : > { %13990 = vmatmul.mubr.msk.f32.vlgmr.msra.gmra.mxu1 %vm1407_vm5, %v4265_v26 }
 0x892   : > { %v14641_v25 = vpop.eup %14640  ;;  %14000 = vmatpush3.msra.mxu1 %v4434_v22  ;;  %14003 = vmatprep.mubr.msk.f32.mxu1 %vm14888_vm3, %v14887_v21 }
 0x893   : > { %14001 = vmatprep.subr.mxu1 %v14887_v21  ;;  %v4267_v29 = vmul.f32 %v14641_v25, %v15865_v48  ;;  %v4951_v62 = vpop.permute.xlu0 %4950 }
 0x894   : > { %14002 = vmatpush3.msra.mxu1 %v4432_v16 }
 0x895   : > { %14013 = vmatprep.subr.mxu1 %v14887_v21  ;;  %14004 = vmatmul.mubr.msk.f32.vlgmr.msra.gmra.mxu1 %vm1407_vm5, %v4267_v29 }
 0x896   : > { %14014 = vmatpush3.msra.mxu1 %v4592_v30  ;;  %14017 = vmatprep.mubr.msk.f32.mxu1 %vm14888_vm3, %v14887_v21 }
 0x897   : > { %14015 = vmatprep.subr.mxu1 %v14887_v21 }
 0x898   : > { %14016 = vmatpush3.msra.mxu1 %v4590_v31 }
 0x899   : > { %14027 = vmatprep.subr.mxu1 %v14887_v21 }
 0x8c8   : > { %v4238_v55 = vpop.xlane.xlu0 %4237 }
 0x8c9   : > { %14642 = vrcp.f32 %v4238_v55 }
 0x8cc   : > { %v4247_v48 = vpop.xlane.xlu1 %4246 }
 0x8cd   : > { %14644 = vrcp.f32 %v4247_v48 }
 0x8d0   : > { %v4253_v37 = vpop.xlane.xlu1 %4252 }
 0x8d1   : > { %14646 = vrcp.f32 %v4253_v37  ;;  %v4244_v52 = vpop.xlane.xlu0 %4243 }
 0x8d2   : > { %14648 = vrcp.f32 %v4244_v52 }
 0x8d4   : > { %v15951_v58 = vpop.permute.xlu1 %5028 }
 0x8d6   : > { %v14643_v57 = vpop.eup %14642 }
 0x8d7   : > { %v4266_v10 = vmul.f32 %v14643_v57, %v15869_v36 }
 0x8d8   : > { %v4250_v28 = vpop.xlane.xlu0 %4249  ;;  %v5109_v53 = vpop.permute.xlu1 %5108 }
 0x8d9   : > { %14650 = vrcp.f32 %v4250_v28  ;;  %13997 = vmatmul.mubr.msk.f32.vlgmr.msra.gmra.mxu0 %vm1407_vm5, %v4266_v10 }
 0x8da   : > { %v14645_v46 = vpop.eup %14644  ;;  %14007 = vmatpush3.msra.mxu0 %v15894_v35  ;;  %14010 = vmatprep.mubr.msk.f32.mxu0 %vm14888_vm3, %v14887_v21 }
 0x8db   : > { %14008 = vmatprep.subr.mxu0 %v14887_v21  ;;  %v4269_v0 = vmul.f32 %v14645_v46, %v15873_v40 }
 0x8dc   : > { %14009 = vmatpush3.msra.mxu0 %v15900_v59 }
 0x8dd   : > { %14018 = vmatmul.mubr.msk.f32.vlgmr.msra.gmra.mxu1 %vm1407_vm5, %v4269_v0  ;;  %14020 = vmatprep.subr.mxu0 %v14887_v21 }
 0x8de   : > { %v14647_v36 = vpop.eup %14646  ;;  %14028 = vmatpush3.msra.mxu1 %v4750_v33  ;;  %14031 = vmatprep.mubr.msk.f32.mxu1 %vm14888_vm3, %v14887_v21 }
 0x8df   : > { %v14649_v34 = vpop.eup %14648  ;;  %14029 = vmatprep.subr.mxu1 %v14887_v21  ;;  %v4271_v35 = vmul.f32 %v14647_v36, %v15878_v61 }
 0x8e0   : > { %14030 = vmatpush3.msra.mxu1 %v4748_v47  ;;  %v4256_v4 = vpop.xlane.xlu0 %4255  ;;  %v4268_v40 = vmul.f32 %v14649_v34, %v15880_v32  ;;  %v5107_v32 = vpop.permute.xlu1 %5106 }
 0x8e1   : > { %14041 = vmatprep.subr.mxu1 %v14887_v21  ;;  %14652 = vrcp.f32 %v4256_v4  ;;  %14032 = vmatmul.mubr.msk.f32.vlgmr.msra.gmra.mxu1 %vm1407_vm5, %v4271_v35 }
 0x8e2   : > { %14011 = vmatmul.mubr.msk.f32.vlgmr.msra.gmra.mxu0 %vm1407_vm5, %v4268_v40  ;;  %14042 = vmatpush3.xpose.msk.msra.mxu1 %vm787_vm4, %v4951_v62 }
 0x8e3   : > { %14021 = vmatpush3.msra.mxu0 %v15904_v2  ;;  %14043 = vmatprep.subr.mxu1 %v14887_v21 }
 0x8e4   : > { %14022 = vmatprep.subr.mxu0 %v14887_v21  ;;  %v4949_v61 = vpop.permute.xlu0 %4948  ;;  %14024 = vmatprep.mubr.msk.f32.mxu0 %vm14888_vm3, %v14887_v21 }
 0x8e5   : > { %14023 = vmatpush3.msra.mxu0 %v15910_v8  ;;  %14045 = vmatprep.mubr.msk.f32.mxu1 %vm14888_vm3, %v14887_v21  ;;  %v5265_v8 = vpop.permute.xlu1 %5264 }
 0x8e6   : > { %v14651_v59 = vpop.eup %14650  ;;  %14044 = vmatpush3.xpose.msk.msra.mxu1 %vm787_vm4, %v4949_v61  ;;  %14034 = vmatprep.subr.mxu0 %v14887_v21 }
 0x8e7   : > { %14055 = vmatprep.subr.mxu1 %v14887_v21  ;;  %v4270_v2 = vmul.f32 %v14651_v59, %v15886_v18 }
 0x8e8   : > { %v15983_v17 = vpop.permute.xlu0 %4946 }
 0x8e9   : > { %14025 = vmatmul.mubr.msk.f32.vlgmr.msra.gmra.mxu0 %vm1407_vm5, %v4270_v2  ;;  %14046 = vmatmul.mubr.msk.f32.vlgmr.msra.gmra.mxu1 %vm787_vm4, %v15983_v17  ;;  %v5263_v16 = vpop.permute.xlu1 %5262 }
 0x8ea   : > { %14035 = vmatpush3.msra.mxu0 %v15916_v9  ;;  %14056 = vmatpush3.xpose.msk.msra.mxu1 %vm787_vm4, %v5109_v53 }
 0x8eb   : > { %14036 = vmatprep.subr.mxu0 %v14887_v21  ;;  %14057 = vmatprep.subr.mxu1 %v14887_v21 }
 0x8ec   : > { %14037 = vmatpush3.msra.mxu0 %v15924_v12  ;;  %14059 = vmatprep.mubr.msk.f32.mxu1 %vm14888_vm3, %v14887_v21  ;;  %v5187_v9 = vpop.permute.xlu0 %5186 }
 0x8ed   : > { %14038 = vmatprep.mubr.msk.f32.mxu0 %vm14888_vm3, %v14887_v21  ;;  %14048 = vmatprep.subr.mxu0 %v14887_v21  ;;  %v5421_v12 = vpop.permute.xlu1 %5420 }
 0x8ee   : > { %v14653_v18 = vpop.eup %14652  ;;  %14058 = vmatpush3.xpose.msk.msra.mxu1 %vm787_vm4, %v5107_v32 }
 0x8ef   : > { %14069 = vmatprep.subr.mxu1 %v14887_v21  ;;  %v4272_v22 = vmul.f32 %v14653_v18, %v15890_v41 }
 0x8f0   : > { %v5185_v41 = vpop.permute.xlu0 %5184 }
 0x8f1   : > { %14060 = vmatmul.mubr.msk.f32.vlgmr.msra.gmra.mxu1 %vm787_vm4, %v15983_v17  ;;  %14039 = vmatmul.mubr.msk.f32.vlgmr.msra.gmra.mxu0 %vm1407_vm5, %v4272_v22  ;;  %v5419_v20 = vpop.permute.xlu1 %5418 }
 0x8f2   : > { %14049 = vmatpush3.xpose.msk.msra.mxu0 %vm787_vm4, %v15928_v13  ;;  %14070 = vmatpush3.xpose.msk.msra.mxu1 %vm787_vm4, %v5265_v8 }
 0x8f3   : > { %14050 = vmatprep.subr.mxu0 %v14887_v21  ;;  %14071 = vmatprep.subr.mxu1 %v14887_v21 }
 0x8f4   : > { %14052 = vmatprep.mubr.msk.f32.mxu0 %vm14888_vm3, %v14887_v21  ;;  %14073 = vmatprep.mubr.msk.f32.mxu1 %vm14888_vm3, %v14887_v21  ;;  %v5343_v13 = vpop.permute.xlu0 %5342 }
 0x8f6   : > { %14051 = vmatpush3.xpose.msk.msra.mxu0 %vm787_vm4, %v15951_v58  ;;  %14072 = vmatpush3.xpose.msk.msra.mxu1 %vm787_vm4, %v5263_v16 }
 0x8f7   : > { %14062 = vmatprep.subr.mxu0 %v14887_v21  ;;  %14083 = vmatprep.subr.mxu1 %v14887_v21 }
 0x8f8   : > { %v5341_v26 = vpop.permute.xlu0 %5340 }
 0x8f9   : > { %14053 = vmatmul.mubr.msk.f32.vlgmr.msra.gmra.mxu0 %vm787_vm4, %v15983_v17  ;;  %14074 = vmatmul.mubr.msk.f32.vlgmr.msra.gmra.mxu1 %vm787_vm4, %v15983_v17 }
 0x8fa   : > { %14063 = vmatpush3.xpose.msk.msra.mxu0 %vm787_vm4, %v5187_v9  ;;  %14084 = vmatpush3.xpose.msk.msra.mxu1 %vm787_vm4, %v5421_v12 }
 0x8fb   : > { %14064 = vmatprep.subr.mxu0 %v14887_v21  ;;  %14085 = vmatprep.subr.mxu1 %v14887_v21 }
 0x8fc   : > { %14066 = vmatprep.mubr.msk.f32.mxu0 %vm14888_vm3, %v14887_v21  ;;  %14087 = vmatprep.mubr.msk.f32.mxu1 %vm14888_vm3, %v14887_v21  ;;  %v5499_v30 = vpop.permute.xlu0 %5498 }
 0x8fe   : > { %14065 = vmatpush3.xpose.msk.msra.mxu0 %vm787_vm4, %v5185_v41  ;;  %14086 = vmatpush3.xpose.msk.msra.mxu1 %vm787_vm4, %v5419_v20 }
 0x8ff   : > { %14076 = vmatprep.subr.mxu0 %v14887_v21  ;;  %14097 = vmatprep.subr.mxu1 %v14887_v21 }
 0x900   : > { %v5497_v25 = vpop.permute.xlu0 %5496 }
 0x901   : > { %14067 = vmatmul.mubr.msk.f32.vlgmr.msra.gmra.mxu0 %vm787_vm4, %v15983_v17  ;;  %14088 = vmatmul.mubr.msk.f32.vlgmr.msra.gmra.mxu1 %vm787_vm4, %v15983_v17 }
 0x902   : > { %14077 = vmatpush3.xpose.msk.msra.mxu0 %vm787_vm4, %v5343_v13  ;;  %14080 = vmatprep.mubr.msk.f32.mxu0 %vm14888_vm3, %v14887_v21 }
 0x903   : > { %14078 = vmatprep.subr.mxu0 %v14887_v21  ;;  %14101 = vmatprep.mubr.msk.f32.mxu1 %vm14888_vm3, %v14887_v21 }
 0x906   : > { %14079 = vmatpush3.xpose.msk.msra.mxu0 %vm787_vm4, %v5341_v26 }
 0x907   : > { %14090 = vmatprep.subr.mxu0 %v14887_v21 }
 0x909   : > { %14081 = vmatmul.mubr.msk.f32.vlgmr.msra.gmra.mxu0 %vm787_vm4, %v15983_v17 }
 0x90a   : > { %14091 = vmatpush3.xpose.msk.msra.mxu0 %vm787_vm4, %v5499_v30  ;;  %14094 = vmatprep.mubr.msk.f32.mxu0 %vm14888_vm3, %v14887_v21 }
 0x90b   : > { %14092 = vmatprep.subr.mxu0 %v14887_v21 }
 0x90e   : > { %14093 = vmatpush3.xpose.msk.msra.mxu0 %vm787_vm4, %v5497_v25 }
 0x90f   : > { %14104 = vmatprep.subr.mxu0 %v14887_v21 }
 0x911   : > { %14095 = vmatmul.mubr.msk.f32.vlgmr.msra.gmra.mxu0 %vm787_vm4, %v15983_v17 }
 0x912   : > { %14108 = vmatprep.mubr.msk.f32.mxu0 %vm14888_vm3, %v14887_v21 }
 0x951   : > { %v16058_v29 = vpop.f32.mrf.mxu1 }
 0x953   : > { %v13991_v31 = vpop.f32.mrf.mxu1 }
 0x955   : > { %v16060_v33 = vpop.f32.mrf.mxu1 }
 0x957   : > { %v14005_v47 = vpop.f32.mrf.mxu1 }
 0x999   : > { %v16062_v62 = vpop.f32.mrf.mxu0 }
 0x99b   : > { %v13998_v55 = vpop.f32.mrf.mxu0 }
 0x99d   : > { %v16064_v48 = vpop.f32.mrf.mxu1 }
 0x99f   : > { %v14019_v37 = vpop.f32.mrf.mxu1 }
 0x9a1   : > { %v16066_v52 = vpop.f32.mrf.mxu1 }
 0x9a2   : > { %v16068_v57 = vpop.f32.mrf.mxu0 }
 0x9a3   : > { %v14033_v10 = vpop.f32.mrf.mxu1 }
 0x9a4   : > { %v14012_v28 = vpop.f32.mrf.mxu0 }
 0x9a9   : > { %v16070_v58 = vpop.f32.mrf.mxu0  ;;  %v5024_v46 = vpop.f32.mrf.mxu1 }
 0x9aa   : > { %v5574_v0 = vmul.f32 0.17677669, %v5024_v46 }
 0x9ab   : > { %v14026_v36 = vpop.f32.mrf.mxu0  ;;  %v14047_v34 = vpop.f32.mrf.mxu1 }
 0x9ac   : > { %v5582_v53 = vsel %vm1407_vm5, %v5574_v0, -inf }
 0x9ad   : > { %5583 = vmax.xlane.f32.xlu1 %v5582_v53 }
 0x9b1   : > { %v5180_v35 = vpop.f32.mrf.mxu1  ;;  %v16073_v4 = vpop.f32.mrf.mxu0 }
 0x9b2   : > { %v5576_v18 = vmul.f32 0.17677669, %v5180_v35 }
 0x9b3   : > { %v14061_v40 = vpop.f32.mrf.mxu1  ;;  %v14040_v61 = vpop.f32.mrf.mxu0 }
 0x9b4   : > { %v5588_v16 = vsel %vm1407_vm5, %v5576_v18, -inf }
 0x9b9   : > { %v5102_v32 = vpop.f32.mrf.mxu0  ;;  %v5336_v59 = vpop.f32.mrf.mxu1 }
 0x9ba   : > { %v5575_v2 = vmul.f32 0.17677669, %v5102_v32  ;;  %v5578_v22 = vmul.f32 0.17677669, %v5336_v59 }
 0x9bb   : > { %v14054_v17 = vpop.f32.mrf.mxu0  ;;  %v14075_v8 = vpop.f32.mrf.mxu1 }
 0x9bc   : > { %v5585_v9 = vsel %vm1407_vm5, %v5575_v2, -inf  ;;  %v5594_v25 = vsel %vm1407_vm5, %v5578_v22, -inf }
 0x9bd   : > { %5586 = vmax.xlane.f32.xlu0 %v5585_v9 }
 0x9c1   : > { %v5492_v41 = vpop.f32.mrf.mxu1  ;;  %5589 = vmax.xlane.f32.xlu0 %v5588_v16  ;;  %v5258_v12 = vpop.f32.mrf.mxu0 }
 0x9c2   : > { %v5577_v13 = vmul.f32 0.17677669, %v5258_v12  ;;  %v5580_v30 = vmul.f32 0.17677669, %v5492_v41 }
 0x9c3   : > { %v14068_v20 = vpop.f32.mrf.mxu0  ;;  %v14089_v26 = vpop.f32.mrf.mxu1 }
 0x9c4   : > { %v5591_v31 = vsel %vm1407_vm5, %v5577_v13, -inf  ;;  %v5600_v47 = vsel %vm1407_vm5, %v5580_v30, -inf }
 0x9c5   : > { %5595 = vmax.xlane.f32.xlu0 %v5594_v25  ;;  %5592 = vmax.xlane.f32.xlu1 %v5591_v31 }
 0x9c9   : > { %5601 = vmax.xlane.f32.xlu0 %v5600_v47  ;;  %v5414_v55 = vpop.f32.mrf.mxu0 }
 0x9ca   : > { %v5579_v37 = vmul.f32 0.17677669, %v5414_v55 }
 0x9cb   : > { %v14082_v10 = vpop.f32.mrf.mxu0 }
 0x9cc   : > { %v5597_v28 = vsel %vm1407_vm5, %v5579_v37, -inf }
 0x9cd   : > { %5598 = vmax.xlane.f32.xlu1 %v5597_v28 }
 0x9d1   : > { %v5570_v46 = vpop.f32.mrf.mxu0 }
 0x9d3   : > { %v14096_v36 = vpop.f32.mrf.mxu0 }
 0x9de   : > { %5751 = vrot.lane.b32.xlu1 %v15262_v44, %s14895_s30 }
 0x9df   : > { %5672 = vrot.lane.b32.xlu0 %v15252_v42, %s14895_s30  ;;  %v16099_v42 = vmul.f32 0.17677669, %v5570_v46 }
 0x9e2   : > { %5670 = vrot.lane.b32.xlu1 %v15255_v43, %s14895_s30  ;;  %v5603_v43 = vsel %vm1407_vm5, %v16099_v42, -inf }
 0x9e3   : > { %5749 = vrot.lane.b32.xlu0 %v15272_v63, %s14895_s30 }
 0x9e7   : > { %5909 = vrot.lane.b32.xlu0 %v15292_v5, %s14895_s30 }
 0x9eb   : > { %5907 = vrot.lane.b32.xlu0 %v15265_v45, %s14895_s30 }
 0x9ef   : > { %6067 = vrot.lane.b32.xlu0 %v15275_v1, %s14895_s30 }
 0x9f3   : > { %6065 = vrot.lane.b32.xlu0 %v15285_v14, %s14895_s30 }
 0x9f7   : > { %6225 = vrot.lane.b32.xlu0 %v15295_v19, %s14895_s30 }
 0xa06   : > { %5604 = vmax.xlane.f32.xlu1 %v5603_v43 }
 0xa17   : > { %5830 = vrot.lane.b32.xlu1 %v15282_v3, %s14895_s30 }
 0xa1b   : > { %5828 = vrot.lane.b32.xlu1 %v15302_v7, %s14895_s30 }
 0xa1f   : > { %5988 = vrot.lane.b32.xlu1 %v15312_v11, %s14895_s30 }
 0xa23   : > { %5986 = vrot.lane.b32.xlu1 %v15327_v50, %s14895_s30 }
 0xa27   : > { %6146 = vrot.lane.b32.xlu1 %v15334_v49, %s14895_s30 }
 0xa36   : > { %v5584_v44 = vpop.xlane.xlu1 %5583 }
 0xa37   : > { %v5606_v45 = vsub.f32 %v5574_v0, %v5584_v44 }
 0xa39   : > { %v5614_v63 = vmul.f32 1.442695, %v5606_v45 }
 0xa3b   : > { %14654 = vpow2.f32 %v5614_v63 }
 0xa46   : > { %v5587_v1 = vpop.xlane.xlu0 %5586 }
 0xa47   : > { %v5607_v14 = vsub.f32 %v5575_v2, %v5587_v1 }
 0xa48   : > { %v16113_v5 = vpop.eup %14654 }
 0xa49   : > { %v5616_v3 = vmul.f32 1.442695, %v5607_v14  ;;  %v5630_v19 = vsel %vm1407_vm5, %v16113_v5, 0.0 }
 0xa4a   : > { %v5590_v7 = vpop.xlane.xlu0 %5589  ;;  %5631 = vadd.xlane.f32.xlu0 %v5630_v19 }
 0xa4b   : > { %14656 = vpow2.f32 %v5616_v3  ;;  %v5608_v11 = vsub.f32 %v5576_v18, %v5590_v7 }
 0xa4d   : > { %v5618_v50 = vmul.f32 1.442695, %v5608_v11 }
 0xa4e   : > { %v5596_v34 = vpop.xlane.xlu0 %5595  ;;  %v5593_v53 = vpop.xlane.xlu1 %5592 }
 0xa4f   : > { %14658 = vpow2.f32 %v5618_v50  ;;  %v5610_v49 = vsub.f32 %v5578_v22, %v5596_v34  ;;  %v5609_v0 = vsub.f32 %v5577_v13, %v5593_v53 }
 0xa51   : > { %v5622_v35 = vmul.f32 1.442695, %v5610_v49  ;;  %v5620_v40 = vmul.f32 1.442695, %v5609_v0 }
 0xa52   : > { %v5602_v61 = vpop.xlane.xlu0 %5601 }
 0xa53   : > { %14660 = vpow2.f32 %v5622_v35  ;;  %v5612_v32 = vsub.f32 %v5580_v30, %v5602_v61 }
 0xa54   : > { %14662 = vpow2.f32 %v5620_v40 }
 0xa55   : > { %v5626_v59 = vmul.f32 1.442695, %v5612_v32 }
 0xa56   : > { %v5673_v2 = vpop.permute.xlu0 %5672  ;;  %v5599_v17 = vpop.xlane.xlu1 %5598 }
 0xa57   : > { %14664 = vpow2.f32 %v5626_v59  ;;  %v5611_v8 = vsub.f32 %v5579_v37, %v5599_v17  ;;  %14098 = vmatpush3.msra.mxu1 %v5673_v2 }
 0xa58   : > { %v16117_v9 = vpop.eup %14656  ;;  %14099 = vmatprep.subr.mxu1 %v14887_v21 }
 0xa59   : > { %v5624_v18 = vmul.f32 1.442695, %v5611_v8  ;;  %v5633_v22 = vsel %vm1407_vm5, %v16117_v9, 0.0 }
 0xa5a   : > { %v5752_v16 = vpop.permute.xlu1 %5751  ;;  %5634 = vadd.xlane.f32.xlu1 %v5633_v22  ;;  %v5750_v12 = vpop.permute.xlu0 %5749 }
 0xa5b   : > { %14666 = vpow2.f32 %v5624_v18  ;;  %14105 = vmatpush3.msra.mxu0 %v5752_v16 }
 0xa5c   : > { %v16122_v41 = vpop.eup %14658  ;;  %14106 = vmatprep.subr.mxu0 %v14887_v21 }
 0xa5d   : > { %14107 = vmatpush3.msra.mxu0 %v5750_v12  ;;  %v5636_v13 = vsel %vm1407_vm5, %v16122_v41, 0.0 }
 0xa5e   : > { %5637 = vadd.xlane.f32.xlu0 %v5636_v13  ;;  %v5671_v20 = vpop.permute.xlu1 %5670  ;;  %14118 = vmatprep.subr.mxu0 %v14887_v21 }
 0xa5f   : > { %14100 = vmatpush3.msra.mxu1 %v5671_v20 }
 0xa60   : > { %v16128_v26 = vpop.eup %14660  ;;  %14111 = vmatprep.subr.mxu1 %v14887_v21 }
 0xa61   : > { %v16131_v30 = vpop.eup %14662  ;;  %v5642_v25 = vsel %vm1407_vm5, %v16128_v26, 0.0 }
 0xa62   : > { %5643 = vadd.xlane.f32.xlu0 %v5642_v25  ;;  %v5639_v31 = vsel %vm1407_vm5, %v16131_v30, 0.0 }
 0xa63   : > { %5640 = vadd.xlane.f32.xlu1 %v5639_v31 }
 0xa64   : > { %v16137_v47 = vpop.eup %14664 }
 0xa65   : > { %v5648_v55 = vsel %vm1407_vm5, %v16137_v47, 0.0 }
 0xa66   : > { %5649 = vadd.xlane.f32.xlu0 %v5648_v55 }
 0xa68   : > { %v16141_v37 = vpop.eup %14666 }
 0xa69   : > { %v5645_v10 = vsel %vm1407_vm5, %v16141_v37, 0.0 }
 0xa6a   : > { %5646 = vadd.xlane.f32.xlu1 %v5645_v10 }
 0xa7c   : > { %6223 = vrot.lane.b32.xlu0 %v15305_v23, %s14895_s30 }
 0xa80   : > { %3518 = vrot.lane.b32.xlu0 %v15808_v15, %s14896_s6 }
 0xa84   : > { %4915 = vrot.lane.b32.xlu0 %v16062_v62, %s14897_s7 }
 0xa88   : > { %3522 = vrot.lane.b32.xlu0 %v15814_v24, %s14896_s6 }
 0xa8c   : > { %4919 = vrot.lane.b32.xlu0 %v16068_v57, %s14897_s7 }
 0xa8f   : > { %v5605_v28 = vpop.xlane.xlu1 %5604 }
 0xa90   : > { %v5613_v46 = vsub.f32 %v16099_v42, %v5605_v28  ;;  %3526 = vrot.lane.b32.xlu0 %v15818_v38, %s14896_s6  ;;  %v5910_v38 = vpop.permute.xlu0 %5909 }
 0xa92   : > { %v5628_v23 = vmul.f32 1.442695, %v5613_v46 }
 0xa93   : > { %v5831_v57 = vpop.permute.xlu1 %5830 }
 0xa94   : > { %14668 = vpow2.f32 %v5628_v23  ;;  %4923 = vrot.lane.b32.xlu0 %v16070_v58, %s14897_s7 }
 0xa98   : > { %3530 = vrot.lane.b32.xlu0 %v15822_v27, %s14896_s6  ;;  %v5908_v27 = vpop.permute.xlu0 %5907 }
 0xa9c   : > { %4927 = vrot.lane.b32.xlu0 %v16073_v4, %s14897_s7  ;;  %v16176_v62 = vpop.permute.xlu0 %6067 }
 0xaa1   : > { %v16164_v15 = vpop.eup %14668 }
 0xaa2   : > { %v5651_v24 = vsel %vm1407_vm5, %v16164_v15, 0.0 }
 0xaa3   : > { %5652 = vadd.xlane.f32.xlu1 %v5651_v24 }
 0xab4   : > { %6144 = vrot.lane.b32.xlu1 %v15341_v51, %s14895_s30  ;;  %v16182_v51 = vpop.permute.xlu0 %6065 }
 0xab8   : > { %3516 = vrot.lane.b32.xlu1 %v15806_v56, %s14896_s6  ;;  %v5829_v56 = vpop.permute.xlu1 %5828 }
 0xabc   : > { %4913 = vrot.lane.b32.xlu1 %v16058_v29, %s14897_s7  ;;  %v16186_v29 = vpop.permute.xlu0 %6225 }
 0xac0   : > { %3520 = vrot.lane.b32.xlu1 %v15810_v54, %s14896_s6  ;;  %v5989_v54 = vpop.permute.xlu1 %5988 }
 0xac4   : > { %4917 = vrot.lane.b32.xlu1 %v16060_v33, %s14897_s7  ;;  %v5987_v33 = vpop.permute.xlu1 %5986 }
 0xac8   : > { %3524 = vrot.lane.b32.xlu1 %v15812_v39, %s14896_s6  ;;  %v6147_v4 = vpop.permute.xlu1 %6146 }
 0xacc   : > { %4921 = vrot.lane.b32.xlu1 %v16064_v48, %s14897_s7 }
 0xad0   : > { %3528 = vrot.lane.b32.xlu1 %v15816_v60, %s14896_s6 }
 0xad3   : > { %v5632_v58 = vpop.xlane.xlu0 %5631 }
 0xad4   : > { %14670 = vrcp.f32 %v5632_v58  ;;  %4925 = vrot.lane.b32.xlu1 %v16066_v52, %s14897_s7 }
 0xae1   : > { %v14671_v39 = vpop.eup %14670 }
 0xae2   : > { %v5662_v36 = vmul.f32 %v14671_v39, %v16113_v5 }
 0xae3   : > { %v5635_v42 = vpop.xlane.xlu1 %5634 }
 0xae4   : > { %14672 = vrcp.f32 %v5635_v42  ;;  %14102 = vmatmul.mubr.msk.f32.vlgmr.msra.gmra.mxu1 %vm1407_vm5, %v5662_v36 }
 0xae5   : > { %14112 = vmatpush3.msra.mxu1 %v5831_v57  ;;  %14115 = vmatprep.mubr.msk.f32.mxu1 %vm14888_vm3, %v14887_v21 }
 0xae6   : > { %14113 = vmatprep.subr.mxu1 %v14887_v21 }
 0xae7   : > { %v5638_v60 = vpop.xlane.xlu0 %5637  ;;  %14114 = vmatpush3.msra.mxu1 %v5829_v56 }
 0xae8   : > { %14674 = vrcp.f32 %v5638_v60  ;;  %14125 = vmatprep.subr.mxu1 %v14887_v21 }
 0xaeb   : > { %v5644_v48 = vpop.xlane.xlu0 %5643 }
 0xaec   : > { %14676 = vrcp.f32 %v5644_v48  ;;  %v5641_v52 = vpop.xlane.xlu1 %5640 }
 0xaed   : > { %14678 = vrcp.f32 %v5641_v52 }
 0xaef   : > { %v5650_v43 = vpop.xlane.xlu0 %5649 }
 0xaf1   : > { %v14673_v44 = vpop.eup %14672 }
 0xaf2   : > { %v5663_v45 = vmul.f32 %v14673_v44, %v16117_v9 }
 0xaf3   : > { %v6224_v63 = vpop.permute.xlu0 %6223  ;;  %v5647_v1 = vpop.xlane.xlu1 %5646 }
 0xaf4   : > { %14680 = vrcp.f32 %v5647_v1  ;;  %14109 = vmatmul.mubr.msk.f32.vlgmr.msra.gmra.mxu0 %vm1407_vm5, %v5663_v45 }
 0xaf5   : > { %v14675_v14 = vpop.eup %14674  ;;  %14119 = vmatpush3.msra.mxu0 %v5910_v38  ;;  %14122 = vmatprep.mubr.msk.f32.mxu0 %vm14888_vm3, %v14887_v21  ;;  %14682 = vrcp.f32 %v5650_v43 }
 0xaf6   : > { %14120 = vmatprep.subr.mxu0 %v14887_v21  ;;  %v5664_v5 = vmul.f32 %v14675_v14, %v16122_v41 }
 0xaf7   : > { %14121 = vmatpush3.msra.mxu0 %v5908_v27  ;;  %v3519_v3 = vpop.permute.xlu0 %3518 }
 0xaf8   : > { %3542 = vst.msk [vmem:[#allocation2 + $0x8] sm:$0xff] %vm3540_vm6, %v3519_v3  ;;  %14116 = vmatmul.mubr.msk.f32.vlgmr.msra.gmra.mxu1 %vm1407_vm5, %v5664_v5  ;;  %14132 = vmatprep.subr.mxu0 %v14887_v21 }
 0xaf9   : > { %v14677_v19 = vpop.eup %14676  ;;  %14126 = vmatpush3.msra.mxu1 %v5989_v54  ;;  %14129 = vmatprep.mubr.msk.f32.mxu1 %vm14888_vm3, %v14887_v21 }
 0xafa   : > { %v14679_v7 = vpop.eup %14678  ;;  %14127 = vmatprep.subr.mxu1 %v14887_v21  ;;  %v5666_v11 = vmul.f32 %v14677_v19, %v16128_v26 }
 0xafb   : > { %14128 = vmatpush3.msra.mxu1 %v5987_v33  ;;  %v4916_v50 = vpop.permute.xlu0 %4915  ;;  %v5665_v34 = vmul.f32 %v14679_v7, %v16131_v30 }
 0xafc   : > { %4939 = vst.msk [vmem:[#allocation2 + $0x8] sm:$0xff] %vm4937_vm7, %v4916_v50  ;;  %14139 = vmatprep.subr.mxu1 %v14887_v21  ;;  %14130 = vmatmul.mubr.msk.f32.vlgmr.msra.gmra.mxu1 %vm1407_vm5, %v5666_v11 }
 0xafd   : > { %14123 = vmatmul.mubr.msk.f32.vlgmr.msra.gmra.mxu0 %vm1407_vm5, %v5665_v34  ;;  %14140 = vmatpush3.msra.mxu1 %v6147_v4 }
 0xafe   : > { %14133 = vmatpush3.msra.mxu0 %v16176_v62  ;;  %14136 = vmatprep.mubr.msk.f32.mxu0 %vm14888_vm3, %v14887_v21 }
 0xaff   : > { %14134 = vmatprep.subr.mxu0 %v14887_v21  ;;  %v3523_v53 = vpop.permute.xlu0 %3522  ;;  %14141 = vmatprep.subr.mxu1 %v14887_v21 }
 0xb00   : > { %14135 = vmatpush3.msra.mxu0 %v16182_v51  ;;  %3544 = vst.msk [vmem:[#allocation2 + $0x18] sm:$0xff] %vm3540_vm6, %v3523_v53  ;;  %14143 = vmatprep.mubr.msk.f32.mxu1 %vm14888_vm3, %v14887_v21 }
 0xb01   : > { %v14681_v49 = vpop.eup %14680  ;;  %14146 = vmatprep.subr.mxu0 %v14887_v21 }
 0xb02   : > { %v5667_v0 = vmul.f32 %v14681_v49, %v16141_v37  ;;  %v14683_v17 = vpop.eup %14682 }
 0xb03   : > { %v4920_v35 = vpop.permute.xlu0 %4919  ;;  %v5668_v9 = vmul.f32 %v14683_v17, %v16137_v47  ;;  %v6492_v17 = vld [vmem:[%s17622_s3 + $0x20] sm:$0xff] }
 0xb04   : > { %4941 = vst.msk [vmem:[#allocation2 + $0x18] sm:$0xff] %vm4937_vm7, %v4920_v35  ;;  %14137 = vmatmul.mubr.msk.f32.vlgmr.msra.gmra.mxu0 %vm1407_vm5, %v5667_v0 }
 0xb05   : > { %14147 = vmatpush3.msra.mxu0 %v16186_v29  ;;  %14150 = vmatprep.mubr.msk.f32.mxu0 %vm14888_vm3, %v14887_v21 }
 0xb06   : > { %14148 = vmatprep.subr.mxu0 %v14887_v21 }
 0xb07   : > { %14149 = vmatpush3.msra.mxu0 %v6224_v63  ;;  %v3527_v40 = vpop.permute.xlu0 %3526 }
 0xb08   : > { %3546 = vst.msk [vmem:[#allocation2 + $0x28] sm:$0xff] %vm3540_vm6, %v3527_v40 }
 0xb0b   : > { %v4924_v61 = vpop.permute.xlu0 %4923 }
 0xb0c   : > { %4943 = vst.msk [vmem:[#allocation2 + $0x28] sm:$0xff] %vm4937_vm7, %v4924_v61 }
 0xb0f   : > { %v3531_v32 = vpop.permute.xlu0 %3530 }
 0xb10   : > { %3548 = vst.msk [vmem:[#allocation2 + $0x38] sm:$0xff] %vm3540_vm6, %v3531_v32 }
 0xb13   : > { %v4928_v59 = vpop.permute.xlu0 %4927 }
 0xb14   : > { %4945 = vst.msk [vmem:[#allocation2 + $0x38] sm:$0xff] %vm4937_vm7, %v4928_v59 }
 0xb2c   : > { %v5653_v2 = vpop.xlane.xlu1 %5652 }
 0xb2d   : > { %14684 = vrcp.f32 %v5653_v2  ;;  %v6493_v2 = vld [vmem:[%s17622_s3 + $0x30] sm:$0xff] }
 0xb30   : > { %v6145_v8 = vpop.permute.xlu1 %6144 }
 0xb31   : > { %14142 = vmatpush3.msra.mxu1 %v6145_v8 }
 0xb32   : > { %14144 = vmatmul.mubr.msk.f32.vlgmr.msra.gmra.mxu1 %vm1407_vm5, %v5668_v9 }
 0xb34   : > { %v3517_v18 = vpop.permute.xlu1 %3516 }
 0xb35   : > { %3541 = vst.msk [vmem:[#allocation2] sm:$0xff] %vm3540_vm6, %v3517_v18 }
 0xb38   : > { %v4914_v22 = vpop.permute.xlu1 %4913 }
 0xb39   : > { %4938 = vst.msk [vmem:[#allocation2] sm:$0xff] %vm4937_vm7, %v4914_v22 }
 0xb3a   : > { %v14685_v16 = vpop.eup %14684 }
 0xb3b   : > { %v5669_v41 = vmul.f32 %v14685_v16, %v16164_v15 }
 0xb3c   : > { %v3521_v12 = vpop.permute.xlu1 %3520 }
 0xb3d   : > { %3543 = vst.msk [vmem:[#allocation2 + $0x10] sm:$0xff] %vm3540_vm6, %v3521_v12  ;;  %14151 = vmatmul.mubr.msk.f32.vlgmr.msra.gmra.mxu0 %vm1407_vm5, %v5669_v41 }
 0xb40   : > { %v4918_v13 = vpop.permute.xlu1 %4917 }
 0xb41   : > { %4940 = vst.msk [vmem:[#allocation2 + $0x10] sm:$0xff] %vm4937_vm7, %v4918_v13 }
 0xb44   : > { %v3525_v20 = vpop.permute.xlu1 %3524 }
 0xb45   : > { %3545 = vst.msk [vmem:[#allocation2 + $0x20] sm:$0xff] %vm3540_vm6, %v3525_v20 }
 0xb48   : > { %v4922_v26 = vpop.permute.xlu1 %4921 }
 0xb49   : > { %4942 = vst.msk [vmem:[#allocation2 + $0x20] sm:$0xff] %vm4937_vm7, %v4922_v26 }
 0xb4c   : > { %v3529_v30 = vpop.permute.xlu1 %3528 }
 0xb4d   : > { %3547 = vst.msk [vmem:[#allocation2 + $0x30] sm:$0xff] %vm3540_vm6, %v3529_v30 }
 0xb50   : > { %v4926_v25 = vpop.permute.xlu1 %4925 }
 0xb51   : > { %4944 = vst.msk [vmem:[#allocation2 + $0x30] sm:$0xff] %vm4937_vm7, %v4926_v25 }
 0xba4   : > { %v5745_v31 = vpop.f32.mrf.mxu1 }
 0xba5   : > { %6310 = vrot.lane.b32.xlu1 %v5745_v31, %s14898_s8 }
 0xba6   : > { %v14103_v47 = vpop.f32.mrf.mxu1 }
 0xbb4   : > { %v5824_v55 = vpop.f32.mrf.mxu0 }
 0xbb5   : > { %6312 = vrot.lane.b32.xlu0 %v5824_v55, %s14898_s8 }
 0xbb6   : > { %v14110_v37 = vpop.f32.mrf.mxu0 }
 0xbb8   : > { %v5903_v10 = vpop.f32.mrf.mxu1 }
 0xbb9   : > { %6314 = vrot.lane.b32.xlu1 %v5903_v10, %s14898_s8 }
 0xbba   : > { %v14117_v28 = vpop.f32.mrf.mxu1 }
 0xbbc   : > { %v6061_v46 = vpop.f32.mrf.mxu1 }
 0xbbd   : > { %v5982_v23 = vpop.f32.mrf.mxu0  ;;  %6318 = vrot.lane.b32.xlu1 %v6061_v46, %s14898_s8 }
 0xbbe   : > { %6316 = vrot.lane.b32.xlu0 %v5982_v23, %s14898_s8  ;;  %v14131_v15 = vpop.f32.mrf.mxu1 }
 0xbbf   : > { %v14124_v24 = vpop.f32.mrf.mxu0 }
 0xbc4   : > { %v6140_v38 = vpop.f32.mrf.mxu0 }
 0xbc5   : > { %6320 = vrot.lane.b32.xlu0 %v6140_v38, %s14898_s8 }
 0xbc6   : > { %v14138_v27 = vpop.f32.mrf.mxu0 }
 0xbf2   : > { %v6219_v62 = vpop.f32.mrf.mxu1 }
 0xbf3   : > { %6322 = vrot.lane.b32.xlu1 %v6219_v62, %s14898_s8 }
 0xbf4   : > { %v14145_v57 = vpop.f32.mrf.mxu1 }
 0xbfd   : > { %v6298_v51 = vpop.f32.mrf.mxu0 }
 0xbfe   : > { %6324 = vrot.lane.b32.xlu0 %v6298_v51, %s14898_s8 }
 0xbff   : > { %v14152_v56 = vpop.f32.mrf.mxu0 }
 0xc17   : > { %v6311_v29 = vpop.permute.xlu1 %6310 }
 0xc18   : > { %6335 = vst.msk [vmem:[#allocation2] sm:$0xff] %vm6334_vm8, %v6311_v29 }
 0xc1f   : > { %v6343_v54 = vld [vmem:[#allocation2] sm:$0xff] }
 0xc20   : > { %v6351_v58 = vadd.f32 %v6343_v54, %v15061_v6 }
 0xc22   : > { %v6361_v33 = vsel %vm458_vm2, %v6351_v58, 0.0 }
 0xc23   : > { %6362 = vadd.xlane.f32.xlu1 %v6361_v33 }
 0xc27   : > { %v6313_v4 = vpop.permute.xlu0 %6312 }
 0xc28   : > { %6336 = vst.msk [vmem:[#allocation2 + $0x8] sm:$0xff] %vm6334_vm8, %v6313_v4 }
 0xc2b   : > { %v6315_v39 = vpop.permute.xlu1 %6314 }
 0xc2c   : > { %6337 = vst.msk [vmem:[#allocation2 + $0x10] sm:$0xff] %vm6334_vm8, %v6315_v39 }
 0xc2f   : > { %v6319_v36 = vpop.permute.xlu1 %6318  ;;  %v6344_v42 = vld [vmem:[#allocation2 + $0x8] sm:$0xff] }
 0xc30   : > { %6339 = vst.msk [vmem:[#allocation2 + $0x20] sm:$0xff] %vm6334_vm8, %v6319_v36  ;;  %v6317_v60 = vpop.permute.xlu0 %6316  ;;  %v6352_v48 = vadd.f32 %v6344_v42, %v15061_v6 }
 0xc31   : > { %6338 = vst.msk [vmem:[#allocation2 + $0x18] sm:$0xff] %vm6334_vm8, %v6317_v60 }
 0xc32   : > { %v6364_v52 = vsel %vm458_vm2, %v6352_v48, 0.0 }
 0xc33   : > { %6365 = vadd.xlane.f32.xlu0 %v6364_v52  ;;  %v6345_v43 = vld [vmem:[#allocation2 + $0x10] sm:$0xff] }
 0xc34   : > { %v6353_v44 = vadd.f32 %v6345_v43, %v15061_v6 }
 0xc36   : > { %v6367_v45 = vsel %vm458_vm2, %v6353_v44, 0.0 }
 0xc37   : > { %v6321_v63 = vpop.permute.xlu0 %6320  ;;  %6368 = vadd.xlane.f32.xlu0 %v6367_v45  ;;  %v6347_v1 = vld [vmem:[#allocation2 + $0x20] sm:$0xff] }
 0xc38   : > { %6340 = vst.msk [vmem:[#allocation2 + $0x28] sm:$0xff] %vm6334_vm8, %v6321_v63  ;;  %v6346_v14 = vld [vmem:[#allocation2 + $0x18] sm:$0xff]  ;;  %v6355_v5 = vadd.f32 %v6347_v1, %v15061_v6  ;;  %v6490_v45 = vld [vmem:[%s17622_s3] sm:$0xff]  ;;  %v6491_v63 = vld [vmem:[%s17622_s3 + $0x10] sm:$0xff] }
 0xc39   : > { %v6354_v3 = vadd.f32 %v6346_v14, %v15061_v6 }
 0xc3a   : > { %v6373_v19 = vsel %vm458_vm2, %v6355_v5, 0.0 }
 0xc3b   : > { %v6370_v7 = vsel %vm458_vm2, %v6354_v3, 0.0  ;;  %6374 = vadd.xlane.f32.xlu0 %v6373_v19  ;;  %v16336_v19 = vld [vmem:[%s17623_s4 + $0x5] ss:$0 sm:$0xff] }
 0xc3c   : > { %6371 = vadd.xlane.f32.xlu1 %v6370_v7 }
 0xc3f   : > { %v6348_v11 = vld [vmem:[#allocation2 + $0x28] sm:$0xff] }
 0xc40   : > { %v6356_v50 = vadd.f32 %v6348_v11, %v15061_v6  ;;  %v16341_v11 = vld [vmem:[%s17623_s4 + $0x6] ss:$0 sm:$0xff] }
 0xc42   : > { %v6376_v34 = vsel %vm458_vm2, %v6356_v50, 0.0 }
 0xc43   : > { %6377 = vadd.xlane.f32.xlu1 %v6376_v34 }
 0xc65   : > { %v6323_v53 = vpop.permute.xlu1 %6322 }
 0xc66   : > { %6341 = vst.msk [vmem:[#allocation2 + $0x30] sm:$0xff] %vm6334_vm8, %v6323_v53 }
 0xc6d   : > { %v6349_v49 = vld [vmem:[#allocation2 + $0x30] sm:$0xff] }
 0xc6e   : > { %v6357_v0 = vadd.f32 %v6349_v49, %v15061_v6 }
 0xc70   : > { %v6325_v35 = vpop.permute.xlu0 %6324  ;;  %v6379_v40 = vsel %vm458_vm2, %v6357_v0, 0.0 }
 0xc71   : > { %6342 = vst.msk [vmem:[#allocation2 + $0x38] sm:$0xff] %vm6334_vm8, %v6325_v35  ;;  %6380 = vadd.xlane.f32.xlu0 %v6379_v40 }
 0xc78   : > { %v6350_v61 = vld [vmem:[#allocation2 + $0x38] sm:$0xff] }
 0xc79   : > { %v6358_v32 = vadd.f32 %v6350_v61, %v15061_v6 }
 0xc7b   : > { %v6382_v59 = vsel %vm458_vm2, %v6358_v32, 0.0 }
 0xc7c   : > { %6383 = vadd.xlane.f32.xlu1 %v6382_v59 }
 0xc87   : > { %6509 = vrot.lane.b32.xlu0 %v6493_v2, %s14889_s23 }
 0xc8d   : > { %6507 = vrot.lane.b32.xlu1 %v6492_v17, %s14889_s23 }
 0xcac   : > { %v6363_v8 = vpop.xlane.xlu1 %6362 }
 0xcad   : > { %v6386_v9 = vmul.f32 0.03125, %v6363_v8 }
 0xcaf   : > { %v6394_v18 = vsub.f32 %v6351_v58, %v6386_v9 }
 0xcb1   : > { %v6402_v22 = vmul.f32 %v6394_v18, %v6394_v18 }
 0xcb3   : > { %v6410_v6 = vsel %vm458_vm2, %v6402_v22, 0.0 }
 0xcb4   : > { %6411 = vadd.xlane.f32.xlu0 %v6410_v6 }
 0xcbc   : > { %v6366_v16 = vpop.xlane.xlu0 %6365 }
 0xcbd   : > { %v6387_v41 = vmul.f32 0.03125, %v6366_v16 }
 0xcbf   : > { %v16290_v12 = vsub.f32 %v6352_v48, %v6387_v41 }
 0xcc0   : > { %v6369_v13 = vpop.xlane.xlu0 %6368 }
 0xcc1   : > { %v6388_v20 = vmul.f32 0.03125, %v6369_v13  ;;  %v6403_v26 = vmul.f32 %v16290_v12, %v16290_v12 }
 0xcc3   : > { %v16294_v30 = vsub.f32 %v6353_v44, %v6388_v20  ;;  %v6413_v25 = vsel %vm458_vm2, %v6403_v26, 0.0 }
 0xcc4   : > { %6414 = vadd.xlane.f32.xlu1 %v6413_v25  ;;  %v6375_v31 = vpop.xlane.xlu0 %6374 }
 0xcc5   : > { %v6372_v47 = vpop.xlane.xlu1 %6371  ;;  %v6390_v55 = vmul.f32 0.03125, %v6375_v31  ;;  %v6404_v37 = vmul.f32 %v16294_v30, %v16294_v30 }
 0xcc6   : > { %v6389_v10 = vmul.f32 0.03125, %v6372_v47 }
 0xcc7   : > { %v16299_v28 = vsub.f32 %v6355_v5, %v6390_v55  ;;  %v6416_v46 = vsel %vm458_vm2, %v6404_v37, 0.0 }
 0xcc8   : > { %v16302_v23 = vsub.f32 %v6354_v3, %v6389_v10  ;;  %6417 = vadd.xlane.f32.xlu0 %v6416_v46 }
 0xcc9   : > { %v6406_v15 = vmul.f32 %v16299_v28, %v16299_v28 }
 0xcca   : > { %v6405_v24 = vmul.f32 %v16302_v23, %v16302_v23 }
 0xccb   : > { %v6422_v38 = vsel %vm458_vm2, %v6406_v15, 0.0 }
 0xccc   : > { %v6378_v27 = vpop.xlane.xlu1 %6377  ;;  %v6419_v62 = vsel %vm458_vm2, %v6405_v24, 0.0  ;;  %6423 = vadd.xlane.f32.xlu0 %v6422_v38 }
 0xccd   : > { %v6391_v57 = vmul.f32 0.03125, %v6378_v27  ;;  %6420 = vadd.xlane.f32.xlu1 %v6419_v62 }
 0xccf   : > { %v16310_v51 = vsub.f32 %v6356_v50, %v6391_v57 }
 0xcd1   : > { %v6407_v56 = vmul.f32 %v16310_v51, %v16310_v51 }
 0xcd3   : > { %v6425_v29 = vsel %vm458_vm2, %v6407_v56, 0.0 }
 0xcd4   : > { %6426 = vadd.xlane.f32.xlu1 %v6425_v29 }
 0xcfa   : > { %v6381_v54 = vpop.xlane.xlu0 %6380 }
 0xcfb   : > { %v6392_v58 = vmul.f32 0.03125, %v6381_v54 }
 0xcfd   : > { %v16315_v33 = vsub.f32 %v6357_v0, %v6392_v58 }
 0xcfe   : > { %v6510_v4 = vpop.permute.xlu0 %6509 }
 0xcff   : > { %v6408_v39 = vmul.f32 %v16315_v33, %v16315_v33  ;;  %14153 = vmatprep.subr.mxu1 %v6510_v4 }
 0xd00   : > { %14154 = vmatpush3.msra.mxu1 %v6510_v4 }
 0xd01   : > { %v6428_v36 = vsel %vm458_vm2, %v6408_v39, 0.0 }
 0xd02   : > { %6429 = vadd.xlane.f32.xlu0 %v6428_v36 }
 0xd05   : > { %v6384_v42 = vpop.xlane.xlu1 %6383 }
 0xd06   : > { %v6393_v60 = vmul.f32 0.03125, %v6384_v42 }
 0xd08   : > { %v16320_v48 = vsub.f32 %v6358_v32, %v6393_v60 }
 0xd09   : > { %v6508_v52 = vpop.permute.xlu1 %6507 }
 0xd0a   : > { %v6409_v43 = vmul.f32 %v16320_v48, %v16320_v48  ;;  %14155 = vmatprep.subr.mxu1 %v6508_v52 }
 0xd0b   : > { %14156 = vmatpush3.msra.mxu1 %v6508_v52 }
 0xd0c   : > { %v6431_v44 = vsel %vm458_vm2, %v6409_v43, 0.0 }
 0xd0d   : > { %6432 = vadd.xlane.f32.xlu1 %v6431_v44 }
 0xd18   : > { %6503 = vrot.lane.b32.xlu0 %v6490_v45, %s14889_s23  ;;  %v13105_v45 = vld [vmem:[%s17623_s4 + $0x4] ss:$0 sm:$0xff] }
 0xd1e   : > { %6505 = vrot.lane.b32.xlu1 %v6491_v63, %s14889_s23 }
 0xd3d   : > { %v6412_v1 = vpop.xlane.xlu0 %6411 }
 0xd3e   : > { %v6434_v14 = vmul.f32 0.03125, %v6412_v1 }
 0xd40   : > { %v6442_v5 = vadd.f32 1e-05, %v6434_v14 }
 0xd42   : > { %14686 = vrsqrt.f32 %v6442_v5 }
 0xd4d   : > { %v6415_v49 = vpop.xlane.xlu1 %6414 }
 0xd4e   : > { %v6435_v0 = vmul.f32 0.03125, %v6415_v49 }
 0xd4f   : > { %v14687_v3 = vpop.eup %14686 }
 0xd50   : > { %v6458_v7 = vmul.f32 %v14687_v3, %v6394_v18  ;;  %v6443_v32 = vadd.f32 1e-05, %v6435_v0 }
 0xd51   : > { %v6418_v53 = vpop.xlane.xlu0 %6417 }
 0xd52   : > { %v6470_v50 = vmul.f32 %v16336_v19, %v6458_v7  ;;  %v6436_v35 = vmul.f32 0.03125, %v6418_v53  ;;  %14688 = vrsqrt.f32 %v6443_v32 }
 0xd54   : > { %v16345_v34 = vadd.f32 %v16341_v11, %v6470_v50  ;;  %v6444_v2 = vadd.f32 1e-05, %v6436_v35 }
 0xd55   : > { %v6424_v61 = vpop.xlane.xlu0 %6423 }
 0xd56   : > { %14161 = vmatprep.mubr.msk.f32.mxu1 %vm458_vm2, %v16345_v34  ;;  %v6421_v40 = vpop.xlane.xlu1 %6420  ;;  %v6438_v17 = vmul.f32 0.03125, %v6424_v61  ;;  %14690 = vrsqrt.f32 %v6444_v2 }
 0xd57   : > { %v6437_v59 = vmul.f32 0.03125, %v6421_v40 }
 0xd58   : > { %v6446_v22 = vadd.f32 1e-05, %v6438_v17 }
 0xd59   : > { %v6445_v9 = vadd.f32 1e-05, %v6437_v59 }
 0xd5b   : > { %14692 = vrsqrt.f32 %v6445_v9 }
 0xd5c   : > { %14694 = vrsqrt.f32 %v6446_v22 }
 0xd5d   : > { %v6427_v8 = vpop.xlane.xlu1 %6426 }
 0xd5e   : > { %v6439_v18 = vmul.f32 0.03125, %v6427_v8 }
 0xd5f   : > { %v14689_v20 = vpop.eup %14688 }
 0xd60   : > { %v6447_v6 = vadd.f32 1e-05, %v6439_v18  ;;  %v6459_v25 = vmul.f32 %v14689_v20, %v16290_v12 }
 0xd62   : > { %14696 = vrsqrt.f32 %v6447_v6  ;;  %v6471_v15 = vmul.f32 %v16336_v19, %v6459_v25 }
 0xd63   : > { %v14691_v26 = vpop.eup %14690 }
 0xd64   : > { %v6460_v55 = vmul.f32 %v14691_v26, %v16294_v30  ;;  %v6483_v30 = vadd.f32 %v16341_v11, %v6471_v15 }
 0xd66   : > { %v6472_v57 = vmul.f32 %v16336_v19, %v6460_v55 }
 0xd68   : > { %v14693_v31 = vpop.eup %14692 }
 0xd69   : > { %v14695_v37 = vpop.eup %14694  ;;  %v6461_v24 = vmul.f32 %v14693_v31, %v16302_v23  ;;  %v6484_v23 = vadd.f32 %v16341_v11, %v6472_v57 }
 0xd6a   : > { %v6462_v56 = vmul.f32 %v14695_v37, %v16299_v28 }
 0xd6b   : > { %v6473_v29 = vmul.f32 %v16336_v19, %v6461_v24 }
 0xd6c   : > { %v6474_v58 = vmul.f32 %v16336_v19, %v6462_v56 }
 0xd6d   : > { %v6485_v28 = vadd.f32 %v16341_v11, %v6473_v29 }
 0xd6e   : > { %v6486_v36 = vadd.f32 %v16341_v11, %v6474_v58 }
 0xd6f   : > { %v14697_v38 = vpop.eup %14696 }
 0xd70   : > { %v6463_v54 = vmul.f32 %v14697_v38, %v16310_v51 }
 0xd72   : > { %v6475_v39 = vmul.f32 %v16336_v19, %v6463_v54 }
 0xd8b   : > { %v6430_v16 = vpop.xlane.xlu0 %6429 }
 0xd8c   : > { %v6440_v41 = vmul.f32 0.03125, %v6430_v16 }
 0xd8e   : > { %v6448_v13 = vadd.f32 1e-05, %v6440_v41 }
 0xd8f   : > { %v6504_v62 = vpop.permute.xlu0 %6503 }
 0xd90   : > { %14698 = vrsqrt.f32 %v6448_v13 }
 0xd96   : > { %v6433_v47 = vpop.xlane.xlu1 %6432 }
 0xd97   : > { %v6441_v10 = vmul.f32 0.03125, %v6433_v47 }
 0xd99   : > { %v6449_v46 = vadd.f32 1e-05, %v6441_v10 }
 0xd9a   : > { %v6506_v27 = vpop.permute.xlu1 %6505 }
 0xd9b   : > { %14700 = vrsqrt.f32 %v6449_v46  ;;  %14157 = vmatprep.subr.mxu1 %v6506_v27 }
 0xd9c   : > { %14158 = vmatpush3.msra.mxu1 %v6506_v27 }
 0xd9d   : > { %v14699_v12 = vpop.eup %14698  ;;  %14159 = vmatprep.subr.mxu1 %v6504_v62 }
 0xd9e   : > { %14160 = vmatpush3.msra.mxu1 %v6504_v62  ;;  %v6464_v4 = vmul.f32 %v14699_v12, %v16315_v33  ;;  %v6487_v33 = vadd.f32 %v16341_v11, %v6475_v39 }
 0xd9f   : > { %14162 = vmatmul.mubr.msk.f32.vlgmr.msra.gmra.mxu1 %vm458_vm2, %v6483_v30  ;;  %14193 = vmatprep.subr.mxu1 %v14887_v21 }
 0xda0   : > { %14164 = vmatprep.mubr.msk.f32.mxu1 %vm458_vm2, %v6484_v23  ;;  %v6476_v51 = vmul.f32 %v16336_v19, %v6464_v4 }
 0xda2   : > { %v6488_v42 = vadd.f32 %v16341_v11, %v6476_v51 }
 0xda3   : > { %14165 = vmatmul.mubr.msk.f32.gmra.mxu1 %vm458_vm2, %v6485_v28 }
 0xda4   : > { %14167 = vmatprep.mubr.msk.f32.mxu1 %vm458_vm2, %v6486_v36 }
 0xda7   : > { %14168 = vmatmul.mubr.msk.f32.gmra.mxu1 %vm458_vm2, %v6487_v33 }
 0xda8   : > { %v14701_v60 = vpop.eup %14700  ;;  %14170 = vmatprep.mubr.msk.f32.mxu1 %vm458_vm2, %v6488_v42 }
 0xda9   : > { %v6465_v52 = vmul.f32 %v14701_v60, %v16320_v48 }
 0xdab   : > { %v6477_v43 = vmul.f32 %v16336_v19, %v6465_v52 }
 0xdad   : > { %v6489_v44 = vadd.f32 %v16341_v11, %v6477_v43 }
 0xdaf   : > { %14171 = vmatmul.mubr.msk.f32.gmra.mxu1 %vm458_vm2, %v6489_v44 }
 0xdb0   : > { %14195 = vmatprep.mubr.msk.f32.mxu1 %vm14888_vm3, %v14887_v21 }
 0xe5f   : > { %v14163_v63 = vpop.f32.mrf.mxu1 }
 0xe60   : > { %v6611_v1 = vadd.f32 %v14163_v63, %v13105_v45 }
 0xe61   : > { %v6605_v14 = vpop.f32.mrf.mxu1 }
 0xe62   : > { %v6645_v5 = vmax.f32 %v6611_v1, 0.0  ;;  %v6606_v3 = vadd.f32 %v13105_v45, %v6605_v14 }
 0xe63   : > { %v14166_v7 = vpop.f32.mrf.mxu1 }
 0xe64   : > { %v6653_v48 = vadd.f32 %v6645_v5, %v6483_v30  ;;  %v6644_v50 = vmax.f32 %v6606_v3, 0.0  ;;  %v6621_v19 = vadd.f32 %v14166_v7, %v13105_v45 }
 0xe65   : > { %v6615_v53 = vpop.f32.mrf.mxu1 }
 0xe66   : > { %v6652_v11 = vadd.f32 %v6644_v50, %v16345_v34  ;;  %v6647_v49 = vmax.f32 %v6621_v19, 0.0  ;;  %v6616_v0 = vadd.f32 %v13105_v45, %v6615_v53  ;;  %v6665_v35 = vsel %vm458_vm2, %v6653_v48, 0.0 }
 0xe67   : > { %6666 = vadd.xlane.f32.xlu0 %v6665_v35  ;;  %v14169_v40 = vpop.f32.mrf.mxu1 }
 0xe68   : > { %v6655_v61 = vadd.f32 %v6647_v49, %v6485_v28  ;;  %v6646_v32 = vmax.f32 %v6616_v0, 0.0  ;;  %v6631_v59 = vadd.f32 %v14169_v40, %v13105_v45  ;;  %v6662_v2 = vsel %vm458_vm2, %v6652_v11, 0.0 }
 0xe69   : > { %v6625_v17 = vpop.f32.mrf.mxu1  ;;  %6663 = vadd.xlane.f32.xlu1 %v6662_v2  ;;  %v6792_v2 = vld [vmem:[%s17622_s3 + $0x28] sm:$0xff] }
 0xe6a   : > { %v6654_v8 = vadd.f32 %v6646_v32, %v6484_v23  ;;  %v6649_v9 = vmax.f32 %v6631_v59, 0.0  ;;  %v6626_v18 = vadd.f32 %v13105_v45, %v6625_v17  ;;  %v6671_v16 = vsel %vm458_vm2, %v6655_v61, 0.0  ;;  %v6793_v59 = vld [vmem:[%s17622_s3 + $0x38] sm:$0xff] }
 0xe6b   : > { %14173 = vmatprep.subr.mxu0 %v6793_v59  ;;  %v6791_v17 = vld [vmem:[%s17622_s3 + $0x18] sm:$0xff] }
 0xe6c   : > { %v6657_v22 = vadd.f32 %v6649_v9, %v6487_v33  ;;  %v6648_v6 = vmax.f32 %v6626_v18, 0.0  ;;  %v6668_v34 = vsel %vm458_vm2, %v6654_v8, 0.0  ;;  %14174 = vmatpush3.msra.mxu0 %v6793_v59  ;;  %v13125_v9 = vld [vmem:[%s17623_s4 + $0xa] ss:$0 sm:$0xff] }
 0xe6d   : > { %6669 = vadd.xlane.f32.xlu0 %v6668_v34  ;;  %6672 = vadd.xlane.f32.xlu1 %v6671_v16 }
 0xe6e   : > { %v6656_v41 = vadd.f32 %v6648_v6, %v6486_v36  ;;  %v6677_v25 = vsel %vm458_vm2, %v6657_v22, 0.0  ;;  %14175 = vmatprep.subr.mxu0 %v6792_v2 }
 0xe6f   : > { %v14172_v13 = vpop.f32.mrf.mxu1  ;;  %14176 = vmatpush3.msra.mxu0 %v6792_v2 }
 0xe70   : > { %v6641_v20 = vadd.f32 %v14172_v13, %v13105_v45  ;;  %v6674_v26 = vsel %vm458_vm2, %v6656_v41, 0.0  ;;  %14177 = vmatprep.subr.mxu0 %v6791_v17 }
 0xe71   : > { %v6635_v31 = vpop.f32.mrf.mxu1  ;;  %6675 = vadd.xlane.f32.xlu0 %v6674_v26  ;;  %6678 = vadd.xlane.f32.xlu1 %v6677_v25 }
 0xe72   : > { %v6651_v47 = vmax.f32 %v6641_v20, 0.0  ;;  %v6636_v55 = vadd.f32 %v13105_v45, %v6635_v31  ;;  %14178 = vmatpush3.msra.mxu0 %v6791_v17 }
 0xe74   : > { %v6659_v37 = vadd.f32 %v6651_v47, %v6489_v44  ;;  %v6650_v10 = vmax.f32 %v6636_v55, 0.0 }
 0xe76   : > { %v6658_v46 = vadd.f32 %v6650_v10, %v6488_v42  ;;  %v6683_v15 = vsel %vm458_vm2, %v6659_v37, 0.0 }
 0xe77   : > { %6684 = vadd.xlane.f32.xlu1 %v6683_v15 }
 0xe78   : > { %v6680_v24 = vsel %vm458_vm2, %v6658_v46, 0.0 }
 0xe79   : > { %6681 = vadd.xlane.f32.xlu0 %v6680_v24 }
 0xef0   : > { %v6667_v38 = vpop.xlane.xlu0 %6666 }
 0xef1   : > { %v6687_v27 = vmul.f32 0.03125, %v6667_v38 }
 0xef2   : > { %v6664_v62 = vpop.xlane.xlu1 %6663 }
 0xef3   : > { %v16392_v57 = vsub.f32 %v6653_v48, %v6687_v27  ;;  %v6686_v56 = vmul.f32 0.03125, %v6664_v62 }
 0xef5   : > { %v16394_v12 = vsub.f32 %v6652_v11, %v6686_v56  ;;  %v6703_v30 = vmul.f32 %v16392_v57, %v16392_v57 }
 0xef6   : > { %v6670_v29 = vpop.xlane.xlu0 %6669  ;;  %v6673_v54 = vpop.xlane.xlu1 %6672 }
 0xef7   : > { %v6688_v23 = vmul.f32 0.03125, %v6670_v29  ;;  %v6689_v58 = vmul.f32 0.03125, %v6673_v54  ;;  %v6713_v4 = vsel %vm458_vm2, %v6703_v30, 0.0  ;;  %v6702_v28 = vmul.f32 %v16394_v12, %v16394_v12  ;;  %v13114_v54 = vld [vmem:[%s17623_s4 + $0x7] ss:$0 sm:$0xff] }
 0xef8   : > { %6714 = vadd.xlane.f32.xlu1 %v6713_v4 }
 0xef9   : > { %v16401_v39 = vsub.f32 %v6654_v8, %v6688_v23  ;;  %v16403_v36 = vsub.f32 %v6655_v61, %v6689_v58  ;;  %v6710_v51 = vsel %vm458_vm2, %v6702_v28, 0.0  ;;  %v6790_v8 = vld [vmem:[%s17622_s3 + $0x8] sm:$0xff] }
 0xefa   : > { %v6676_v33 = vpop.xlane.xlu0 %6675  ;;  %6711 = vadd.xlane.f32.xlu0 %v6710_v51  ;;  %v6679_v42 = vpop.xlane.xlu1 %6678  ;;  %14179 = vmatprep.subr.mxu0 %v6790_v8 }
 0xefb   : > { %v6690_v60 = vmul.f32 0.03125, %v6676_v33  ;;  %v6691_v52 = vmul.f32 0.03125, %v6679_v42  ;;  %v6704_v43 = vmul.f32 %v16401_v39, %v16401_v39  ;;  %v6705_v44 = vmul.f32 %v16403_v36, %v16403_v36  ;;  %14180 = vmatpush3.msra.mxu0 %v6790_v8  ;;  %v13115_v33 = vld [vmem:[%s17623_s4 + $0x8] ss:$0 sm:$0xff] }
 0xefc   : > { %14198 = vmatprep.subr.mxu0 %v14887_v21 }
 0xefd   : > { %v16410_v45 = vsub.f32 %v6656_v41, %v6690_v60  ;;  %v16412_v63 = vsub.f32 %v6657_v22, %v6691_v52  ;;  %v6716_v1 = vsel %vm458_vm2, %v6704_v43, 0.0  ;;  %v6719_v14 = vsel %vm458_vm2, %v6705_v44, 0.0 }
 0xefe   : > { %6717 = vadd.xlane.f32.xlu0 %v6716_v1  ;;  %6720 = vadd.xlane.f32.xlu1 %v6719_v14 }
 0xeff   : > { %v6706_v5 = vmul.f32 %v16410_v45, %v16410_v45  ;;  %v6707_v3 = vmul.f32 %v16412_v63, %v16412_v63 }
 0xf00   : > { %v6685_v7 = vpop.xlane.xlu1 %6684 }
 0xf01   : > { %v6693_v48 = vmul.f32 0.03125, %v6685_v7  ;;  %v6722_v50 = vsel %vm458_vm2, %v6706_v5, 0.0  ;;  %v6725_v19 = vsel %vm458_vm2, %v6707_v3, 0.0 }
 0xf02   : > { %v6682_v53 = vpop.xlane.xlu0 %6681  ;;  %6723 = vadd.xlane.f32.xlu0 %v6722_v50  ;;  %6726 = vadd.xlane.f32.xlu1 %v6725_v19 }
 0xf03   : > { %v16422_v11 = vsub.f32 %v6659_v37, %v6693_v48  ;;  %v6692_v49 = vmul.f32 0.03125, %v6682_v53 }
 0xf05   : > { %v16424_v0 = vsub.f32 %v6658_v46, %v6692_v49  ;;  %v6709_v35 = vmul.f32 %v16422_v11, %v16422_v11 }
 0xf07   : > { %v6731_v40 = vsel %vm458_vm2, %v6709_v35, 0.0  ;;  %v6708_v61 = vmul.f32 %v16424_v0, %v16424_v0 }
 0xf08   : > { %6732 = vadd.xlane.f32.xlu1 %v6731_v40 }
 0xf09   : > { %v6728_v32 = vsel %vm458_vm2, %v6708_v61, 0.0 }
 0xf0a   : > { %6729 = vadd.xlane.f32.xlu0 %v6728_v32 }
 0xf20   : > { %6942 = vrot.lane.b32.xlu0 %v13125_v9, %s14889_s23 }
 0xf81   : > { %v6715_v18 = vpop.xlane.xlu1 %6714 }
 0xf82   : > { %v6735_v22 = vmul.f32 0.03125, %v6715_v18 }
 0xf83   : > { %v6712_v6 = vpop.xlane.xlu0 %6711 }
 0xf84   : > { %v6743_v34 = vadd.f32 1e-05, %v6735_v22  ;;  %v6734_v16 = vmul.f32 0.03125, %v6712_v6 }
 0xf86   : > { %14702 = vrsqrt.f32 %v6743_v34  ;;  %v6742_v41 = vadd.f32 1e-05, %v6734_v16 }
 0xf87   : > { %v6718_v13 = vpop.xlane.xlu0 %6717  ;;  %v6721_v20 = vpop.xlane.xlu1 %6720 }
 0xf88   : > { %14704 = vrsqrt.f32 %v6742_v41  ;;  %v6736_v26 = vmul.f32 0.03125, %v6718_v13  ;;  %v6737_v25 = vmul.f32 0.03125, %v6721_v20 }
 0xf8a   : > { %v6744_v31 = vadd.f32 1e-05, %v6736_v26  ;;  %v6745_v47 = vadd.f32 1e-05, %v6737_v25 }
 0xf8b   : > { %v6724_v55 = vpop.xlane.xlu0 %6723  ;;  %v6727_v37 = vpop.xlane.xlu1 %6726 }
 0xf8c   : > { %14706 = vrsqrt.f32 %v6744_v31  ;;  %v6738_v10 = vmul.f32 0.03125, %v6724_v55  ;;  %v6739_v46 = vmul.f32 0.03125, %v6727_v37  ;;  %v13124_v37 = vld [vmem:[%s17623_s4 + $0x9] ss:$0 sm:$0xff] }
 0xf8d   : > { %14708 = vrsqrt.f32 %v6745_v47 }
 0xf8e   : > { %v6746_v15 = vadd.f32 1e-05, %v6738_v10  ;;  %v6747_v24 = vadd.f32 1e-05, %v6739_v46 }
 0xf90   : > { %14710 = vrsqrt.f32 %v6746_v15 }
 0xf91   : > { %14712 = vrsqrt.f32 %v6747_v24  ;;  %v6733_v38 = vpop.xlane.xlu1 %6732 }
 0xf92   : > { %v6741_v27 = vmul.f32 0.03125, %v6733_v38 }
 0xf93   : > { %v14703_v62 = vpop.eup %14702  ;;  %v6730_v56 = vpop.xlane.xlu0 %6729 }
 0xf94   : > { %v6749_v30 = vadd.f32 1e-05, %v6741_v27  ;;  %v6740_v29 = vmul.f32 0.03125, %v6730_v56  ;;  %v6759_v23 = vmul.f32 %v14703_v62, %v16392_v57 }
 0xf95   : > { %v14705_v58 = vpop.eup %14704 }
 0xf96   : > { %14714 = vrsqrt.f32 %v6749_v30  ;;  %v6748_v4 = vadd.f32 1e-05, %v6740_v29  ;;  %v6758_v28 = vmul.f32 %v14705_v58, %v16394_v12  ;;  %v6771_v51 = vmul.f32 %v13114_v54, %v6759_v23 }
 0xf97   : > { %v6943_v8 = vpop.permute.xlu0 %6942 }
 0xf98   : > { %14716 = vrsqrt.f32 %v6748_v4  ;;  %v6770_v42 = vmul.f32 %v13114_v54, %v6758_v28  ;;  %v6783_v1 = vadd.f32 %v13115_v33, %v6771_v51 }
 0xf99   : > { %v14707_v60 = vpop.eup %14706 }
 0xf9a   : > { %v14709_v52 = vpop.eup %14708  ;;  %v6782_v43 = vadd.f32 %v13115_v33, %v6770_v42  ;;  %v6760_v44 = vmul.f32 %v14707_v60, %v16401_v39 }
 0xf9b   : > { %v6761_v57 = vmul.f32 %v14709_v52, %v16403_v36 }
 0xf9c   : > { %14181 = vmatprep.mubr.msk.f32.mxu0 %vm458_vm2, %v6782_v43  ;;  %v6772_v14 = vmul.f32 %v13114_v54, %v6760_v44 }
 0xf9d   : > { %v14711_v5 = vpop.eup %14710  ;;  %14182 = vmatmul.mubr.msk.f32.vlgmr.msra.gmra.mxu0 %vm458_vm2, %v6783_v1  ;;  %v6773_v12 = vmul.f32 %v13114_v54, %v6761_v57 }
 0xf9e   : > { %v14713_v3 = vpop.eup %14712  ;;  %v6784_v7 = vadd.f32 %v13115_v33, %v6772_v14  ;;  %v6762_v48 = vmul.f32 %v14711_v5, %v16410_v45 }
 0xf9f   : > { %v6785_v50 = vadd.f32 %v13115_v33, %v6773_v12  ;;  %v6763_v19 = vmul.f32 %v14713_v3, %v16412_v63 }
 0xfa0   : > { %14184 = vmatprep.mubr.msk.f32.mxu0 %vm458_vm2, %v6784_v7  ;;  %v6774_v39 = vmul.f32 %v13114_v54, %v6762_v48 }
 0xfa1   : > { %14185 = vmatmul.mubr.msk.f32.gmra.mxu0 %vm458_vm2, %v6785_v50  ;;  %v6775_v36 = vmul.f32 %v13114_v54, %v6763_v19 }
 0xfa2   : > { %v6786_v53 = vadd.f32 %v13115_v33, %v6774_v39 }
 0xfa3   : > { %v14715_v49 = vpop.eup %14714  ;;  %v6787_v35 = vadd.f32 %v13115_v33, %v6775_v36 }
 0xfa4   : > { %14187 = vmatprep.mubr.msk.f32.mxu0 %vm458_vm2, %v6786_v53  ;;  %v6765_v40 = vmul.f32 %v14715_v49, %v16422_v11 }
 0xfa5   : > { %v14717_v61 = vpop.eup %14716  ;;  %14188 = vmatmul.mubr.msk.f32.gmra.mxu0 %vm458_vm2, %v6787_v35 }
 0xfa6   : > { %v6764_v45 = vmul.f32 %v14717_v61, %v16424_v0  ;;  %v6777_v32 = vmul.f32 %v13114_v54, %v6765_v40 }
 0xfa8   : > { %v6776_v63 = vmul.f32 %v13114_v54, %v6764_v45  ;;  %v6789_v2 = vadd.f32 %v13115_v33, %v6777_v32 }
 0xfaa   : > { %v6788_v59 = vadd.f32 %v13115_v33, %v6776_v63 }
 0xfac   : > { %14190 = vmatprep.mubr.msk.f32.mxu0 %vm458_vm2, %v6788_v59 }
 0xfad   : > { %14191 = vmatmul.mubr.msk.f32.gmra.mxu0 %vm458_vm2, %v6789_v2 }
 0xfae   : > { %14200 = vmatprep.mubr.msk.f32.mxu0 %vm14888_vm3, %v14887_v21 }
0x105d   : > { %v16473_v17 = vpop.f32.mrf.mxu0 }
0x105e   : > { %v16487_v22 = vadd.f32 %v16473_v17, %v6943_v8  ;;  %v16542_v24 = vadd.f32 %v16473_v17, %v13124_v37 }
0x105f   : > { %v16475_v11 = vpop.f32.mrf.mxu0 }
0x1060   : > { %v16478_v9 = vadd.f32 %v6943_v8, %v16475_v11  ;;  %v16534_v10 = vadd.f32 %v13124_v37, %v16475_v11 }
0x1061   : > { %v16480_v0 = vpop.f32.mrf.mxu0 }
0x1062   : > { %6971 = vrot.lane.b32.xlu1 %v16478_v9, %s14886_s27  ;;  %v16501_v41 = vadd.f32 %v16480_v0, %v6943_v8  ;;  %v16558_v56 = vadd.f32 %v16480_v0, %v13124_v37 }
0x1063   : > { %v16484_v18 = vpop.f32.mrf.mxu0 }
0x1064   : > { %v16490_v6 = vadd.f32 %v6943_v8, %v16484_v18  ;;  %v16545_v38 = vadd.f32 %v13124_v37, %v16484_v18 }
0x1065   : > { %v16492_v34 = vpop.f32.mrf.mxu0 }
0x1066   : > { %7049 = vrot.lane.b32.xlu1 %v16487_v22, %s14886_s27  ;;  %7127 = vrot.lane.b32.xlu0 %v16490_v6, %s14886_s27  ;;  %v16511_v20 = vadd.f32 %v16492_v34, %v6943_v8  ;;  %v16577_v54 = vadd.f32 %v16492_v34, %v13124_v37 }
0x1067   : > { %v16498_v16 = vpop.f32.mrf.mxu0 }
0x1068   : > { %v16504_v13 = vadd.f32 %v6943_v8, %v16498_v16  ;;  %v16561_v30 = vadd.f32 %v13124_v37, %v16498_v16 }
0x106a   : > { %7205 = vrot.lane.b32.xlu1 %v16501_v41, %s14886_s27  ;;  %7283 = vrot.lane.b32.xlu0 %v16504_v13, %s14886_s27 }
0x106d   : > { %v16513_v26 = vpop.f32.mrf.mxu0 }
0x106e   : > { %7361 = vrot.lane.b32.xlu1 %v16511_v20, %s14886_s27  ;;  %v16520_v31 = vadd.f32 %v16513_v26, %v6943_v8  ;;  %v16587_v4 = vadd.f32 %v16513_v26, %v13124_v37 }
0x106f   : > { %v16517_v25 = vpop.f32.mrf.mxu0 }
0x1070   : > { %v16523_v47 = vadd.f32 %v6943_v8, %v16517_v25  ;;  %v16590_v28 = vadd.f32 %v13124_v37, %v16517_v25 }
0x1072   : > { %7517 = vrot.lane.b32.xlu1 %v16520_v31, %s14886_s27  ;;  %7439 = vrot.lane.b32.xlu0 %v16523_v47, %s14886_s27 }
0x10d4   : > { %v6972_v55 = vpop.permute.xlu1 %6971 }
0x10d5   : > { %14194 = vmatpush3.xpose.msk.msra.mxu1 %vm787_vm4, %v6972_v55 }
0x10d6   : > { %14203 = vmatprep.subr.mxu1 %v14887_v21 }
0x10d8   : > { %v7050_v46 = vpop.permute.xlu1 %7049  ;;  %14196 = vmatmul.mubr.msk.f32.vlgmr.msra.gmra.mxu1 %vm787_vm4, %v16534_v10  ;;  %v7128_v15 = vpop.permute.xlu0 %7127 }
0x10d9   : > { %14199 = vmatpush3.xpose.msk.msra.mxu0 %vm787_vm4, %v7050_v46  ;;  %14204 = vmatpush3.xpose.msk.msra.mxu1 %vm787_vm4, %v7128_v15  ;;  %v13126_v46 = vld [vmem:[%s17623_s4 + $0xb] ss:$0 sm:$0xff] }
0x10da   : > { %14205 = vmatprep.mubr.msk.f32.mxu1 %vm14888_vm3, %v14887_v21  ;;  %14208 = vmatprep.subr.mxu0 %v14887_v21 }
0x10db   : > { %14213 = vmatprep.subr.mxu1 %v14887_v21 }
0x10dc   : > { %14201 = vmatmul.mubr.msk.f32.vlgmr.msra.gmra.mxu0 %vm787_vm4, %v16542_v24  ;;  %v7206_v27 = vpop.permute.xlu1 %7205  ;;  %14206 = vmatmul.mubr.msk.f32.vlgmr.msra.gmra.mxu1 %vm787_vm4, %v16545_v38  ;;  %v7284_v62 = vpop.permute.xlu0 %7283 }
0x10dd   : > { %14209 = vmatpush3.xpose.msk.msra.mxu0 %vm787_vm4, %v7206_v27  ;;  %14214 = vmatpush3.xpose.msk.msra.mxu1 %vm787_vm4, %v7284_v62 }
0x10de   : > { %14210 = vmatprep.mubr.msk.f32.mxu0 %vm14888_vm3, %v14887_v21  ;;  %14215 = vmatprep.mubr.msk.f32.mxu1 %vm14888_vm3, %v14887_v21 }
0x10df   : > { %14218 = vmatprep.subr.mxu0 %v14887_v21  ;;  %14223 = vmatprep.subr.mxu1 %v14887_v21 }
0x10e0   : > { %14211 = vmatmul.mubr.msk.f32.vlgmr.msra.gmra.mxu0 %vm787_vm4, %v16558_v56  ;;  %v7362_v29 = vpop.permute.xlu1 %7361  ;;  %14216 = vmatmul.mubr.msk.f32.vlgmr.msra.gmra.mxu1 %vm787_vm4, %v16561_v30 }
0x10e1   : > { %14219 = vmatpush3.xpose.msk.msra.mxu0 %vm787_vm4, %v7362_v29  ;;  %14220 = vmatprep.mubr.msk.f32.mxu0 %vm14888_vm3, %v14887_v21 }
0x10e2   : > { %14228 = vmatprep.subr.mxu0 %v14887_v21  ;;  %14225 = vmatprep.mubr.msk.f32.mxu1 %vm14888_vm3, %v14887_v21 }
0x10e4   : > { %14221 = vmatmul.mubr.msk.f32.vlgmr.msra.gmra.mxu0 %vm787_vm4, %v16577_v54  ;;  %v7518_v23 = vpop.permute.xlu1 %7517  ;;  %v7440_v58 = vpop.permute.xlu0 %7439 }
0x10e5   : > { %14224 = vmatpush3.xpose.msk.msra.mxu1 %vm787_vm4, %v7440_v58  ;;  %14229 = vmatpush3.xpose.msk.msra.mxu0 %vm787_vm4, %v7518_v23 }
0x10e6   : > { %14230 = vmatprep.mubr.msk.f32.mxu0 %vm14888_vm3, %v14887_v21  ;;  %14233 = vmatprep.subr.mxu1 %v14887_v21 }
0x10e7   : > { %14238 = vmatprep.subr.mxu0 %v14887_v21 }
0x10e8   : > { %14226 = vmatmul.mubr.msk.f32.vlgmr.msra.gmra.mxu1 %vm787_vm4, %v16590_v28  ;;  %14231 = vmatmul.mubr.msk.f32.vlgmr.msra.gmra.mxu0 %vm787_vm4, %v16587_v4 }
0x10e9   : > { %14240 = vmatprep.mubr.msk.f32.mxu0 %vm14888_vm3, %v14887_v21  ;;  %14235 = vmatprep.mubr.msk.f32.mxu1 %vm14888_vm3, %v14887_v21 }
0x1198   : > { %v7044_v51 = vpop.f32.mrf.mxu1 }
0x1199   : > { %v16604_v33 = vmul.f32 0.17677669, %v7044_v51 }
0x119a   : > { %v14197_v42 = vpop.f32.mrf.mxu1 }
0x119b   : > { %v7602_v60 = vsel %vm787_vm4, %v16604_v33, -inf }
0x119c   : > { %v7122_v52 = vpop.f32.mrf.mxu0  ;;  %v7200_v43 = vpop.f32.mrf.mxu1  ;;  %7603 = vmax.xlane.f32.xlu0 %v7602_v60 }
0x119d   : > { %v16608_v44 = vmul.f32 0.17677669, %v7122_v52  ;;  %v16614_v19 = vmul.f32 0.17677669, %v7200_v43 }
0x119e   : > { %v14202_v1 = vpop.f32.mrf.mxu0  ;;  %v14207_v57 = vpop.f32.mrf.mxu1 }
0x119f   : > { %v7605_v14 = vsel %vm787_vm4, %v16608_v44, -inf  ;;  %v7608_v40 = vsel %vm787_vm4, %v16614_v19, -inf }
0x11a0   : > { %v7356_v5 = vpop.f32.mrf.mxu1  ;;  %7606 = vmax.xlane.f32.xlu1 %v7605_v14  ;;  %v7278_v12 = vpop.f32.mrf.mxu0 }
0x11a1   : > { %v7598_v3 = vmul.f32 0.17677669, %v7356_v5  ;;  %v16612_v7 = vmul.f32 0.17677669, %v7278_v12 }
0x11a2   : > { %v14212_v48 = vpop.f32.mrf.mxu0  ;;  %v14217_v50 = vpop.f32.mrf.mxu1 }
0x11a3   : > { %v7614_v39 = vsel %vm787_vm4, %v7598_v3, -inf  ;;  %v7611_v36 = vsel %vm787_vm4, %v16612_v7, -inf }
0x11a4   : > { %7615 = vmax.xlane.f32.xlu1 %v7614_v39  ;;  %v7434_v53 = vpop.f32.mrf.mxu0  ;;  %7612 = vmax.xlane.f32.xlu0 %v7611_v36 }
0x11a5   : > { %v16619_v35 = vmul.f32 0.17677669, %v7434_v53 }
0x11a6   : > { %v14222_v49 = vpop.f32.mrf.mxu0 }
0x11a7   : > { %v7617_v8 = vsel %vm787_vm4, %v16619_v35, -inf }
0x11a8   : > { %v7590_v61 = vpop.f32.mrf.mxu0  ;;  %7609 = vmax.xlane.f32.xlu0 %v7608_v40  ;;  %v7512_v45 = vpop.f32.mrf.mxu1 }
0x11a9   : > { %v16623_v32 = vmul.f32 0.17677669, %v7512_v45  ;;  %v16625_v2 = vmul.f32 0.17677669, %v7590_v61 }
0x11aa   : > { %v14227_v63 = vpop.f32.mrf.mxu1  ;;  %v14232_v59 = vpop.f32.mrf.mxu0 }
0x11ab   : > { %v7620_v55 = vsel %vm787_vm4, %v16623_v32, -inf  ;;  %v7623_v37 = vsel %vm787_vm4, %v16625_v2, -inf }
0x11ac   : > { %7618 = vmax.xlane.f32.xlu0 %v7617_v8  ;;  %7621 = vmax.xlane.f32.xlu1 %v7620_v55 }
0x11b0   : > { %7624 = vmax.xlane.f32.xlu0 %v7623_v37 }
0x11bd   : > { %6959 = vrot.lane.b32.xlu1 %v13126_v46, %s14899_s16 }
0x1229   : > { %v7607_v15 = vpop.xlane.xlu1 %7606 }
0x122a   : > { %v7627_v52 = vsub.f32 %v16608_v44, %v7607_v15 }
0x122c   : > { %v7636_v43 = vmul.f32 1.442695, %v7627_v52 }
0x122d   : > { %v7616_v27 = vpop.xlane.xlu1 %7615 }
0x1235   : > { %v7622_v62 = vpop.xlane.xlu1 %7621 }
0x1236   : > { %v7632_v49 = vsub.f32 %v16623_v32, %v7622_v62 }
0x1238   : > { %v7646_v45 = vmul.f32 1.442695, %v7632_v49 }
0x1239   : > { %v6960_v29 = vpop.permute.xlu1 %6959 }
0x123a   : > { %v16637_v23 = vadd.f32 %v6960_v29, %v16484_v18  ;;  %v16640_v58 = vadd.f32 %v6960_v29, %v16475_v11  ;;  %v16645_v51 = vadd.f32 %v16513_v26, %v6960_v29  ;;  %v16648_v42 = vadd.f32 %v16473_v17, %v6960_v29 }
0x123b   : > { %v16653_v18 = vadd.f32 %v16480_v0, %v6960_v29  ;;  %v16659_v11 = vadd.f32 %v6960_v29, %v16498_v16  ;;  %v16665_v17 = vadd.f32 %v16492_v34, %v6960_v29  ;;  %v16671_v0 = vadd.f32 %v6960_v29, %v16517_v25  ;;  %v7604_v34 = vpop.xlane.xlu0 %7603 }
0x123c   : > { %7845 = vrot.lane.b32.xlu1 %v16637_v23, %s14899_s16  ;;  %7691 = vrot.lane.b32.xlu0 %v16640_v58, %s14899_s16  ;;  %v7630_v16 = vsub.f32 %v7598_v3, %v7616_v27  ;;  %v7626_v25 = vsub.f32 %v16604_v33, %v7604_v34 }
0x123e   : > { %v7642_v26 = vmul.f32 1.442695, %v7630_v16  ;;  %v7634_v57 = vmul.f32 1.442695, %v7626_v25 }
0x123f   : > { %v7613_v60 = vpop.xlane.xlu0 %7612 }
0x1240   : > { %8230 = vrot.lane.b32.xlu1 %v16645_v51, %s14899_s16  ;;  %7768 = vrot.lane.b32.xlu0 %v16648_v42, %s14899_s16  ;;  %14718 = vpow2.f32 %v7642_v26  ;;  %v7629_v14 = vsub.f32 %v16612_v7, %v7613_v60 }
0x1241   : > { %14720 = vpow2.f32 %v7636_v43 }
0x1242   : > { %14722 = vpow2.f32 %v7634_v57  ;;  %v7640_v3 = vmul.f32 1.442695, %v7629_v14 }
0x1243   : > { %v7610_v1 = vpop.xlane.xlu0 %7609 }
0x1244   : > { %8394 = vrot.lane.b32.xlu1 %v16487_v22, %s14891_s25  ;;  %7922 = vrot.lane.b32.xlu0 %v16653_v18, %s14899_s16  ;;  %v7628_v48 = vsub.f32 %v16614_v19, %v7610_v1  ;;  %14724 = vpow2.f32 %v7640_v3 }
0x1246   : > { %v7638_v44 = vmul.f32 1.442695, %v7628_v48 }
0x1247   : > { %v7619_v12 = vpop.xlane.xlu0 %7618 }
0x1248   : > { %8392 = vrot.lane.b32.xlu1 %v16542_v24, %s14890_s24  ;;  %7999 = vrot.lane.b32.xlu0 %v16659_v11, %s14899_s16  ;;  %v7631_v33 = vsub.f32 %v16619_v35, %v7619_v12  ;;  %14726 = vpow2.f32 %v7638_v44 }
0x124a   : > { %v7644_v36 = vmul.f32 1.442695, %v7631_v33 }
0x124b   : > { %v7625_v39 = vpop.xlane.xlu0 %7624 }
0x124c   : > { %8550 = vrot.lane.b32.xlu1 %v16501_v41, %s14891_s25  ;;  %8076 = vrot.lane.b32.xlu0 %v16665_v17, %s14899_s16  ;;  %v7633_v7 = vsub.f32 %v16625_v2, %v7625_v39  ;;  %14728 = vpow2.f32 %v7644_v36 }
0x124d   : > { %v16683_v5 = vpop.eup %14718 }
0x124e   : > { %v7662_v50 = vsel %vm787_vm4, %v16683_v5, 0.0  ;;  %v16690_v53 = vpop.eup %14720  ;;  %v7648_v40 = vmul.f32 1.442695, %v7633_v7 }
0x124f   : > { %v7653_v19 = vsel %vm787_vm4, %v16690_v53, 0.0  ;;  %v16695_v61 = vpop.eup %14722 }
0x1250   : > { %8153 = vrot.lane.b32.xlu0 %v16671_v0, %s14899_s16  ;;  %14730 = vpow2.f32 %v7648_v40  ;;  %v7650_v35 = vsel %vm787_vm4, %v16695_v61, 0.0 }
0x1251   : > { %v16699_v63 = vpop.eup %14724  ;;  %14732 = vpow2.f32 %v7646_v45 }
0x1252   : > { %v7659_v32 = vsel %vm787_vm4, %v16699_v63, 0.0 }
0x1254   : > { %8316 = vrot.lane.b32.xlu0 %v16478_v9, %s14891_s25 }
0x1255   : > { %v16705_v59 = vpop.eup %14726 }
0x1256   : > { %v7656_v2 = vsel %vm787_vm4, %v16705_v59, 0.0 }
0x1258   : > { %8314 = vrot.lane.b32.xlu0 %v16534_v10, %s14890_s24 }
0x1259   : > { %v16711_v8 = vpop.eup %14728 }
0x125a   : > { %v7665_v55 = vsel %vm787_vm4, %v16711_v8, 0.0 }
0x125c   : > { %8472 = vrot.lane.b32.xlu0 %v16490_v6, %s14891_s25 }
0x125d   : > { %v16717_v37 = vpop.eup %14730 }
0x125e   : > { %v7671_v46 = vsel %vm787_vm4, %v16717_v37, 0.0  ;;  %v16723_v15 = vpop.eup %14732 }
0x125f   : > { %v7668_v27 = vsel %vm787_vm4, %v16723_v15, 0.0 }
0x1270   : > { %7663 = vadd.xlane.f32.xlu1 %v7662_v50 }
0x127b   : > { %7654 = vadd.xlane.f32.xlu0 %v7653_v19 }
0x127f   : > { %7651 = vadd.xlane.f32.xlu0 %v7650_v35 }
0x1281   : > { %8548 = vrot.lane.b32.xlu1 %v16558_v56, %s14890_s24 }
0x1283   : > { %7660 = vadd.xlane.f32.xlu0 %v7659_v32 }
0x1285   : > { %8706 = vrot.lane.b32.xlu1 %v16511_v20, %s14891_s25 }
0x1287   : > { %7657 = vadd.xlane.f32.xlu0 %v7656_v2 }
0x1289   : > { %8704 = vrot.lane.b32.xlu1 %v16577_v54, %s14890_s24 }
0x128b   : > { %7666 = vadd.xlane.f32.xlu0 %v7665_v55 }
0x128d   : > { %8862 = vrot.lane.b32.xlu1 %v16520_v31, %s14891_s25 }
0x128f   : > { %7672 = vadd.xlane.f32.xlu0 %v7671_v46 }
0x1291   : > { %8860 = vrot.lane.b32.xlu1 %v16587_v4, %s14890_s24 }
0x1293   : > { %7669 = vadd.xlane.f32.xlu0 %v7668_v27 }
0x12a9   : > { %8470 = vrot.lane.b32.xlu0 %v16545_v38, %s14890_s24 }
0x12ad   : > { %8628 = vrot.lane.b32.xlu0 %v16504_v13, %s14891_s25 }
0x12ae   : > { %v7692_v62 = vpop.permute.xlu0 %7691  ;;  %v7846_v52 = vpop.permute.xlu1 %7845 }
0x12af   : > { %14234 = vmatpush3.msra.mxu1 %v7692_v62 }
0x12b0   : > { %14243 = vmatprep.subr.mxu1 %v14887_v21 }
0x12b1   : > { %8626 = vrot.lane.b32.xlu0 %v16561_v30, %s14890_s24 }
0x12b2   : > { %v7769_v29 = vpop.permute.xlu0 %7768  ;;  %v8231_v43 = vpop.permute.xlu1 %8230 }
0x12b3   : > { %14239 = vmatpush3.msra.mxu0 %v7769_v29 }
0x12b4   : > { %14248 = vmatprep.subr.mxu0 %v14887_v21 }
0x12b5   : > { %8784 = vrot.lane.b32.xlu0 %v16523_v47, %s14891_s25  ;;  %s14901_s25 = smov 48  }
0x12b6   : > { %v7923_v16 = vpop.permute.xlu0 %7922  ;;  %v16745_v57 = vpop.permute.xlu1 %8394 }
0x12b9   : > { %8782 = vrot.lane.b32.xlu0 %v16590_v28, %s14890_s24  ;;  %s14900_s24 = smov 56  }
0x12ba   : > { %v8000_v26 = vpop.permute.xlu0 %7999  ;;  %v16749_v3 = vpop.permute.xlu1 %8392 }
0x12be   : > { %v8077_v34 = vpop.permute.xlu0 %8076  ;;  %v16751_v50 = vpop.permute.xlu1 %8550 }
0x12c2   : > { %v8154_v60 = vpop.permute.xlu0 %8153 }
0x12c6   : > { %v16741_v25 = vpop.permute.xlu0 %8316 }
0x12ca   : > { %v16743_v1 = vpop.permute.xlu0 %8314 }
0x12ce   : > { %v16747_v14 = vpop.permute.xlu0 %8472 }
0x12f9   : > { %v7664_v33 = vpop.xlane.xlu1 %7663 }
0x12fd   : > { %v8549_v46 = vpop.permute.xlu1 %8548 }
0x1304   : > { %v7655_v12 = vpop.xlane.xlu0 %7654 }
0x1305   : > { %14734 = vrcp.f32 %v7655_v12 }
0x1308   : > { %v7652_v48 = vpop.xlane.xlu0 %7651 }
0x1309   : > { %14736 = vrcp.f32 %v7652_v48 }
0x130c   : > { %v7661_v44 = vpop.xlane.xlu0 %7660 }
0x130d   : > { %14738 = vrcp.f32 %v7661_v44 }
0x1310   : > { %v7658_v39 = vpop.xlane.xlu0 %7657 }
0x1311   : > { %14740 = vrcp.f32 %v7658_v39 }
0x1312   : > { %v14735_v36 = vpop.eup %14734  ;;  %14742 = vrcp.f32 %v7664_v33 }
0x1313   : > { %v7683_v7 = vmul.f32 %v14735_v36, %v16690_v53 }
0x1314   : > { %v7667_v49 = vpop.xlane.xlu0 %7666 }
0x1315   : > { %14744 = vrcp.f32 %v7667_v49  ;;  %14241 = vmatmul.mubr.msk.f32.vlgmr.msra.gmra.mxu0 %vm787_vm4, %v7683_v7 }
0x1316   : > { %v14737_v40 = vpop.eup %14736  ;;  %14249 = vmatpush3.msra.mxu0 %v7923_v16  ;;  %14250 = vmatprep.mubr.msk.f32.mxu0 %vm14888_vm3, %v14887_v21  ;;  %v8707_v16 = vpop.permute.xlu1 %8706 }
0x1317   : > { %v7682_v19 = vmul.f32 %v14737_v40, %v16695_v61  ;;  %14258 = vmatprep.subr.mxu0 %v14887_v21 }
0x1318   : > { %v7673_v45 = vpop.xlane.xlu0 %7672 }
0x1319   : > { %14746 = vrcp.f32 %v7673_v45  ;;  %14236 = vmatmul.mubr.msk.f32.vlgmr.msra.gmra.mxu1 %vm787_vm4, %v7682_v19 }
0x131a   : > { %v14739_v35 = vpop.eup %14738  ;;  %14244 = vmatpush3.msra.mxu1 %v7846_v52  ;;  %14245 = vmatprep.mubr.msk.f32.mxu1 %vm14888_vm3, %v14887_v21 }
0x131b   : > { %v7685_v53 = vmul.f32 %v14739_v35, %v16699_v63  ;;  %14253 = vmatprep.subr.mxu1 %v14887_v21 }
0x131c   : > { %v7670_v32 = vpop.xlane.xlu0 %7669 }
0x131d   : > { %14748 = vrcp.f32 %v7670_v32  ;;  %14251 = vmatmul.mubr.msk.f32.vlgmr.msra.gmra.mxu0 %vm787_vm4, %v7685_v53 }
0x131e   : > { %v14741_v61 = vpop.eup %14740  ;;  %14259 = vmatpush3.msra.mxu0 %v8077_v34  ;;  %14260 = vmatprep.mubr.msk.f32.mxu0 %vm14888_vm3, %v14887_v21 }
0x131f   : > { %v7684_v2 = vmul.f32 %v14741_v61, %v16705_v59  ;;  %14268 = vmatprep.subr.mxu0 %v14887_v21  ;;  %v14743_v55 = vpop.eup %14742 }
0x1320   : > { %v7686_v27 = vmul.f32 %v14743_v55, %v16683_v5  ;;  %v8471_v29 = vpop.permute.xlu0 %8470 }
0x1321   : > { %14246 = vmatmul.mubr.msk.f32.vlgmr.msra.gmra.mxu1 %vm787_vm4, %v7684_v2 }
0x1322   : > { %v14745_v63 = vpop.eup %14744  ;;  %14254 = vmatpush3.msra.mxu1 %v8000_v26  ;;  %14255 = vmatprep.mubr.msk.f32.mxu1 %vm14888_vm3, %v14887_v21 }
0x1323   : > { %14263 = vmatprep.subr.mxu1 %v14887_v21  ;;  %v7687_v62 = vmul.f32 %v14745_v63, %v16711_v8 }
0x1324   : > { %v8629_v8 = vpop.permute.xlu0 %8628 }
0x1325   : > { %14256 = vmatmul.mubr.msk.f32.vlgmr.msra.gmra.mxu1 %vm787_vm4, %v7686_v27  ;;  %14261 = vmatmul.mubr.msk.f32.vlgmr.msra.gmra.mxu0 %vm787_vm4, %v7687_v62 }
0x1326   : > { %v14747_v59 = vpop.eup %14746  ;;  %14264 = vmatpush3.msra.mxu1 %v8154_v60  ;;  %14269 = vmatpush3.msra.mxu0 %v8231_v43 }
0x1327   : > { %14270 = vmatprep.mubr.msk.f32.mxu0 %vm14888_vm3, %v14887_v21  ;;  %14278 = vmatprep.subr.mxu0 %v14887_v21  ;;  %v7689_v26 = vmul.f32 %v14747_v59, %v16717_v37  ;;  %v8705_v37 = vpop.permute.xlu1 %8704 }
0x1328   : > { %14265 = vmatprep.mubr.msk.f32.mxu1 %vm14888_vm3, %v14887_v21  ;;  %14273 = vmatprep.subr.mxu1 %v14887_v21  ;;  %v8627_v60 = vpop.permute.xlu0 %8626 }
0x1329   : > { %14271 = vmatmul.mubr.msk.f32.vlgmr.msra.gmra.mxu0 %vm787_vm4, %v7689_v26 }
0x132a   : > { %v14749_v5 = vpop.eup %14748  ;;  %14279 = vmatpush3.xpose.msk.msra.mxu0 %vm787_vm4, %v16745_v57  ;;  %14280 = vmatprep.mubr.msk.f32.mxu0 %vm14888_vm3, %v14887_v21 }
0x132b   : > { %14288 = vmatprep.subr.mxu0 %v14887_v21  ;;  %v7688_v34 = vmul.f32 %v14749_v5, %v16723_v15  ;;  %v8863_v15 = vpop.permute.xlu1 %8862 }
0x132c   : > { %v8785_v52 = vpop.permute.xlu0 %8784 }
0x132d   : > { %14266 = vmatmul.mubr.msk.f32.vlgmr.msra.gmra.mxu1 %vm787_vm4, %v7688_v34  ;;  %14281 = vmatmul.mubr.msk.f32.vlgmr.msra.gmra.mxu0 %vm787_vm4, %v16749_v3 }
0x132e   : > { %14274 = vmatpush3.xpose.msk.msra.mxu1 %vm787_vm4, %v16741_v25  ;;  %14289 = vmatpush3.xpose.msk.msra.mxu0 %vm787_vm4, %v16751_v50 }
0x132f   : > { %14275 = vmatprep.mubr.msk.f32.mxu1 %vm14888_vm3, %v14887_v21  ;;  %14283 = vmatprep.subr.mxu1 %v14887_v21  ;;  %v8861_v25 = vpop.permute.xlu1 %8860 }
0x1330   : > { %14290 = vmatprep.mubr.msk.f32.mxu0 %vm14888_vm3, %v14887_v21  ;;  %14298 = vmatprep.subr.mxu0 %v14887_v21  ;;  %v8783_v43 = vpop.permute.xlu0 %8782 }
0x1331   : > { %14276 = vmatmul.mubr.msk.f32.vlgmr.msra.gmra.mxu1 %vm787_vm4, %v16743_v1  ;;  %14291 = vmatmul.mubr.msk.f32.vlgmr.msra.gmra.mxu0 %vm787_vm4, %v8549_v46 }
0x1332   : > { %14284 = vmatpush3.xpose.msk.msra.mxu1 %vm787_vm4, %v16747_v14  ;;  %14299 = vmatpush3.xpose.msk.msra.mxu0 %vm787_vm4, %v8707_v16 }
0x1333   : > { %14285 = vmatprep.mubr.msk.f32.mxu1 %vm14888_vm3, %v14887_v21  ;;  %14293 = vmatprep.subr.mxu1 %v14887_v21 }
0x1334   : > { %14300 = vmatprep.mubr.msk.f32.mxu0 %vm14888_vm3, %v14887_v21  ;;  %14308 = vmatprep.subr.mxu0 %v14887_v21 }
0x1335   : > { %14286 = vmatmul.mubr.msk.f32.vlgmr.msra.gmra.mxu1 %vm787_vm4, %v8471_v29  ;;  %14301 = vmatmul.mubr.msk.f32.vlgmr.msra.gmra.mxu0 %vm787_vm4, %v8705_v37 }
0x1336   : > { %14294 = vmatpush3.xpose.msk.msra.mxu1 %vm787_vm4, %v8629_v8  ;;  %14309 = vmatpush3.xpose.msk.msra.mxu0 %vm787_vm4, %v8863_v15 }
0x1337   : > { %14295 = vmatprep.mubr.msk.f32.mxu1 %vm14888_vm3, %v14887_v21  ;;  %14303 = vmatprep.subr.mxu1 %v14887_v21 }
0x1338   : > { %14310 = vmatprep.mubr.msk.f32.mxu0 %vm14888_vm3, %v14887_v21  ;;  %14318 = vmatprep.subr.mxu0 %v14887_v21 }
0x1339   : > { %14296 = vmatmul.mubr.msk.f32.vlgmr.msra.gmra.mxu1 %vm787_vm4, %v8627_v60  ;;  %14311 = vmatmul.mubr.msk.f32.vlgmr.msra.gmra.mxu0 %vm787_vm4, %v8861_v25 }
0x133a   : > { %14304 = vmatpush3.xpose.msk.msra.mxu1 %vm787_vm4, %v8785_v52  ;;  %14305 = vmatprep.mubr.msk.f32.mxu1 %vm14888_vm3, %v14887_v21 }
0x133b   : > { %14313 = vmatprep.subr.mxu1 %v14887_v21  ;;  %14320 = vmatprep.mubr.msk.f32.mxu0 %vm14888_vm3, %v14887_v21 }
0x133d   : > { %14306 = vmatmul.mubr.msk.f32.vlgmr.msra.gmra.mxu1 %vm787_vm4, %v8783_v43 }
0x133e   : > { %14315 = vmatprep.mubr.msk.f32.mxu1 %vm14888_vm3, %v14887_v21 }
0x13d5   : > { %v7840_v1 = vpop.f32.mrf.mxu0 }
0x13d6   : > { %8307 = vst.msk [vmem:[#allocation2 + $0x8] sm:$0xff] %vm787_vm4, %v7840_v1 }
0x13d7   : > { %v14242_v57 = vpop.f32.mrf.mxu0 }
0x13d9   : > { %v7763_v14 = vpop.f32.mrf.mxu1 }
0x13da   : > { %8306 = vst.msk [vmem:[#allocation2] sm:$0xff] %vm787_vm4, %v7763_v14 }
0x13db   : > { %v14237_v12 = vpop.f32.mrf.mxu1 }
0x13dd   : > { %v7994_v3 = vpop.f32.mrf.mxu0 }
0x13de   : > { %8309 = vst.msk [vmem:[#allocation2 + $0x18] sm:$0xff] %vm787_vm4, %v7994_v3 }
0x13df   : > { %v14252_v48 = vpop.f32.mrf.mxu0 }
0x13e1   : > { %v7917_v50 = vpop.f32.mrf.mxu1 }
0x13e2   : > { %8308 = vst.msk [vmem:[#allocation2 + $0x10] sm:$0xff] %vm787_vm4, %v7917_v50 }
0x13e3   : > { %v14247_v44 = vpop.f32.mrf.mxu1 }
0x13e5   : > { %v8071_v33 = vpop.f32.mrf.mxu1  ;;  %v8148_v39 = vpop.f32.mrf.mxu0 }
0x13e6   : > { %8310 = vst.msk [vmem:[#allocation2 + $0x20] sm:$0xff] %vm787_vm4, %v8071_v33  ;;  %8311 = vst.msk [vmem:[#allocation2 + $0x28] sm:$0xff] %vm787_vm4, %v8148_v39 }
0x13e7   : > { %v14257_v36 = vpop.f32.mrf.mxu1  ;;  %v14262_v7 = vpop.f32.mrf.mxu0 }
0x13e9   : > { %v8302_v49 = vpop.f32.mrf.mxu0 }
0x13ea   : > { %8313 = vst.msk [vmem:[#allocation2 + $0x38] sm:$0xff] %vm787_vm4, %v8302_v49 }
0x13eb   : > { %v14272_v40 = vpop.f32.mrf.mxu0 }
0x13ed   : > { %v8225_v19 = vpop.f32.mrf.mxu1  ;;  %v8466_v45 = vpop.f32.mrf.mxu0 }
0x13ee   : > { %8312 = vst.msk [vmem:[#allocation2 + $0x30] sm:$0xff] %vm787_vm4, %v8225_v19  ;;  %v8939_v35 = vmul.f32 0.17677669, %v8466_v45 }
0x13ef   : > { %v14267_v53 = vpop.f32.mrf.mxu1  ;;  %v14282_v32 = vpop.f32.mrf.mxu0 }
0x13f0   : > { %v8949_v61 = vsel %vm787_vm4, %v8939_v35, -inf }
0x13f1   : > { %8950 = vmax.xlane.f32.xlu1 %v8949_v61  ;;  %v8388_v2 = vpop.f32.mrf.mxu1  ;;  %v8622_v55 = vpop.f32.mrf.mxu0 }
0x13f2   : > { %v16846_v46 = vmul.f32 0.17677669, %v8388_v2  ;;  %v8941_v8 = vmul.f32 0.17677669, %v8622_v55 }
0x13f3   : > { %v14277_v63 = vpop.f32.mrf.mxu1  ;;  %v14292_v27 = vpop.f32.mrf.mxu0 }
0x13f4   : > { %v8946_v62 = vsel %vm787_vm4, %v16846_v46, -inf  ;;  %v8955_v43 = vsel %vm787_vm4, %v8941_v8, -inf }
0x13f5   : > { %v8778_v29 = vpop.f32.mrf.mxu0  ;;  %8947 = vmax.xlane.f32.xlu0 %v8946_v62  ;;  %v8544_v59 = vpop.f32.mrf.mxu1 }
0x13f6   : > { %v16850_v16 = vmul.f32 0.17677669, %v8544_v59  ;;  %v8943_v25 = vmul.f32 0.17677669, %v8778_v29 }
0x13f7   : > { %v14287_v26 = vpop.f32.mrf.mxu1  ;;  %v14302_v5 = vpop.f32.mrf.mxu0 }
0x13f8   : > { %v8952_v34 = vsel %vm787_vm4, %v16850_v16, -inf  ;;  %v8961_v12 = vsel %vm787_vm4, %v8943_v25, -inf }
0x13f9   : > { %v8934_v37 = vpop.f32.mrf.mxu0  ;;  %8953 = vmax.xlane.f32.xlu0 %v8952_v34  ;;  %v8700_v60 = vpop.f32.mrf.mxu1 }
0x13fa   : > { %v8945_v14 = vmul.f32 0.17677669, %v8934_v37  ;;  %v16860_v48 = vmul.f32 0.17677669, %v8700_v60 }
0x13fb   : > { %v14297_v15 = vpop.f32.mrf.mxu1  ;;  %v14312_v52 = vpop.f32.mrf.mxu0 }
0x13fc   : > { %v8967_v3 = vsel %vm787_vm4, %v8945_v14, -inf  ;;  %v8958_v50 = vsel %vm787_vm4, %v16860_v48, -inf }
0x13fd   : > { %8956 = vmax.xlane.f32.xlu0 %v8955_v43  ;;  %v8856_v1 = vpop.f32.mrf.mxu1 }
0x13fe   : > { %v16874_v44 = vmul.f32 0.17677669, %v8856_v1 }
0x13ff   : > { %v14307_v57 = vpop.f32.mrf.mxu1 }
0x1400   : > { %v8964_v33 = vsel %vm787_vm4, %v16874_v44, -inf }
0x1401   : > { %8962 = vmax.xlane.f32.xlu0 %v8961_v12 }
0x1402   : > { %9034 = vrot.lane.b32.xlu1 %v16640_v58, %s14900_s24 }
0x1405   : > { %8968 = vmax.xlane.f32.xlu0 %v8967_v3 }
0x141b   : > { %9110 = vrot.lane.b32.xlu0 %v16648_v42, %s14900_s24 }
0x141f   : > { %9338 = vrot.lane.b32.xlu0 %v16659_v11, %s14900_s24 }
0x1423   : > { %9490 = vrot.lane.b32.xlu0 %v16671_v0, %s14900_s24 }
0x1426   : > { %8959 = vmax.xlane.f32.xlu1 %v8958_v50 }
0x1427   : > { %9684 = vrot.lane.b32.xlu0 %v16478_v9, %s14893_s28 }
0x142b   : > { %9682 = vrot.lane.b32.xlu0 %v16534_v10, %s14892_s26 }
0x142f   : > { %9840 = vrot.lane.b32.xlu0 %v16490_v6, %s14893_s28 }
0x1433   : > { %9838 = vrot.lane.b32.xlu0 %v16545_v38, %s14892_s26 }
0x1437   : > { %9186 = vrot.lane.b32.xlu1 %v16637_v23, %s14900_s24 }
0x145b   : > { %8965 = vmax.xlane.f32.xlu1 %v8964_v33 }
0x146c   : > { %9262 = vrot.lane.b32.xlu1 %v16653_v18, %s14900_s24 }
0x1470   : > { %9414 = vrot.lane.b32.xlu1 %v16665_v17, %s14900_s24 }
0x1474   : > { %9566 = vrot.lane.b32.xlu1 %v16645_v51, %s14900_s24 }
0x1478   : > { %9762 = vrot.lane.b32.xlu1 %v16487_v22, %s14893_s28 }
0x147a   : > { %v8951_v39 = vpop.xlane.xlu1 %8950 }
0x147b   : > { %v8971_v36 = vsub.f32 %v8939_v35, %v8951_v39 }
0x147c   : > { %9760 = vrot.lane.b32.xlu1 %v16542_v24, %s14892_s26 }
0x147d   : > { %v8980_v7 = vmul.f32 1.442695, %v8971_v36 }
0x147e   : > { %v9035_v49 = vpop.permute.xlu1 %9034  ;;  %v8948_v40 = vpop.xlane.xlu0 %8947 }
0x147f   : > { %14750 = vpow2.f32 %v8980_v7  ;;  %14314 = vmatpush3.msra.mxu1 %v9035_v49  ;;  %v8970_v62 = vsub.f32 %v16846_v46, %v8948_v40 }
0x1480   : > { %9918 = vrot.lane.b32.xlu1 %v16501_v41, %s14893_s28  ;;  %14323 = vmatprep.subr.mxu1 %v14887_v21 }
0x1481   : > { %v8978_v5 = vmul.f32 1.442695, %v8970_v62 }
0x1482   : > { %v8954_v19 = vpop.xlane.xlu0 %8953 }
0x1484   : > { %9916 = vrot.lane.b32.xlu1 %v16558_v56, %s14892_s26 }
0x1486   : > { %v8957_v45 = vpop.xlane.xlu0 %8956 }
0x1487   : > { %v8973_v53 = vsub.f32 %v8941_v8, %v8957_v45  ;;  %v8972_v8 = vsub.f32 %v16850_v16, %v8954_v19 }
0x1489   : > { %v8984_v35 = vmul.f32 1.442695, %v8973_v53  ;;  %v8982_v34 = vmul.f32 1.442695, %v8972_v8 }
0x148a   : > { %v8963_v32 = vpop.xlane.xlu0 %8962 }
0x148b   : > { %14752 = vpow2.f32 %v8984_v35  ;;  %v8975_v61 = vsub.f32 %v8943_v25, %v8963_v32 }
0x148c   : > { %v16890_v2 = vpop.eup %14750 }
0x148d   : > { %v8988_v55 = vmul.f32 1.442695, %v8975_v61  ;;  %v8997_v63 = vsel %vm787_vm4, %v16890_v2, 0.0 }
0x148e   : > { %8998 = vadd.xlane.f32.xlu0 %v8997_v63  ;;  %v8969_v27 = vpop.xlane.xlu0 %8968 }
0x148f   : > { %14754 = vpow2.f32 %v8988_v55  ;;  %v8977_v29 = vsub.f32 %v8945_v14, %v8969_v27 }
0x1491   : > { %v8992_v59 = vmul.f32 1.442695, %v8977_v29 }
0x1492   : > { %v9111_v26 = vpop.permute.xlu0 %9110 }
0x1493   : > { %14756 = vpow2.f32 %v8992_v59  ;;  %14319 = vmatpush3.msra.mxu0 %v9111_v26 }
0x1494   : > { %14328 = vmatprep.subr.mxu0 %v14887_v21  ;;  %14758 = vpow2.f32 %v8978_v5 }
0x1495   : > { %14760 = vpow2.f32 %v8982_v34 }
0x1496   : > { %v16933_v49 = vpop.permute.xlu0 %9338 }
0x1498   : > { %v16897_v37 = vpop.eup %14752 }
0x1499   : > { %v9003_v60 = vsel %vm787_vm4, %v16897_v37, 0.0 }
0x149a   : > { %9004 = vadd.xlane.f32.xlu0 %v9003_v60  ;;  %v16939_v45 = vpop.permute.xlu0 %9490 }
0x149c   : > { %v16901_v46 = vpop.eup %14754 }
0x149d   : > { %v9009_v15 = vsel %vm787_vm4, %v16901_v46, 0.0 }
0x149e   : > { %9010 = vadd.xlane.f32.xlu0 %v9009_v15  ;;  %v16941_v53 = vpop.permute.xlu0 %9684 }
0x14a0   : > { %v16905_v16 = vpop.eup %14756 }
0x14a1   : > { %v9015_v52 = vsel %vm787_vm4, %v16905_v16, 0.0  ;;  %v16909_v25 = vpop.eup %14758 }
0x14a2   : > { %9016 = vadd.xlane.f32.xlu0 %v9015_v52  ;;  %v8994_v43 = vsel %vm787_vm4, %v16909_v25, 0.0  ;;  %v16913_v1 = vpop.eup %14760  ;;  %v16943_v35 = vpop.permute.xlu0 %9682 }
0x14a3   : > { %v9000_v57 = vsel %vm787_vm4, %v16913_v1, 0.0 }
0x14a8   : > { %8995 = vadd.xlane.f32.xlu1 %v8994_v43 }
0x14ac   : > { %9001 = vadd.xlane.f32.xlu1 %v9000_v57 }
0x14af   : > { %v8960_v14 = vpop.xlane.xlu1 %8959 }
0x14b0   : > { %v8974_v12 = vsub.f32 %v16860_v48, %v8960_v14 }
0x14b2   : > { %v8986_v3 = vmul.f32 1.442695, %v8974_v12 }
0x14b3   : > { %v16930_v48 = vpop.permute.xlu1 %9186 }
0x14b4   : > { %14762 = vpow2.f32 %v8986_v3 }
0x14b8   : > { %9996 = vrot.lane.b32.xlu0 %v16504_v13, %s14893_s28 }
0x14bc   : > { %9994 = vrot.lane.b32.xlu0 %v16561_v30, %s14892_s26 }
0x14c0   : > { %10152 = vrot.lane.b32.xlu0 %v16523_v47, %s14893_s28 }
0x14c1   : > { %v16924_v50 = vpop.eup %14762 }
0x14c2   : > { %v9006_v33 = vsel %vm787_vm4, %v16924_v50, 0.0 }
0x14c3   : > { %9007 = vadd.xlane.f32.xlu1 %v9006_v33 }
0x14c4   : > { %10150 = vrot.lane.b32.xlu0 %v16590_v28, %s14892_s26 }
0x14e4   : > { %v8966_v39 = vpop.xlane.xlu1 %8965 }
0x14e5   : > { %v8976_v36 = vsub.f32 %v16874_v44, %v8966_v39  ;;  %v16947_v44 = vpop.permute.xlu0 %9840 }
0x14e7   : > { %v8990_v7 = vmul.f32 1.442695, %v8976_v36 }
0x14e8   : > { %v9263_v32 = vpop.permute.xlu1 %9262 }
0x14e9   : > { %14764 = vpow2.f32 %v8990_v7  ;;  %v16953_v55 = vpop.permute.xlu0 %9838 }
0x14ec   : > { %v9415_v61 = vpop.permute.xlu1 %9414 }
0x14f0   : > { %v9567_v63 = vpop.permute.xlu1 %9566 }
0x14f4   : > { %v9763_v62 = vpop.permute.xlu1 %9762 }
0x14f6   : > { %v16935_v40 = vpop.eup %14764 }
0x14f7   : > { %v9012_v19 = vsel %vm787_vm4, %v16935_v40, 0.0 }
0x14f8   : > { %9013 = vadd.xlane.f32.xlu1 %v9012_v19  ;;  %v9761_v29 = vpop.permute.xlu1 %9760 }
0x14fc   : > { %v9919_v8 = vpop.permute.xlu1 %9918 }
0x1500   : > { %v9917_v15 = vpop.permute.xlu1 %9916 }
0x1509   : > { %10074 = vrot.lane.b32.xlu1 %v16511_v20, %s14893_s28 }
0x150d   : > { %10072 = vrot.lane.b32.xlu1 %v16577_v54, %s14892_s26 }
0x1511   : > { %10230 = vrot.lane.b32.xlu1 %v16520_v31, %s14893_s28 }
0x1515   : > { %10228 = vrot.lane.b32.xlu1 %v16587_v4, %s14892_s26  ;;  %s14902_s26 = smov 40  }
0x1517   : > { %v8999_v27 = vpop.xlane.xlu0 %8998 }
0x1518   : > { %14766 = vrcp.f32 %v8999_v27 }
0x1523   : > { %v9005_v59 = vpop.xlane.xlu0 %9004 }
0x1524   : > { %14768 = vrcp.f32 %v9005_v59 }
0x1525   : > { %v14767_v26 = vpop.eup %14766 }
0x1526   : > { %v9027_v5 = vmul.f32 %v14767_v26, %v16890_v2 }
0x1527   : > { %v9011_v34 = vpop.xlane.xlu0 %9010 }
0x1528   : > { %14770 = vrcp.f32 %v9011_v34  ;;  %14321 = vmatmul.mubr.msk.f32.vlgmr.msra.gmra.mxu0 %vm787_vm4, %v9027_v5 }
0x1529   : > { %14329 = vmatpush3.msra.mxu0 %v9263_v32  ;;  %14330 = vmatprep.mubr.msk.f32.mxu0 %vm14888_vm3, %v14887_v21 }
0x152a   : > { %14338 = vmatprep.subr.mxu0 %v14887_v21 }
0x152b   : > { %v9017_v60 = vpop.xlane.xlu0 %9016 }
0x152c   : > { %14772 = vrcp.f32 %v9017_v60 }
0x1531   : > { %v14769_v52 = vpop.eup %14768  ;;  %v8996_v43 = vpop.xlane.xlu1 %8995 }
0x1532   : > { %v9029_v57 = vmul.f32 %v14769_v52, %v16897_v37  ;;  %14774 = vrcp.f32 %v8996_v43 }
0x1534   : > { %14331 = vmatmul.mubr.msk.f32.vlgmr.msra.gmra.mxu0 %vm787_vm4, %v9029_v57 }
0x1535   : > { %v14771_v2 = vpop.eup %14770  ;;  %14339 = vmatpush3.msra.mxu0 %v9415_v61  ;;  %v9002_v14 = vpop.xlane.xlu1 %9001  ;;  %14340 = vmatprep.mubr.msk.f32.mxu0 %vm14888_vm3, %v14887_v21 }
0x1536   : > { %v9031_v12 = vmul.f32 %v14771_v2, %v16901_v46  ;;  %14776 = vrcp.f32 %v9002_v14  ;;  %14348 = vmatprep.subr.mxu0 %v14887_v21 }
0x1538   : > { %14341 = vmatmul.mubr.msk.f32.vlgmr.msra.gmra.mxu0 %vm787_vm4, %v9031_v12 }
0x1539   : > { %v14773_v3 = vpop.eup %14772  ;;  %14349 = vmatpush3.msra.mxu0 %v9567_v63  ;;  %14350 = vmatprep.mubr.msk.f32.mxu0 %vm14888_vm3, %v14887_v21 }
0x153a   : > { %v9033_v37 = vmul.f32 %v14773_v3, %v16905_v16  ;;  %14358 = vmatprep.subr.mxu0 %v14887_v21 }
0x153c   : > { %14351 = vmatmul.mubr.msk.f32.vlgmr.msra.gmra.mxu0 %vm787_vm4, %v9033_v37 }
0x153d   : > { %14359 = vmatpush3.xpose.msk.msra.mxu0 %vm787_vm4, %v9763_v62  ;;  %14360 = vmatprep.mubr.msk.f32.mxu0 %vm14888_vm3, %v14887_v21 }
0x153e   : > { %14368 = vmatprep.subr.mxu0 %v14887_v21 }
0x153f   : > { %v14775_v46 = vpop.eup %14774 }
0x1540   : > { %14361 = vmatmul.mubr.msk.f32.vlgmr.msra.gmra.mxu0 %vm787_vm4, %v9761_v29  ;;  %v9026_v33 = vmul.f32 %v14775_v46, %v16909_v25 }
0x1541   : > { %14369 = vmatpush3.xpose.msk.msra.mxu0 %vm787_vm4, %v9919_v8  ;;  %14370 = vmatprep.mubr.msk.f32.mxu0 %vm14888_vm3, %v14887_v21 }
0x1542   : > { %14316 = vmatmul.mubr.msk.f32.vlgmr.msra.gmra.mxu1 %vm787_vm4, %v9026_v33  ;;  %14378 = vmatprep.subr.mxu0 %v14887_v21 }
0x1543   : > { %v14777_v16 = vpop.eup %14776  ;;  %14324 = vmatpush3.msra.mxu1 %v16930_v48  ;;  %14325 = vmatprep.mubr.msk.f32.mxu1 %vm14888_vm3, %v14887_v21 }
0x1544   : > { %v9028_v39 = vmul.f32 %v14777_v16, %v16913_v1  ;;  %14371 = vmatmul.mubr.msk.f32.vlgmr.msra.gmra.mxu0 %vm787_vm4, %v9917_v15  ;;  %14333 = vmatprep.subr.mxu1 %v14887_v21 }
0x1545   : > { %14380 = vmatprep.mubr.msk.f32.mxu0 %vm14888_vm3, %v14887_v21 }
0x1546   : > { %14326 = vmatmul.mubr.msk.f32.vlgmr.msra.gmra.mxu1 %vm787_vm4, %v9028_v39 }
0x1547   : > { %14334 = vmatpush3.msra.mxu1 %v16933_v49  ;;  %14335 = vmatprep.mubr.msk.f32.mxu1 %vm14888_vm3, %v14887_v21 }
0x1548   : > { %14343 = vmatprep.subr.mxu1 %v14887_v21 }
0x154c   : > { %v9008_v25 = vpop.xlane.xlu1 %9007 }
0x154d   : > { %14778 = vrcp.f32 %v9008_v25 }
0x155a   : > { %v14779_v48 = vpop.eup %14778 }
0x155b   : > { %v9030_v1 = vmul.f32 %v14779_v48, %v16924_v50 }
0x155d   : > { %14336 = vmatmul.mubr.msk.f32.vlgmr.msra.gmra.mxu1 %vm787_vm4, %v9030_v1 }
0x155e   : > { %14344 = vmatpush3.msra.mxu1 %v16939_v45  ;;  %14345 = vmatprep.mubr.msk.f32.mxu1 %vm14888_vm3, %v14887_v21  ;;  %v9997_v45 = vpop.permute.xlu0 %9996 }
0x155f   : > { %14353 = vmatprep.subr.mxu1 %v14887_v21 }
0x1562   : > { %v9995_v63 = vpop.permute.xlu0 %9994 }
0x1581   : > { %v9014_v36 = vpop.xlane.xlu1 %9013 }
0x1582   : > { %14780 = vrcp.f32 %v9014_v36 }
0x1585   : > { %v10075_v7 = vpop.permute.xlu1 %10074 }
0x1586   : > { %14379 = vmatpush3.xpose.msk.msra.mxu0 %vm787_vm4, %v10075_v7 }
0x1587   : > { %14388 = vmatprep.subr.mxu0 %v14887_v21 }
0x1589   : > { %v10073_v49 = vpop.permute.xlu1 %10072 }
0x158a   : > { %14381 = vmatmul.mubr.msk.f32.vlgmr.msra.gmra.mxu0 %vm787_vm4, %v10073_v49 }
0x158b   : > { %14390 = vmatprep.mubr.msk.f32.mxu0 %vm14888_vm3, %v14887_v21 }
0x158d   : > { %v10231_v50 = vpop.permute.xlu1 %10230 }
0x158e   : > { %14389 = vmatpush3.xpose.msk.msra.mxu0 %vm787_vm4, %v10231_v50 }
0x158f   : > { %v14781_v19 = vpop.eup %14780  ;;  %14398 = vmatprep.subr.mxu0 %v14887_v21 }
0x1590   : > { %v9032_v32 = vmul.f32 %v14781_v19, %v16935_v40  ;;  %v10153_v40 = vpop.permute.xlu0 %10152 }
0x1591   : > { %v10229_v61 = vpop.permute.xlu1 %10228 }
0x1592   : > { %14346 = vmatmul.mubr.msk.f32.vlgmr.msra.gmra.mxu1 %vm787_vm4, %v9032_v32  ;;  %14391 = vmatmul.mubr.msk.f32.vlgmr.msra.gmra.mxu0 %vm787_vm4, %v10229_v61 }
0x1593   : > { %14354 = vmatpush3.xpose.msk.msra.mxu1 %vm787_vm4, %v16941_v53  ;;  %14355 = vmatprep.mubr.msk.f32.mxu1 %vm14888_vm3, %v14887_v21 }
0x1594   : > { %14363 = vmatprep.subr.mxu1 %v14887_v21  ;;  %14400 = vmatprep.mubr.msk.f32.mxu0 %vm14888_vm3, %v14887_v21  ;;  %v10151_v53 = vpop.permute.xlu0 %10150 }
0x1596   : > { %14356 = vmatmul.mubr.msk.f32.vlgmr.msra.gmra.mxu1 %vm787_vm4, %v16943_v35 }
0x1597   : > { %14364 = vmatpush3.xpose.msk.msra.mxu1 %vm787_vm4, %v16947_v44  ;;  %14365 = vmatprep.mubr.msk.f32.mxu1 %vm14888_vm3, %v14887_v21 }
0x1598   : > { %14373 = vmatprep.subr.mxu1 %v14887_v21 }
0x159a   : > { %14366 = vmatmul.mubr.msk.f32.vlgmr.msra.gmra.mxu1 %vm787_vm4, %v16953_v55 }
0x159b   : > { %14374 = vmatpush3.xpose.msk.msra.mxu1 %vm787_vm4, %v9997_v45  ;;  %14375 = vmatprep.mubr.msk.f32.mxu1 %vm14888_vm3, %v14887_v21 }
0x159c   : > { %14383 = vmatprep.subr.mxu1 %v14887_v21 }
0x159e   : > { %14376 = vmatmul.mubr.msk.f32.vlgmr.msra.gmra.mxu1 %vm787_vm4, %v9995_v63 }
0x159f   : > { %14384 = vmatpush3.xpose.msk.msra.mxu1 %vm787_vm4, %v10153_v40  ;;  %14385 = vmatprep.mubr.msk.f32.mxu1 %vm14888_vm3, %v14887_v21 }
0x15a0   : > { %14393 = vmatprep.subr.mxu1 %v14887_v21 }
0x15a2   : > { %14386 = vmatmul.mubr.msk.f32.vlgmr.msra.gmra.mxu1 %vm787_vm4, %v10151_v53 }
0x15a3   : > { %14395 = vmatprep.mubr.msk.f32.mxu1 %vm14888_vm3, %v14887_v21 }
0x15e8   : > { %v17042_v35 = vpop.f32.mrf.mxu0 }
0x15ea   : > { %v14322_v44 = vpop.f32.mrf.mxu0 }
0x15f4   : > { %v17044_v55 = vpop.f32.mrf.mxu0 }
0x15f6   : > { %v14332_v27 = vpop.f32.mrf.mxu0 }
0x15f8   : > { %v17046_v62 = vpop.f32.mrf.mxu0 }
0x15fa   : > { %v14342_v29 = vpop.f32.mrf.mxu0 }
0x15fc   : > { %v17048_v59 = vpop.f32.mrf.mxu0 }
0x15fe   : > { %v14352_v26 = vpop.f32.mrf.mxu0 }
0x1600   : > { %v9834_v5 = vpop.f32.mrf.mxu0 }
0x1601   : > { %v10307_v8 = vmul.f32 0.17677669, %v9834_v5 }
0x1602   : > { %v17050_v34 = vpop.f32.mrf.mxu1  ;;  %v14362_v60 = vpop.f32.mrf.mxu0 }
0x1603   : > { %v10317_v15 = vsel %vm787_vm4, %v10307_v8, -inf }
0x1604   : > { %10318 = vmax.xlane.f32.xlu1 %v10317_v15  ;;  %v14317_v52 = vpop.f32.mrf.mxu1  ;;  %v9990_v43 = vpop.f32.mrf.mxu0 }
0x1605   : > { %v10309_v45 = vmul.f32 0.17677669, %v9990_v43 }
0x1606   : > { %v17053_v57 = vpop.f32.mrf.mxu1  ;;  %v14372_v2 = vpop.f32.mrf.mxu0 }
0x1607   : > { %v10323_v44 = vsel %vm787_vm4, %v10309_v45, -inf }
0x1608   : > { %v14327_v14 = vpop.f32.mrf.mxu1 }
0x1615   : > { %10402 = vrot.lane.b32.xlu1 %v16640_v58, %s14901_s25 }
0x161d   : > { %v17057_v12 = vpop.f32.mrf.mxu1 }
0x161f   : > { %v14337_v3 = vpop.f32.mrf.mxu1 }
0x164a   : > { %v10146_v37 = vpop.f32.mrf.mxu0 }
0x164b   : > { %v10311_v53 = vmul.f32 0.17677669, %v10146_v37 }
0x164c   : > { %v14382_v46 = vpop.f32.mrf.mxu0 }
0x164d   : > { %v10329_v60 = vsel %vm787_vm4, %v10311_v53, -inf }
0x1652   : > { %v17059_v33 = vpop.f32.mrf.mxu1  ;;  %v10302_v16 = vpop.f32.mrf.mxu0 }
0x1653   : > { %v10313_v5 = vmul.f32 0.17677669, %v10302_v16 }
0x1654   : > { %v14347_v39 = vpop.f32.mrf.mxu1  ;;  %v14392_v25 = vpop.f32.mrf.mxu0 }
0x1655   : > { %v10335_v15 = vsel %vm787_vm4, %v10313_v5, -inf }
0x1656   : > { %v9756_v48 = vpop.f32.mrf.mxu1 }
0x1657   : > { %v10306_v1 = vmul.f32 0.17677669, %v9756_v48 }
0x1658   : > { %v14357_v36 = vpop.f32.mrf.mxu1 }
0x1659   : > { %v10314_v7 = vsel %vm787_vm4, %v10306_v1, -inf }
0x165a   : > { %10315 = vmax.xlane.f32.xlu0 %v10314_v7  ;;  %v9912_v49 = vpop.f32.mrf.mxu1 }
0x165b   : > { %v10308_v50 = vmul.f32 0.17677669, %v9912_v49 }
0x165c   : > { %v14367_v19 = vpop.f32.mrf.mxu1 }
0x165d   : > { %v10320_v32 = vsel %vm787_vm4, %v10308_v50, -inf }
0x165e   : > { %10321 = vmax.xlane.f32.xlu0 %v10320_v32  ;;  %v10068_v61 = vpop.f32.mrf.mxu1 }
0x165f   : > { %v10310_v63 = vmul.f32 0.17677669, %v10068_v61 }
0x1660   : > { %v14377_v40 = vpop.f32.mrf.mxu1 }
0x1661   : > { %v10326_v27 = vsel %vm787_vm4, %v10310_v63, -inf }
0x1662   : > { %10324 = vmax.xlane.f32.xlu0 %v10323_v44  ;;  %10327 = vmax.xlane.f32.xlu1 %v10326_v27  ;;  %v10224_v29 = vpop.f32.mrf.mxu1 }
0x1663   : > { %v17079_v2 = vmul.f32 0.17677669, %v10224_v29 }
0x1664   : > { %v14387_v26 = vpop.f32.mrf.mxu1 }
0x1665   : > { %v10332_v14 = vsel %vm787_vm4, %v17079_v2, -inf }
0x1666   : > { %10330 = vmax.xlane.f32.xlu0 %v10329_v60 }
0x166a   : > { %10336 = vmax.xlane.f32.xlu0 %v10335_v15 }
0x1673   : > { %10554 = vrot.lane.b32.xlu1 %v16637_v23, %s14901_s25 }
0x1680   : > { %10478 = vrot.lane.b32.xlu0 %v16648_v42, %s14901_s25 }
0x1684   : > { %10706 = vrot.lane.b32.xlu0 %v16659_v11, %s14901_s25 }
0x1688   : > { %10858 = vrot.lane.b32.xlu0 %v16671_v0, %s14901_s25 }
0x168c   : > { %11052 = vrot.lane.b32.xlu0 %v16478_v9, %s14895_s30 }
0x168d   : > { %v10319_v52 = vpop.xlane.xlu1 %10318 }
0x168e   : > { %v10339_v9 = vsub.f32 %v10307_v8, %v10319_v52 }
0x1690   : > { %11050 = vrot.lane.b32.xlu0 %v16534_v10, %s14894_s29  ;;  %v10348_v3 = vmul.f32 1.442695, %v10339_v9 }
0x1691   : > { %v10403_v43 = vpop.permute.xlu1 %10402 }
0x1692   : > { %14394 = vmatpush3.msra.mxu1 %v10403_v43  ;;  %14782 = vpow2.f32 %v10348_v3 }
0x1693   : > { %14403 = vmatprep.subr.mxu1 %v14887_v21 }
0x1694   : > { %11208 = vrot.lane.b32.xlu0 %v16490_v6, %s14895_s30 }
0x1697   : > { %10333 = vmax.xlane.f32.xlu1 %v10332_v14 }
0x1698   : > { %11206 = vrot.lane.b32.xlu0 %v16545_v38, %s14894_s29 }
0x169f   : > { %v17094_v6 = vpop.eup %14782 }
0x16a0   : > { %v10365_v37 = vsel %vm787_vm4, %v17094_v6, 0.0 }
0x16a8   : > { %10630 = vrot.lane.b32.xlu1 %v16653_v18, %s14901_s25 }
0x16ac   : > { %10782 = vrot.lane.b32.xlu1 %v16665_v17, %s14901_s25 }
0x16b0   : > { %10934 = vrot.lane.b32.xlu1 %v16645_v51, %s14901_s25  ;;  %s17592_s25 = scalar_lea.vmem %s17624_s5, %s12936_s19 }
0x16b4   : > { %11130 = vrot.lane.b32.xlu1 %v16487_v22, %s14895_s30 }
0x16b7   : > { %10366 = vadd.xlane.f32.xlu0 %v10365_v37 }
0x16b8   : > { %11128 = vrot.lane.b32.xlu1 %v16542_v24, %s14894_s29 }
0x16bc   : > { %11286 = vrot.lane.b32.xlu1 %v16501_v41, %s14895_s30 }
0x16c0   : > { %11284 = vrot.lane.b32.xlu1 %v16558_v56, %s14894_s29 }
0x16e3   : > { %v10316_v8 = vpop.xlane.xlu0 %10315 }
0x16e4   : > { %v10338_v46 = vsub.f32 %v10306_v1, %v10316_v8 }
0x16e6   : > { %v10346_v16 = vmul.f32 1.442695, %v10338_v46 }
0x16e7   : > { %v10322_v39 = vpop.xlane.xlu0 %10321 }
0x16e8   : > { %14784 = vpow2.f32 %v10346_v16  ;;  %v10340_v25 = vsub.f32 %v10308_v50, %v10322_v39 }
0x16ea   : > { %v10350_v22 = vmul.f32 1.442695, %v10340_v25 }
0x16eb   : > { %v10325_v48 = vpop.xlane.xlu0 %10324  ;;  %v10328_v36 = vpop.xlane.xlu1 %10327 }
0x16ec   : > { %14786 = vpow2.f32 %v10350_v22  ;;  %v10341_v7 = vsub.f32 %v10309_v45, %v10325_v48  ;;  %v10342_v49 = vsub.f32 %v10310_v63, %v10328_v36 }
0x16ee   : > { %v10352_v19 = vmul.f32 1.442695, %v10341_v7  ;;  %v10354_v32 = vmul.f32 1.442695, %v10342_v49 }
0x16ef   : > { %v10331_v61 = vpop.xlane.xlu0 %10330  ;;  %v10555_v3 = vpop.permute.xlu1 %10554 }
0x16f0   : > { %14788 = vpow2.f32 %v10352_v19  ;;  %v10343_v41 = vsub.f32 %v10311_v53, %v10331_v61 }
0x16f1   : > { %14790 = vpow2.f32 %v10354_v32 }
0x16f2   : > { %v10356_v40 = vmul.f32 1.442695, %v10343_v41 }
0x16f3   : > { %v10337_v44 = vpop.xlane.xlu0 %10336 }
0x16f4   : > { %14792 = vpow2.f32 %v10356_v40  ;;  %v10345_v1 = vsub.f32 %v10313_v5, %v10337_v44 }
0x16f5   : > { %v17106_v27 = vpop.eup %14784 }
0x16f6   : > { %v10360_v29 = vmul.f32 1.442695, %v10345_v1  ;;  %v10362_v50 = vsel %vm787_vm4, %v17106_v27, 0.0 }
0x16f7   : > { %v10479_v26 = vpop.permute.xlu0 %10478  ;;  %10363 = vadd.xlane.f32.xlu1 %v10362_v50 }
0x16f8   : > { %14794 = vpow2.f32 %v10360_v29  ;;  %14399 = vmatpush3.msra.mxu0 %v10479_v26 }
0x16f9   : > { %v17110_v45 = vpop.eup %14786  ;;  %14408 = vmatprep.subr.mxu0 %v14887_v21 }
0x16fa   : > { %v10368_v63 = vsel %vm787_vm4, %v17110_v45, 0.0 }
0x16fb   : > { %10369 = vadd.xlane.f32.xlu1 %v10368_v63  ;;  %v10707_v37 = vpop.permute.xlu0 %10706 }
0x16fd   : > { %v17115_v53 = vpop.eup %14788 }
0x16fe   : > { %v17117_v5 = vpop.eup %14790  ;;  %v10371_v60 = vsel %vm787_vm4, %v17115_v53, 0.0 }
0x16ff   : > { %10372 = vadd.xlane.f32.xlu0 %v10371_v60  ;;  %v10374_v15 = vsel %vm787_vm4, %v17117_v5, 0.0  ;;  %v17136_v39 = vpop.permute.xlu0 %10858 }
0x1700   : > { %10375 = vadd.xlane.f32.xlu1 %v10374_v15 }
0x1701   : > { %v17123_v52 = vpop.eup %14792 }
0x1702   : > { %v10377_v43 = vsel %vm787_vm4, %v17123_v52, 0.0 }
0x1703   : > { %10378 = vadd.xlane.f32.xlu0 %v10377_v43  ;;  %v17142_v25 = vpop.permute.xlu0 %11052 }
0x1705   : > { %v17127_v14 = vpop.eup %14794 }
0x1706   : > { %v10383_v9 = vsel %vm787_vm4, %v17127_v14, 0.0 }
0x1707   : > { %10384 = vadd.xlane.f32.xlu0 %v10383_v9 }
0x171d   : > { %11364 = vrot.lane.b32.xlu0 %v16504_v13, %s14895_s30  ;;  %v17144_v13 = vpop.permute.xlu0 %11050 }
0x1720   : > { %v10334_v8 = vpop.xlane.xlu1 %10333 }
0x1721   : > { %v10344_v46 = vsub.f32 %v17079_v2, %v10334_v8  ;;  %11362 = vrot.lane.b32.xlu0 %v16561_v30, %s14894_s29  ;;  %v17150_v48 = vpop.permute.xlu0 %11208 }
0x1723   : > { %v10358_v16 = vmul.f32 1.442695, %v10344_v46 }
0x1724   : > { %v10631_v19 = vpop.permute.xlu1 %10630 }
0x1725   : > { %14796 = vpow2.f32 %v10358_v16  ;;  %11520 = vrot.lane.b32.xlu0 %v16523_v47, %s14895_s30  ;;  %v17152_v36 = vpop.permute.xlu0 %11206 }
0x1729   : > { %11518 = vrot.lane.b32.xlu0 %v16590_v28, %s14894_s29 }
0x1732   : > { %v17146_v22 = vpop.eup %14796 }
0x1733   : > { %v10380_v2 = vsel %vm787_vm4, %v17146_v22, 0.0 }
0x1734   : > { %10381 = vadd.xlane.f32.xlu1 %v10380_v2 }
0x1740   : > { %v10367_v7 = vpop.xlane.xlu0 %10366 }
0x1741   : > { %14798 = vrcp.f32 %v10367_v7 }
0x1745   : > { %11442 = vrot.lane.b32.xlu1 %v16511_v20, %s14895_s30  ;;  %v10783_v20 = vpop.permute.xlu1 %10782 }
0x1749   : > { %11440 = vrot.lane.b32.xlu1 %v16577_v54, %s14894_s29  ;;  %v10935_v32 = vpop.permute.xlu1 %10934 }
0x174d   : > { %11598 = vrot.lane.b32.xlu1 %v16520_v31, %s14895_s30  ;;  %v11131_v61 = vpop.permute.xlu1 %11130 }
0x174e   : > { %v14799_v47 = vpop.eup %14798 }
0x174f   : > { %v10395_v49 = vmul.f32 %v14799_v47, %v17094_v6 }
0x1751   : > { %14401 = vmatmul.mubr.msk.f32.vlgmr.msra.gmra.mxu0 %vm787_vm4, %v10395_v49  ;;  %11596 = vrot.lane.b32.xlu1 %v16587_v4, %s14894_s29  ;;  %v11129_v41 = vpop.permute.xlu1 %11128 }
0x1752   : > { %14409 = vmatpush3.msra.mxu0 %v10631_v19  ;;  %14410 = vmatprep.mubr.msk.f32.mxu0 %vm14888_vm3, %v14887_v21 }
0x1753   : > { %14418 = vmatprep.subr.mxu0 %v14887_v21 }
0x1755   : > { %v11287_v31 = vpop.permute.xlu1 %11286 }
0x1759   : > { %v11285_v40 = vpop.permute.xlu1 %11284 }
0x1780   : > { %v10364_v44 = vpop.xlane.xlu1 %10363 }
0x1781   : > { %14800 = vrcp.f32 %v10364_v44 }
0x1784   : > { %v10370_v6 = vpop.xlane.xlu1 %10369 }
0x1785   : > { %14802 = vrcp.f32 %v10370_v6 }
0x1788   : > { %v10373_v1 = vpop.xlane.xlu0 %10372 }
0x1789   : > { %14804 = vrcp.f32 %v10373_v1  ;;  %v10376_v29 = vpop.xlane.xlu1 %10375 }
0x178a   : > { %14806 = vrcp.f32 %v10376_v29 }
0x178c   : > { %v10379_v50 = vpop.xlane.xlu0 %10378 }
0x178d   : > { %14808 = vrcp.f32 %v10379_v50 }
0x178e   : > { %v14801_v26 = vpop.eup %14800 }
0x178f   : > { %v10394_v63 = vmul.f32 %v14801_v26, %v17106_v27 }
0x1790   : > { %v10385_v60 = vpop.xlane.xlu0 %10384 }
0x1791   : > { %14810 = vrcp.f32 %v10385_v60  ;;  %14396 = vmatmul.mubr.msk.f32.vlgmr.msra.gmra.mxu1 %vm787_vm4, %v10394_v63 }
0x1792   : > { %v14803_v15 = vpop.eup %14802  ;;  %14404 = vmatpush3.msra.mxu1 %v10555_v3  ;;  %14405 = vmatprep.mubr.msk.f32.mxu1 %vm14888_vm3, %v14887_v21 }
0x1793   : > { %v10396_v43 = vmul.f32 %v14803_v15, %v17110_v45  ;;  %14413 = vmatprep.subr.mxu1 %v14887_v21 }
0x1794   : > { %v11365_v2 = vpop.permute.xlu0 %11364 }
0x1795   : > { %14406 = vmatmul.mubr.msk.f32.vlgmr.msra.gmra.mxu1 %vm787_vm4, %v10396_v43 }
0x1796   : > { %v14805_v9 = vpop.eup %14804  ;;  %14414 = vmatpush3.msra.mxu1 %v10707_v37  ;;  %14415 = vmatprep.mubr.msk.f32.mxu1 %vm14888_vm3, %v14887_v21 }
0x1797   : > { %v14807_v27 = vpop.eup %14806  ;;  %v10397_v8 = vmul.f32 %v14805_v9, %v17115_v53  ;;  %14423 = vmatprep.subr.mxu1 %v14887_v21 }
0x1798   : > { %v10398_v3 = vmul.f32 %v14807_v27, %v17117_v5  ;;  %v11363_v49 = vpop.permute.xlu0 %11362 }
0x1799   : > { %14411 = vmatmul.mubr.msk.f32.vlgmr.msra.gmra.mxu0 %vm787_vm4, %v10397_v8 }
0x179a   : > { %v14809_v46 = vpop.eup %14808  ;;  %14416 = vmatmul.mubr.msk.f32.vlgmr.msra.gmra.mxu1 %vm787_vm4, %v10398_v3  ;;  %14419 = vmatpush3.msra.mxu0 %v10783_v20 }
0x179b   : > { %v10399_v45 = vmul.f32 %v14809_v46, %v17123_v52  ;;  %14424 = vmatpush3.msra.mxu1 %v17136_v39  ;;  %14420 = vmatprep.mubr.msk.f32.mxu0 %vm14888_vm3, %v14887_v21 }
0x179c   : > { %14428 = vmatprep.subr.mxu0 %v14887_v21  ;;  %14425 = vmatprep.mubr.msk.f32.mxu1 %vm14888_vm3, %v14887_v21 }
0x179d   : > { %14421 = vmatmul.mubr.msk.f32.vlgmr.msra.gmra.mxu0 %vm787_vm4, %v10399_v45  ;;  %14433 = vmatprep.subr.mxu1 %v14887_v21 }
0x179e   : > { %v14811_v53 = vpop.eup %14810  ;;  %14429 = vmatpush3.msra.mxu0 %v10935_v32  ;;  %14430 = vmatprep.mubr.msk.f32.mxu0 %vm14888_vm3, %v14887_v21 }
0x179f   : > { %v10401_v5 = vmul.f32 %v14811_v53, %v17127_v14  ;;  %14438 = vmatprep.subr.mxu0 %v14887_v21 }
0x17a1   : > { %14431 = vmatmul.mubr.msk.f32.vlgmr.msra.gmra.mxu0 %vm787_vm4, %v10401_v5 }
0x17a2   : > { %14439 = vmatpush3.xpose.msk.msra.mxu0 %vm787_vm4, %v11131_v61  ;;  %14440 = vmatprep.mubr.msk.f32.mxu0 %vm14888_vm3, %v14887_v21 }
0x17a3   : > { %14448 = vmatprep.subr.mxu0 %v14887_v21 }
0x17a5   : > { %14441 = vmatmul.mubr.msk.f32.vlgmr.msra.gmra.mxu0 %vm787_vm4, %v11129_v41 }
0x17a6   : > { %14449 = vmatpush3.xpose.msk.msra.mxu0 %vm787_vm4, %v11287_v31  ;;  %14450 = vmatprep.mubr.msk.f32.mxu0 %vm14888_vm3, %v14887_v21 }
0x17a7   : > { %14458 = vmatprep.subr.mxu0 %v14887_v21 }
0x17a9   : > { %14451 = vmatmul.mubr.msk.f32.vlgmr.msra.gmra.mxu0 %vm787_vm4, %v11285_v40 }
0x17aa   : > { %14460 = vmatprep.mubr.msk.f32.mxu0 %vm14888_vm3, %v14887_v21 }
0x17bd   : > { %v10382_v52 = vpop.xlane.xlu1 %10381 }
0x17be   : > { %14812 = vrcp.f32 %v10382_v52 }
0x17c1   : > { %v11443_v14 = vpop.permute.xlu1 %11442 }
0x17c2   : > { %14459 = vmatpush3.xpose.msk.msra.mxu0 %vm787_vm4, %v11443_v14 }
0x17c3   : > { %14468 = vmatprep.subr.mxu0 %v14887_v21 }
0x17c5   : > { %v11441_v37 = vpop.permute.xlu1 %11440 }
0x17c6   : > { %14461 = vmatmul.mubr.msk.f32.vlgmr.msra.gmra.mxu0 %vm787_vm4, %v11441_v37 }
0x17c7   : > { %14470 = vmatprep.mubr.msk.f32.mxu0 %vm14888_vm3, %v14887_v21 }
0x17c9   : > { %v11599_v16 = vpop.permute.xlu1 %11598 }
0x17ca   : > { %14469 = vmatpush3.xpose.msk.msra.mxu0 %vm787_vm4, %v11599_v16 }
0x17cb   : > { %v14813_v39 = vpop.eup %14812  ;;  %14478 = vmatprep.subr.mxu0 %v14887_v21 }
0x17cc   : > { %v10400_v7 = vmul.f32 %v14813_v39, %v17146_v22 }
0x17cd   : > { %v11597_v47 = vpop.permute.xlu1 %11596 }
0x17ce   : > { %14426 = vmatmul.mubr.msk.f32.vlgmr.msra.gmra.mxu1 %vm787_vm4, %v10400_v7  ;;  %14471 = vmatmul.mubr.msk.f32.vlgmr.msra.gmra.mxu0 %vm787_vm4, %v11597_v47 }
0x17cf   : > { %14434 = vmatpush3.xpose.msk.msra.mxu1 %vm787_vm4, %v17142_v25  ;;  %14435 = vmatprep.mubr.msk.f32.mxu1 %vm14888_vm3, %v14887_v21  ;;  %v11521_v25 = vpop.permute.xlu0 %11520 }
0x17d0   : > { %14443 = vmatprep.subr.mxu1 %v14887_v21  ;;  %14480 = vmatprep.mubr.msk.f32.mxu0 %vm14888_vm3, %v14887_v21 }
0x17d2   : > { %14436 = vmatmul.mubr.msk.f32.vlgmr.msra.gmra.mxu1 %vm787_vm4, %v17144_v13 }
0x17d3   : > { %14444 = vmatpush3.xpose.msk.msra.mxu1 %vm787_vm4, %v17150_v48  ;;  %14445 = vmatprep.mubr.msk.f32.mxu1 %vm14888_vm3, %v14887_v21  ;;  %v11519_v13 = vpop.permute.xlu0 %11518 }
0x17d4   : > { %14453 = vmatprep.subr.mxu1 %v14887_v21 }
0x17d6   : > { %14446 = vmatmul.mubr.msk.f32.vlgmr.msra.gmra.mxu1 %vm787_vm4, %v17152_v36 }
0x17d7   : > { %14454 = vmatpush3.xpose.msk.msra.mxu1 %vm787_vm4, %v11365_v2  ;;  %14455 = vmatprep.mubr.msk.f32.mxu1 %vm14888_vm3, %v14887_v21 }
0x17d8   : > { %14463 = vmatprep.subr.mxu1 %v14887_v21 }
0x17da   : > { %14456 = vmatmul.mubr.msk.f32.vlgmr.msra.gmra.mxu1 %vm787_vm4, %v11363_v49 }
0x17db   : > { %14464 = vmatpush3.xpose.msk.msra.mxu1 %vm787_vm4, %v11521_v25  ;;  %14465 = vmatprep.mubr.msk.f32.mxu1 %vm14888_vm3, %v14887_v21 }
0x17dc   : > { %14473 = vmatprep.subr.mxu1 %v14887_v21 }
0x17de   : > { %14466 = vmatmul.mubr.msk.f32.vlgmr.msra.gmra.mxu1 %vm787_vm4, %v11519_v13 }
0x17df   : > { %14475 = vmatprep.mubr.msk.f32.mxu1 %vm14888_vm3, %v14887_v21 }
0x1811   : > { %v17245_v22 = vpop.f32.mrf.mxu0 }
0x1813   : > { %v14402_v48 = vpop.f32.mrf.mxu0 }
0x1851   : > { %v17247_v36 = vpop.f32.mrf.mxu1 }
0x1853   : > { %v14397_v19 = vpop.f32.mrf.mxu1 }
0x1855   : > { %v17249_v20 = vpop.f32.mrf.mxu1 }
0x1857   : > { %v14407_v32 = vpop.f32.mrf.mxu1 }
0x1859   : > { %v17251_v61 = vpop.f32.mrf.mxu0 }
0x185a   : > { %v17253_v41 = vpop.f32.mrf.mxu1 }
0x185b   : > { %v14412_v31 = vpop.f32.mrf.mxu0 }
0x185c   : > { %v14417_v40 = vpop.f32.mrf.mxu1 }
0x185d   : > { %v17255_v44 = vpop.f32.mrf.mxu0 }
0x185f   : > { %v14422_v6 = vpop.f32.mrf.mxu0 }
0x1861   : > { %v17257_v1 = vpop.f32.mrf.mxu0 }
0x1863   : > { %v14432_v29 = vpop.f32.mrf.mxu0 }
0x1865   : > { %v11202_v50 = vpop.f32.mrf.mxu0 }
0x1866   : > { %v11675_v26 = vmul.f32 0.17677669, %v11202_v50 }
0x1867   : > { %v14442_v63 = vpop.f32.mrf.mxu0 }
0x1868   : > { %v11685_v60 = vsel %vm787_vm4, %v11675_v26, -inf }
0x1869   : > { %11686 = vmax.xlane.f32.xlu1 %v11685_v60  ;;  %v11358_v15 = vpop.f32.mrf.mxu0 }
0x186a   : > { %v11677_v2 = vmul.f32 0.17677669, %v11358_v15 }
0x186b   : > { %v14452_v43 = vpop.f32.mrf.mxu0 }
0x186c   : > { %v11691_v48 = vsel %vm787_vm4, %v11677_v2, -inf }
0x1886   : > { %v11514_v9 = vpop.f32.mrf.mxu0 }
0x1887   : > { %v11679_v13 = vmul.f32 0.17677669, %v11514_v9 }
0x1888   : > { %v14462_v27 = vpop.f32.mrf.mxu0 }
0x1889   : > { %v11697_v29 = vsel %vm787_vm4, %v11679_v13, -inf }
0x188e   : > { %v17260_v8 = vpop.f32.mrf.mxu1  ;;  %v11670_v3 = vpop.f32.mrf.mxu0 }
0x188f   : > { %v11681_v6 = vmul.f32 0.17677669, %v11670_v3 }
0x1890   : > { %v14427_v46 = vpop.f32.mrf.mxu1  ;;  %v14472_v45 = vpop.f32.mrf.mxu0 }
0x1891   : > { %v11703_v63 = vsel %vm787_vm4, %v11681_v6, -inf }
0x1892   : > { %v11124_v53 = vpop.f32.mrf.mxu1 }
0x1893   : > { %v11674_v5 = vmul.f32 0.17677669, %v11124_v53 }
0x1894   : > { %v14437_v52 = vpop.f32.mrf.mxu1 }
0x1895   : > { %v11682_v14 = vsel %vm787_vm4, %v11674_v5, -inf }
0x1896   : > { %11683 = vmax.xlane.f32.xlu0 %v11682_v14  ;;  %v11280_v37 = vpop.f32.mrf.mxu1 }
0x1897   : > { %v11676_v16 = vmul.f32 0.17677669, %v11280_v37 }
0x1898   : > { %v14447_v39 = vpop.f32.mrf.mxu1 }
0x1899   : > { %v11688_v7 = vsel %vm787_vm4, %v11676_v16, -inf }
0x189a   : > { %11689 = vmax.xlane.f32.xlu0 %v11688_v7  ;;  %v11436_v47 = vpop.f32.mrf.mxu1 }
0x189b   : > { %v11678_v49 = vmul.f32 0.17677669, %v11436_v47 }
0x189c   : > { %v14457_v25 = vpop.f32.mrf.mxu1 }
0x189d   : > { %v11694_v19 = vsel %vm787_vm4, %v11678_v49, -inf }
0x189e   : > { %11692 = vmax.xlane.f32.xlu0 %v11691_v48  ;;  %11695 = vmax.xlane.f32.xlu1 %v11694_v19  ;;  %v11592_v32 = vpop.f32.mrf.mxu1 }
0x189f   : > { %v11680_v31 = vmul.f32 0.17677669, %v11592_v32 }
0x18a0   : > { %v14467_v40 = vpop.f32.mrf.mxu1 }
0x18a1   : > { %v11700_v50 = vsel %vm787_vm4, %v11680_v31, -inf }
0x18a2   : > { %11698 = vmax.xlane.f32.xlu0 %v11697_v29  ;;  %11701 = vmax.xlane.f32.xlu1 %v11700_v50 }
0x18a6   : > { %11704 = vmax.xlane.f32.xlu0 %v11703_v63 }
0x18b3   : > { %11770 = vrot.lane.b32.xlu1 %v16640_v58, %s14902_s26 }
0x18b7   : > { %11922 = vrot.lane.b32.xlu1 %v16637_v23, %s14902_s26 }
0x18bb   : > { %11998 = vrot.lane.b32.xlu1 %v16653_v18, %s14902_s26 }
0x18bc   : > { %11846 = vrot.lane.b32.xlu0 %v16648_v42, %s14902_s26 }
0x18bf   : > { %12150 = vrot.lane.b32.xlu1 %v16665_v17, %s14902_s26 }
0x18c0   : > { %12074 = vrot.lane.b32.xlu0 %v16659_v11, %s14902_s26 }
0x18f2   : > { %v11687_v60 = vpop.xlane.xlu1 %11686 }
0x18f3   : > { %v11707_v15 = vsub.f32 %v11675_v26, %v11687_v60 }
0x18f5   : > { %v11716_v43 = vmul.f32 1.442695, %v11707_v15 }
0x18f7   : > { %14814 = vpow2.f32 %v11716_v43 }
0x1904   : > { %v17281_v58 = vpop.eup %14814 }
0x1905   : > { %v11733_v23 = vsel %vm787_vm4, %v17281_v58, 0.0 }
0x1906   : > { %11734 = vadd.xlane.f32.xlu0 %v11733_v23 }
0x191f   : > { %v11684_v18 = vpop.xlane.xlu0 %11683 }
0x1920   : > { %v11706_v9 = vsub.f32 %v11674_v5, %v11684_v18 }
0x1922   : > { %v11714_v27 = vmul.f32 1.442695, %v11706_v9 }
0x1923   : > { %v11690_v42 = vpop.xlane.xlu0 %11689 }
0x1924   : > { %14816 = vpow2.f32 %v11714_v27  ;;  %v11708_v3 = vsub.f32 %v11676_v16, %v11690_v42 }
0x1926   : > { %v11718_v17 = vmul.f32 1.442695, %v11708_v3 }
0x1927   : > { %v11693_v46 = vpop.xlane.xlu0 %11692  ;;  %v11696_v45 = vpop.xlane.xlu1 %11695 }
0x1928   : > { %14818 = vpow2.f32 %v11718_v17  ;;  %v11709_v11 = vsub.f32 %v11677_v2, %v11693_v46  ;;  %v11710_v26 = vsub.f32 %v11678_v49, %v11696_v45 }
0x192a   : > { %v11720_v53 = vmul.f32 1.442695, %v11709_v11  ;;  %v11722_v52 = vmul.f32 1.442695, %v11710_v26 }
0x192b   : > { %v11699_v14 = vpop.xlane.xlu0 %11698  ;;  %v11702_v37 = vpop.xlane.xlu1 %11701 }
0x192c   : > { %14820 = vpow2.f32 %v11720_v53  ;;  %v11711_v39 = vsub.f32 %v11679_v13, %v11699_v14  ;;  %v11712_v7 = vsub.f32 %v11680_v31, %v11702_v37 }
0x192d   : > { %14822 = vpow2.f32 %v11722_v52 }
0x192e   : > { %v11724_v47 = vmul.f32 1.442695, %v11711_v39  ;;  %v11726_v5 = vmul.f32 1.442695, %v11712_v7 }
0x192f   : > { %v11705_v25 = vpop.xlane.xlu0 %11704  ;;  %v11771_v48 = vpop.permute.xlu1 %11770 }
0x1930   : > { %14824 = vpow2.f32 %v11724_v47  ;;  %v11713_v16 = vsub.f32 %v11681_v6, %v11705_v25  ;;  %14474 = vmatpush3.msra.mxu1 %v11771_v48 }
0x1931   : > { %v17285_v19 = vpop.eup %14816  ;;  %14826 = vpow2.f32 %v11726_v5  ;;  %14483 = vmatprep.subr.mxu1 %v14887_v21 }
0x1932   : > { %v11728_v2 = vmul.f32 1.442695, %v11713_v16  ;;  %v11730_v49 = vsel %vm787_vm4, %v17285_v19, 0.0 }
0x1933   : > { %v11847_v32 = vpop.permute.xlu0 %11846  ;;  %11731 = vadd.xlane.f32.xlu1 %v11730_v49 }
0x1934   : > { %14828 = vpow2.f32 %v11728_v2  ;;  %14479 = vmatpush3.msra.mxu0 %v11847_v32 }
0x1935   : > { %v17290_v13 = vpop.eup %14818  ;;  %14488 = vmatprep.subr.mxu0 %v14887_v21 }
0x1936   : > { %v11736_v31 = vsel %vm787_vm4, %v17290_v13, 0.0 }
0x1937   : > { %11737 = vadd.xlane.f32.xlu1 %v11736_v31 }
0x1939   : > { %v17295_v40 = vpop.eup %14820 }
0x193a   : > { %v17297_v6 = vpop.eup %14822  ;;  %v11739_v29 = vsel %vm787_vm4, %v17295_v40, 0.0 }
0x193b   : > { %11740 = vadd.xlane.f32.xlu0 %v11739_v29  ;;  %v11742_v50 = vsel %vm787_vm4, %v17297_v6, 0.0 }
0x193c   : > { %11743 = vadd.xlane.f32.xlu1 %v11742_v50 }
0x193d   : > { %v17303_v63 = vpop.eup %14824 }
0x193e   : > { %v17305_v60 = vpop.eup %14826  ;;  %v11745_v15 = vsel %vm787_vm4, %v17303_v63, 0.0 }
0x193f   : > { %11746 = vadd.xlane.f32.xlu0 %v11745_v15  ;;  %v11748_v43 = vsel %vm787_vm4, %v17305_v60, 0.0 }
0x1940   : > { %11749 = vadd.xlane.f32.xlu1 %v11748_v43 }
0x1941   : > { %v17311_v23 = vpop.eup %14828 }
0x1942   : > { %v11751_v18 = vsel %vm787_vm4, %v17311_v23, 0.0 }
0x1943   : > { %11752 = vadd.xlane.f32.xlu0 %v11751_v18 }
0x1951   : > { %12302 = vrot.lane.b32.xlu1 %v16645_v51, %s14902_s26  ;;  %v12075_v51 = vpop.permute.xlu0 %12074 }
0x1955   : > { %9652 = vrot.lane.b32.xlu1 %v17042_v35, %s14896_s6  ;;  %v11923_v35 = vpop.permute.xlu1 %11922 }
0x1959   : > { %11020 = vrot.lane.b32.xlu1 %v17245_v22, %s14897_s7  ;;  %12226 = vrot.lane.b32.xlu0 %v16671_v0, %s14902_s26 }
0x195d   : > { %9656 = vrot.lane.b32.xlu1 %v17044_v55, %s14896_s6  ;;  %9650 = vrot.lane.b32.xlu0 %v17050_v34, %s14896_s6 }
0x1961   : > { %11024 = vrot.lane.b32.xlu1 %v17251_v61, %s14897_s7  ;;  %11018 = vrot.lane.b32.xlu0 %v17247_v36, %s14897_s7 }
0x1965   : > { %9660 = vrot.lane.b32.xlu1 %v17046_v62, %s14896_s6  ;;  %9654 = vrot.lane.b32.xlu0 %v17053_v57, %s14896_s6 }
0x1969   : > { %11028 = vrot.lane.b32.xlu1 %v17255_v44, %s14897_s7  ;;  %11022 = vrot.lane.b32.xlu0 %v17249_v20, %s14897_s7 }
0x196d   : > { %9664 = vrot.lane.b32.xlu1 %v17048_v59, %s14896_s6  ;;  %9658 = vrot.lane.b32.xlu0 %v17057_v12, %s14896_s6  ;;  %v11999_v59 = vpop.permute.xlu1 %11998 }
0x1971   : > { %11032 = vrot.lane.b32.xlu1 %v17257_v1, %s14897_s7  ;;  %11026 = vrot.lane.b32.xlu0 %v17253_v41, %s14897_s7  ;;  %v12151_v34 = vpop.permute.xlu1 %12150 }
0x1975   : > { %9662 = vrot.lane.b32.xlu0 %v17059_v33, %s14896_s6 }
0x1979   : > { %11030 = vrot.lane.b32.xlu0 %v17260_v8, %s14897_s7 }
0x198f   : > { %v11735_v0 = vpop.xlane.xlu0 %11734 }
0x1990   : > { %14830 = vrcp.f32 %v11735_v0 }
0x199d   : > { %v14831_v55 = vpop.eup %14830 }
0x199e   : > { %v11763_v62 = vmul.f32 %v14831_v55, %v17281_v58 }
0x19a0   : > { %14481 = vmatmul.mubr.msk.f32.vlgmr.msra.gmra.mxu0 %vm787_vm4, %v11763_v62 }
0x19a1   : > { %14489 = vmatpush3.msra.mxu0 %v11999_v59  ;;  %14490 = vmatprep.mubr.msk.f32.mxu0 %vm14888_vm3, %v14887_v21 }
0x19a2   : > { %14498 = vmatprep.subr.mxu0 %v14887_v21 }
0x19bc   : > { %v11732_v57 = vpop.xlane.xlu1 %11731 }
0x19bd   : > { %14832 = vrcp.f32 %v11732_v57 }
0x19c0   : > { %v11738_v12 = vpop.xlane.xlu1 %11737 }
0x19c1   : > { %14834 = vrcp.f32 %v11738_v12 }
0x19c4   : > { %v11741_v33 = vpop.xlane.xlu0 %11740 }
0x19c5   : > { %14836 = vrcp.f32 %v11741_v33  ;;  %v11744_v22 = vpop.xlane.xlu1 %11743 }
0x19c6   : > { %14838 = vrcp.f32 %v11744_v22 }
0x19c8   : > { %v11747_v36 = vpop.xlane.xlu0 %11746 }
0x19c9   : > { %14840 = vrcp.f32 %v11747_v36  ;;  %v11750_v20 = vpop.xlane.xlu1 %11749 }
0x19ca   : > { %v14833_v61 = vpop.eup %14832  ;;  %14842 = vrcp.f32 %v11750_v20 }
0x19cb   : > { %v11762_v41 = vmul.f32 %v14833_v61, %v17285_v19 }
0x19cc   : > { %v11753_v44 = vpop.xlane.xlu0 %11752 }
0x19cd   : > { %14844 = vrcp.f32 %v11753_v44  ;;  %v12303_v1 = vpop.permute.xlu1 %12302  ;;  %14476 = vmatmul.mubr.msk.f32.vlgmr.msra.gmra.mxu1 %vm787_vm4, %v11762_v41 }
0x19ce   : > { %v14835_v8 = vpop.eup %14834  ;;  %14484 = vmatpush3.msra.mxu1 %v11923_v35  ;;  %14485 = vmatprep.mubr.msk.f32.mxu1 %vm14888_vm3, %v14887_v21 }
0x19cf   : > { %v11764_v58 = vmul.f32 %v14835_v8, %v17290_v13  ;;  %14493 = vmatprep.subr.mxu1 %v14887_v21 }
0x19d0   : > { %v12227_v9 = vpop.permute.xlu0 %12226 }
0x19d1   : > { %v9653_v27 = vpop.permute.xlu1 %9652  ;;  %14486 = vmatmul.mubr.msk.f32.vlgmr.msra.gmra.mxu1 %vm787_vm4, %v11764_v58 }
0x19d2   : > { %v14837_v42 = vpop.eup %14836  ;;  %9675 = vst.msk [vmem:[#allocation2 + $0x8] sm:$0xff] %vm3540_vm6, %v9653_v27  ;;  %14494 = vmatpush3.msra.mxu1 %v12075_v51  ;;  %14495 = vmatprep.mubr.msk.f32.mxu1 %vm14888_vm3, %v14887_v21 }
0x19d3   : > { %v14839_v3 = vpop.eup %14838  ;;  %v11765_v17 = vmul.f32 %v14837_v42, %v17295_v40  ;;  %14503 = vmatprep.subr.mxu1 %v14887_v21 }
0x19d4   : > { %v11766_v46 = vmul.f32 %v14839_v3, %v17297_v6  ;;  %v9651_v45 = vpop.permute.xlu0 %9650 }
0x19d5   : > { %9674 = vst.msk [vmem:[#allocation2] sm:$0xff] %vm3540_vm6, %v9651_v45  ;;  %v11021_v11 = vpop.permute.xlu1 %11020  ;;  %14491 = vmatmul.mubr.msk.f32.vlgmr.msra.gmra.mxu0 %vm787_vm4, %v11765_v17 }
0x19d6   : > { %v14841_v26 = vpop.eup %14840  ;;  %11043 = vst.msk [vmem:[#allocation2 + $0x8] sm:$0xff] %vm4937_vm7, %v11021_v11  ;;  %14496 = vmatmul.mubr.msk.f32.vlgmr.msra.gmra.mxu1 %vm787_vm4, %v11766_v46  ;;  %14499 = vmatpush3.msra.mxu0 %v12151_v34 }
0x19d7   : > { %v14843_v53 = vpop.eup %14842  ;;  %v11767_v52 = vmul.f32 %v14841_v26, %v17303_v63  ;;  %14504 = vmatpush3.msra.mxu1 %v12227_v9  ;;  %14500 = vmatprep.mubr.msk.f32.mxu0 %vm14888_vm3, %v14887_v21 }
0x19d8   : > { %v11768_v14 = vmul.f32 %v14843_v53, %v17305_v60  ;;  %v11019_v37 = vpop.permute.xlu0 %11018  ;;  %14505 = vmatprep.mubr.msk.f32.mxu1 %vm14888_vm3, %v14887_v21  ;;  %14508 = vmatprep.subr.mxu0 %v14887_v21 }
0x19d9   : > { %11042 = vst.msk [vmem:[#allocation2] sm:$0xff] %vm4937_vm7, %v11019_v37  ;;  %v9657_v39 = vpop.permute.xlu1 %9656  ;;  %14501 = vmatmul.mubr.msk.f32.vlgmr.msra.gmra.mxu0 %vm787_vm4, %v11767_v52 }
0x19da   : > { %v14845_v7 = vpop.eup %14844  ;;  %9677 = vst.msk [vmem:[#allocation2 + $0x18] sm:$0xff] %vm3540_vm6, %v9657_v39  ;;  %14506 = vmatmul.mubr.msk.f32.vlgmr.msra.gmra.mxu1 %vm787_vm4, %v11768_v14  ;;  %14509 = vmatpush3.msra.mxu0 %v12303_v1 }
0x19db   : > { %v11769_v47 = vmul.f32 %v14845_v7, %v17311_v23  ;;  %14510 = vmatprep.mubr.msk.f32.mxu0 %vm14888_vm3, %v14887_v21 }
0x19dc   : > { %v9655_v5 = vpop.permute.xlu0 %9654 }
0x19dd   : > { %9676 = vst.msk [vmem:[#allocation2 + $0x10] sm:$0xff] %vm3540_vm6, %v9655_v5  ;;  %v11025_v25 = vpop.permute.xlu1 %11024  ;;  %14511 = vmatmul.mubr.msk.f32.vlgmr.msra.gmra.mxu0 %vm787_vm4, %v11769_v47 }
0x19de   : > { %11045 = vst.msk [vmem:[#allocation2 + $0x18] sm:$0xff] %vm4937_vm7, %v11025_v25 }
0x19e0   : > { %v11023_v48 = vpop.permute.xlu0 %11022 }
0x19e1   : > { %11044 = vst.msk [vmem:[#allocation2 + $0x10] sm:$0xff] %vm4937_vm7, %v11023_v48  ;;  %v9661_v16 = vpop.permute.xlu1 %9660 }
0x19e2   : > { %9679 = vst.msk [vmem:[#allocation2 + $0x28] sm:$0xff] %vm3540_vm6, %v9661_v16 }
0x19e4   : > { %v9659_v19 = vpop.permute.xlu0 %9658 }
0x19e5   : > { %9678 = vst.msk [vmem:[#allocation2 + $0x20] sm:$0xff] %vm3540_vm6, %v9659_v19  ;;  %v11029_v2 = vpop.permute.xlu1 %11028 }
0x19e6   : > { %11047 = vst.msk [vmem:[#allocation2 + $0x28] sm:$0xff] %vm4937_vm7, %v11029_v2 }
0x19e8   : > { %v11027_v21 = vpop.permute.xlu0 %11026 }
0x19e9   : > { %11046 = vst.msk [vmem:[#allocation2 + $0x20] sm:$0xff] %vm4937_vm7, %v11027_v21  ;;  %v9665_v49 = vpop.permute.xlu1 %9664 }
0x19ea   : > { %9681 = vst.msk [vmem:[#allocation2 + $0x38] sm:$0xff] %vm3540_vm6, %v9665_v49 }
0x19ec   : > { %v9663_v32 = vpop.permute.xlu0 %9662 }
0x19ed   : > { %9680 = vst.msk [vmem:[#allocation2 + $0x30] sm:$0xff] %vm3540_vm6, %v9663_v32  ;;  %v11033_v13 = vpop.permute.xlu1 %11032 }
0x19ee   : > { %11049 = vst.msk [vmem:[#allocation2 + $0x38] sm:$0xff] %vm4937_vm7, %v11033_v13 }
0x19f0   : > { %v11031_v31 = vpop.permute.xlu0 %11030 }
0x19f1   : > { %11048 = vst.msk [vmem:[#allocation2 + $0x30] sm:$0xff] %vm4937_vm7, %v11031_v31 }
0x1a60   : > { %v11918_v40 = vpop.f32.mrf.mxu0 }
0x1a61   : > { %12388 = vrot.lane.b32.xlu1 %v11918_v40, %s14898_s8 }
0x1a62   : > { %v14482_v6 = vpop.f32.mrf.mxu0 }
0x1a8d   : > { %v11842_v29 = vpop.f32.mrf.mxu1 }
0x1a8e   : > { %12386 = vrot.lane.b32.xlu0 %v11842_v29, %s14898_s8 }
0x1a8f   : > { %v14477_v50 = vpop.f32.mrf.mxu1 }
0x1a91   : > { %v11994_v63 = vpop.f32.mrf.mxu1 }
0x1a92   : > { %12390 = vrot.lane.b32.xlu0 %v11994_v63, %s14898_s8 }
0x1a93   : > { %v14487_v60 = vpop.f32.mrf.mxu1 }
0x1a95   : > { %v12070_v15 = vpop.f32.mrf.mxu0 }
0x1a96   : > { %v12146_v43 = vpop.f32.mrf.mxu1  ;;  %12392 = vrot.lane.b32.xlu1 %v12070_v15, %s14898_s8 }
0x1a97   : > { %12394 = vrot.lane.b32.xlu0 %v12146_v43, %s14898_s8  ;;  %v14492_v23 = vpop.f32.mrf.mxu0 }
0x1a98   : > { %v14497_v18 = vpop.f32.mrf.mxu1 }
0x1a99   : > { %v12222_v51 = vpop.f32.mrf.mxu0 }
0x1a9a   : > { %v12298_v0 = vpop.f32.mrf.mxu1  ;;  %12396 = vrot.lane.b32.xlu1 %v12222_v51, %s14898_s8 }
0x1a9b   : > { %12398 = vrot.lane.b32.xlu0 %v12298_v0, %s14898_s8  ;;  %v14502_v35 = vpop.f32.mrf.mxu0 }
0x1a9c   : > { %v14507_v55 = vpop.f32.mrf.mxu1 }
0x1a9d   : > { %v12374_v62 = vpop.f32.mrf.mxu0 }
0x1a9e   : > { %12400 = vrot.lane.b32.xlu1 %v12374_v62, %s14898_s8 }
0x1a9f   : > { %v14512_v59 = vpop.f32.mrf.mxu0 }
0x1ad3   : > { %v12389_v34 = vpop.permute.xlu1 %12388 }
0x1ad4   : > { %12411 = vst.msk [vmem:[#allocation2 + $0x8] sm:$0xff] %vm6334_vm8, %v12389_v34 }
0x1adb   : > { %v12419_v57 = vld [vmem:[#allocation2 + $0x8] sm:$0xff] }
0x1adc   : > { %v12427_v12 = vadd.f32 %v12419_v57, %v16542_v24 }
0x1ade   : > { %v12439_v33 = vsel %vm458_vm2, %v12427_v12, 0.0 }
0x1adf   : > { %12440 = vadd.xlane.f32.xlu1 %v12439_v33 }
0x1b00   : > { %v12387_v22 = vpop.permute.xlu0 %12386 }
0x1b01   : > { %12410 = vst.msk [vmem:[#allocation2] sm:$0xff] %vm6334_vm8, %v12387_v22 }
0x1b04   : > { %v12391_v36 = vpop.permute.xlu0 %12390 }
0x1b05   : > { %12412 = vst.msk [vmem:[#allocation2 + $0x10] sm:$0xff] %vm6334_vm8, %v12391_v36  ;;  %v12565_v36 = vld [vmem:[%s17622_s3 + $0x18] sm:$0xff] }
0x1b08   : > { %v12393_v20 = vpop.permute.xlu1 %12392  ;;  %v12418_v61 = vld [vmem:[#allocation2] sm:$0xff] }
0x1b09   : > { %12413 = vst.msk [vmem:[#allocation2 + $0x18] sm:$0xff] %vm6334_vm8, %v12393_v20  ;;  %v12395_v41 = vpop.permute.xlu0 %12394  ;;  %v12426_v44 = vadd.f32 %v12418_v61, %v16534_v10  ;;  %v12566_v20 = vld [vmem:[%s17622_s3 + $0x28] sm:$0xff] }
0x1b0a   : > { %12414 = vst.msk [vmem:[#allocation2 + $0x20] sm:$0xff] %vm6334_vm8, %v12395_v41 }
0x1b0b   : > { %v12436_v24 = vsel %vm458_vm2, %v12426_v44, 0.0 }
0x1b0c   : > { %v12397_v1 = vpop.permute.xlu1 %12396  ;;  %12437 = vadd.xlane.f32.xlu0 %v12436_v24  ;;  %v12420_v8 = vld [vmem:[#allocation2 + $0x10] sm:$0xff] }
0x1b0d   : > { %12415 = vst.msk [vmem:[#allocation2 + $0x28] sm:$0xff] %vm6334_vm8, %v12397_v1  ;;  %v12399_v58 = vpop.permute.xlu0 %12398  ;;  %v12428_v9 = vadd.f32 %v12420_v8, %v16545_v38  ;;  %v12564_v8 = vld [vmem:[%s17622_s3 + $0x8] sm:$0xff] }
0x1b0e   : > { %12416 = vst.msk [vmem:[#allocation2 + $0x30] sm:$0xff] %vm6334_vm8, %v12399_v58 }
0x1b0f   : > { %v12442_v27 = vsel %vm458_vm2, %v12428_v9, 0.0 }
0x1b10   : > { %v12401_v42 = vpop.permute.xlu1 %12400  ;;  %12443 = vadd.xlane.f32.xlu0 %v12442_v27  ;;  %v12421_v3 = vld [vmem:[#allocation2 + $0x18] sm:$0xff] }
0x1b11   : > { %12417 = vst.msk [vmem:[#allocation2 + $0x38] sm:$0xff] %vm6334_vm8, %v12401_v42  ;;  %v12422_v10 = vld [vmem:[#allocation2 + $0x20] sm:$0xff]  ;;  %v12429_v17 = vadd.f32 %v12421_v3, %v16558_v56  ;;  %v12567_v56 = vld [vmem:[%s17622_s3 + $0x38] sm:$0xff] }
0x1b12   : > { %v12430_v46 = vadd.f32 %v12422_v10, %v16561_v30 }
0x1b13   : > { %v12445_v45 = vsel %vm458_vm2, %v12429_v17, 0.0 }
0x1b14   : > { %v12448_v11 = vsel %vm458_vm2, %v12430_v46, 0.0  ;;  %12446 = vadd.xlane.f32.xlu0 %v12445_v45  ;;  %v12423_v38 = vld [vmem:[#allocation2 + $0x28] sm:$0xff] }
0x1b15   : > { %12449 = vadd.xlane.f32.xlu1 %v12448_v11  ;;  %v12431_v26 = vadd.f32 %v12423_v38, %v16577_v54  ;;  %v12424_v30 = vld [vmem:[#allocation2 + $0x30] sm:$0xff] }
0x1b16   : > { %v12432_v39 = vadd.f32 %v12424_v30, %v16590_v28 }
0x1b17   : > { %v12451_v53 = vsel %vm458_vm2, %v12431_v26, 0.0 }
0x1b18   : > { %12452 = vadd.xlane.f32.xlu0 %v12451_v53  ;;  %v12425_v52 = vld [vmem:[#allocation2 + $0x38] sm:$0xff]  ;;  %v12454_v54 = vsel %vm458_vm2, %v12432_v39, 0.0 }
0x1b19   : > { %v12433_v14 = vadd.f32 %v12425_v52, %v16587_v4 }
0x1b1b   : > { %v12457_v37 = vsel %vm458_vm2, %v12433_v14, 0.0 }
0x1b1c   : > { %12458 = vadd.xlane.f32.xlu0 %v12457_v37 }
0x1b26   : > { %12583 = vrot.lane.b32.xlu1 %v12567_v56, %s14889_s23 }
0x1b4a   : > { %12455 = vadd.xlane.f32.xlu1 %v12454_v54 }
0x1b68   : > { %v12441_v7 = vpop.xlane.xlu1 %12440 }
0x1b69   : > { %v12461_v47 = vmul.f32 0.03125, %v12441_v7 }
0x1b6b   : > { %v17435_v5 = vsub.f32 %v12427_v12, %v12461_v47 }
0x1b6d   : > { %v12477_v4 = vmul.f32 %v17435_v5, %v17435_v5 }
0x1b6f   : > { %v12487_v25 = vsel %vm458_vm2, %v12477_v4, 0.0 }
0x1b70   : > { %12488 = vadd.xlane.f32.xlu0 %v12487_v25 }
0x1b95   : > { %v12438_v48 = vpop.xlane.xlu0 %12437 }
0x1b96   : > { %v12460_v16 = vmul.f32 0.03125, %v12438_v48 }
0x1b98   : > { %v12468_v19 = vsub.f32 %v12426_v44, %v12460_v16 }
0x1b99   : > { %v12444_v2 = vpop.xlane.xlu0 %12443 }
0x1b9a   : > { %v12462_v21 = vmul.f32 0.03125, %v12444_v2  ;;  %v12476_v49 = vmul.f32 %v12468_v19, %v12468_v19 }
0x1b9c   : > { %v17440_v28 = vsub.f32 %v12428_v9, %v12462_v21  ;;  %v12484_v32 = vsel %vm458_vm2, %v12476_v49, 0.0 }
0x1b9d   : > { %12485 = vadd.xlane.f32.xlu1 %v12484_v32  ;;  %v12447_v13 = vpop.xlane.xlu0 %12446 }
0x1b9e   : > { %v12450_v31 = vpop.xlane.xlu1 %12449  ;;  %v12463_v40 = vmul.f32 0.03125, %v12447_v13  ;;  %v12478_v6 = vmul.f32 %v17440_v28, %v17440_v28 }
0x1b9f   : > { %v12464_v29 = vmul.f32 0.03125, %v12450_v31 }
0x1ba0   : > { %v17445_v50 = vsub.f32 %v12429_v17, %v12463_v40  ;;  %v12490_v63 = vsel %vm458_vm2, %v12478_v6, 0.0 }
0x1ba1   : > { %v17448_v60 = vsub.f32 %v12430_v46, %v12464_v29  ;;  %12491 = vadd.xlane.f32.xlu1 %v12490_v63  ;;  %v12453_v15 = vpop.xlane.xlu0 %12452 }
0x1ba2   : > { %v12465_v43 = vmul.f32 0.03125, %v12453_v15  ;;  %v12479_v23 = vmul.f32 %v17445_v50, %v17445_v50  ;;  %v12584_v18 = vpop.permute.xlu1 %12583 }
0x1ba3   : > { %v12480_v51 = vmul.f32 %v17448_v60, %v17448_v60  ;;  %14513 = vmatprep.subr.mxu1 %v12584_v18 }
0x1ba4   : > { %v17454_v0 = vsub.f32 %v12431_v26, %v12465_v43  ;;  %v12493_v35 = vsel %vm458_vm2, %v12479_v23, 0.0  ;;  %14514 = vmatpush3.msra.mxu1 %v12584_v18  ;;  %v17486_v26 = vld [vmem:[%s17623_s4 + $0xd] ss:$0 sm:$0xff] }
0x1ba5   : > { %v12496_v55 = vsel %vm458_vm2, %v12480_v51, 0.0  ;;  %12494 = vadd.xlane.f32.xlu0 %v12493_v35  ;;  %v12459_v62 = vpop.xlane.xlu0 %12458 }
0x1ba6   : > { %12497 = vadd.xlane.f32.xlu1 %v12496_v55  ;;  %v12467_v59 = vmul.f32 0.03125, %v12459_v62  ;;  %v12481_v34 = vmul.f32 %v17454_v0, %v17454_v0 }
0x1ba8   : > { %v17460_v57 = vsub.f32 %v12433_v14, %v12467_v59  ;;  %v12499_v12 = vsel %vm458_vm2, %v12481_v34, 0.0  ;;  %v17492_v14 = vld [vmem:[%s17623_s4 + $0xe] ss:$0 sm:$0xff] }
0x1ba9   : > { %12500 = vadd.xlane.f32.xlu0 %v12499_v12 }
0x1baa   : > { %v12483_v33 = vmul.f32 %v17460_v57, %v17460_v57 }
0x1bac   : > { %v12505_v22 = vsel %vm458_vm2, %v12483_v33, 0.0 }
0x1bad   : > { %12506 = vadd.xlane.f32.xlu0 %v12505_v22 }
0x1bb7   : > { %12579 = vrot.lane.b32.xlu1 %v12565_v36, %s14889_s23 }
0x1bc3   : > { %12581 = vrot.lane.b32.xlu0 %v12566_v20, %s14889_s23 }
0x1bd3   : > { %v12456_v61 = vpop.xlane.xlu1 %12455 }
0x1bd4   : > { %v12466_v41 = vmul.f32 0.03125, %v12456_v61 }
0x1bd6   : > { %v17474_v44 = vsub.f32 %v12432_v39, %v12466_v41 }
0x1bd8   : > { %v12482_v24 = vmul.f32 %v17474_v44, %v17474_v44 }
0x1bda   : > { %v12502_v1 = vsel %vm458_vm2, %v12482_v24, 0.0 }
0x1bdb   : > { %12503 = vadd.xlane.f32.xlu1 %v12502_v1 }
0x1bec   : > { %12577 = vrot.lane.b32.xlu1 %v12564_v8, %s14889_s23  ;;  %v13225_v8 = vld [vmem:[%s17623_s4 + $0xc] ss:$0 sm:$0xff] }
0x1bf9   : > { %v12489_v42 = vpop.xlane.xlu0 %12488 }
0x1bfa   : > { %v12509_v30 = vmul.f32 0.03125, %v12489_v42 }
0x1bfc   : > { %v12517_v54 = vadd.f32 1e-05, %v12509_v30 }
0x1c26   : > { %v12486_v58 = vpop.xlane.xlu1 %12485 }
0x1c27   : > { %v12508_v9 = vmul.f32 0.03125, %v12486_v58 }
0x1c29   : > { %v12516_v27 = vadd.f32 1e-05, %v12508_v9 }
0x1c2a   : > { %v12492_v10 = vpop.xlane.xlu1 %12491 }
0x1c2b   : > { %14846 = vrsqrt.f32 %v12516_v27  ;;  %v12510_v39 = vmul.f32 0.03125, %v12492_v10 }
0x1c2c   : > { %14848 = vrsqrt.f32 %v12517_v54 }
0x1c2d   : > { %v12518_v47 = vadd.f32 1e-05, %v12510_v39 }
0x1c2e   : > { %v12495_v3 = vpop.xlane.xlu0 %12494 }
0x1c2f   : > { %v12498_v46 = vpop.xlane.xlu1 %12497  ;;  %v12511_v7 = vmul.f32 0.03125, %v12495_v3  ;;  %14850 = vrsqrt.f32 %v12518_v47 }
0x1c30   : > { %v12512_v4 = vmul.f32 0.03125, %v12498_v46 }
0x1c31   : > { %v12519_v25 = vadd.f32 1e-05, %v12511_v7 }
0x1c32   : > { %v12501_v17 = vpop.xlane.xlu0 %12500  ;;  %v12520_v16 = vadd.f32 1e-05, %v12512_v4 }
0x1c33   : > { %v12580_v37 = vpop.permute.xlu1 %12579  ;;  %v12513_v48 = vmul.f32 0.03125, %v12501_v17  ;;  %14852 = vrsqrt.f32 %v12519_v25 }
0x1c34   : > { %14854 = vrsqrt.f32 %v12520_v16 }
0x1c36   : > { %v12507_v45 = vpop.xlane.xlu0 %12506 }
0x1c37   : > { %v12515_v2 = vmul.f32 0.03125, %v12507_v45 }
0x1c38   : > { %v14847_v11 = vpop.eup %14846 }
0x1c39   : > { %v12532_v38 = vmul.f32 %v14847_v11, %v12468_v19  ;;  %v12521_v19 = vadd.f32 1e-05, %v12513_v48  ;;  %v14849_v21 = vpop.eup %14848  ;;  %v12523_v32 = vadd.f32 1e-05, %v12515_v2 }
0x1c3a   : > { %v12582_v53 = vpop.permute.xlu0 %12581  ;;  %v12533_v13 = vmul.f32 %v14849_v21, %v17435_v5 }
0x1c3b   : > { %14515 = vmatprep.subr.mxu1 %v12582_v53  ;;  %v12544_v52 = vmul.f32 %v17486_v26, %v12532_v38  ;;  %14856 = vrsqrt.f32 %v12521_v19 }
0x1c3c   : > { %14516 = vmatpush3.msra.mxu1 %v12582_v53  ;;  %v14851_v49 = vpop.eup %14850  ;;  %14858 = vrsqrt.f32 %v12523_v32  ;;  %v12545_v63 = vmul.f32 %v17486_v26, %v12533_v13 }
0x1c3d   : > { %v17495_v56 = vadd.f32 %v17492_v14, %v12544_v52  ;;  %14517 = vmatprep.subr.mxu1 %v12580_v37  ;;  %v12534_v40 = vmul.f32 %v14851_v49, %v17440_v28 }
0x1c3e   : > { %14518 = vmatpush3.msra.mxu1 %v12580_v37  ;;  %v12557_v28 = vadd.f32 %v17492_v14, %v12545_v63 }
0x1c3f   : > { %14521 = vmatprep.mubr.msk.f32.mxu1 %vm458_vm2, %v17495_v56  ;;  %v12546_v18 = vmul.f32 %v17486_v26, %v12534_v40 }
0x1c40   : > { %v14853_v31 = vpop.eup %14852 }
0x1c41   : > { %v14855_v6 = vpop.eup %14854  ;;  %v12535_v15 = vmul.f32 %v14853_v31, %v17445_v50  ;;  %v12558_v59 = vadd.f32 %v17492_v14, %v12546_v18 }
0x1c42   : > { %v12536_v51 = vmul.f32 %v14855_v6, %v17448_v60 }
0x1c43   : > { %v12547_v62 = vmul.f32 %v17486_v26, %v12535_v15 }
0x1c44   : > { %v12548_v50 = vmul.f32 %v17486_v26, %v12536_v51 }
0x1c45   : > { %v12559_v60 = vadd.f32 %v17492_v14, %v12547_v62 }
0x1c48   : > { %v14857_v23 = vpop.eup %14856 }
0x1c49   : > { %v12537_v5 = vmul.f32 %v14857_v23, %v17454_v0  ;;  %v12560_v0 = vadd.f32 %v17492_v14, %v12548_v50  ;;  %v14859_v12 = vpop.eup %14858 }
0x1c4a   : > { %v12539_v22 = vmul.f32 %v14859_v12, %v17460_v57 }
0x1c4b   : > { %v12549_v34 = vmul.f32 %v17486_v26, %v12537_v5 }
0x1c4c   : > { %v12551_v61 = vmul.f32 %v17486_v26, %v12539_v22 }
0x1c4d   : > { %v12561_v33 = vadd.f32 %v17492_v14, %v12549_v34 }
0x1c4e   : > { %v12563_v1 = vadd.f32 %v17492_v14, %v12551_v61 }
0x1c64   : > { %v12504_v29 = vpop.xlane.xlu1 %12503 }
0x1c65   : > { %v12514_v43 = vmul.f32 0.03125, %v12504_v29 }
0x1c67   : > { %v12522_v35 = vadd.f32 1e-05, %v12514_v43 }
0x1c68   : > { %v12578_v55 = vpop.permute.xlu1 %12577 }
0x1c69   : > { %14860 = vrsqrt.f32 %v12522_v35  ;;  %14519 = vmatprep.subr.mxu1 %v12578_v55 }
0x1c6a   : > { %14520 = vmatpush3.msra.mxu1 %v12578_v55 }
0x1c6b   : > { %14522 = vmatmul.mubr.msk.f32.vlgmr.msra.gmra.mxu1 %vm458_vm2, %v12557_v28 }
0x1c6c   : > { %14524 = vmatprep.mubr.msk.f32.mxu1 %vm458_vm2, %v12558_v59 }
0x1c6f   : > { %14525 = vmatmul.mubr.msk.f32.gmra.mxu1 %vm458_vm2, %v12559_v60 }
0x1c70   : > { %14527 = vmatprep.mubr.msk.f32.mxu1 %vm458_vm2, %v12560_v0 }
0x1c73   : > { %14528 = vmatmul.mubr.msk.f32.gmra.mxu1 %vm458_vm2, %v12561_v33 }
0x1c76   : > { %v14861_v36 = vpop.eup %14860 }
0x1c77   : > { %v12538_v20 = vmul.f32 %v14861_v36, %v17474_v44 }
0x1c79   : > { %v12550_v41 = vmul.f32 %v17486_v26, %v12538_v20 }
0x1c7b   : > { %v12562_v24 = vadd.f32 %v17492_v14, %v12550_v41 }
0x1c7d   : > { %14530 = vmatprep.mubr.msk.f32.mxu1 %vm458_vm2, %v12562_v24 }
0x1c7e   : > { %14531 = vmatmul.mubr.msk.f32.gmra.mxu1 %vm458_vm2, %v12563_v1 }
0x1d2b   : > { %v14523_v57 = vpop.f32.mrf.mxu1 }
0x1d2c   : > { %v12685_v58 = vadd.f32 %v14523_v57, %v13225_v8 }
0x1d2d   : > { %v12679_v9 = vpop.f32.mrf.mxu1 }
0x1d2e   : > { %v12719_v44 = vmax.f32 %v12685_v58, 0.0  ;;  %v12680_v27 = vadd.f32 %v13225_v8, %v12679_v9 }
0x1d2f   : > { %v14526_v42 = vpop.f32.mrf.mxu1 }
0x1d30   : > { %v12727_v3 = vadd.f32 %v12719_v44, %v12557_v28  ;;  %v12718_v10 = vmax.f32 %v12680_v27, 0.0  ;;  %v12695_v17 = vadd.f32 %v14526_v42, %v13225_v8 }
0x1d31   : > { %v12689_v46 = vpop.f32.mrf.mxu1 }
0x1d32   : > { %v12726_v45 = vadd.f32 %v12718_v10, %v17495_v56  ;;  %v12721_v11 = vmax.f32 %v12695_v17, 0.0  ;;  %v12690_v38 = vadd.f32 %v13225_v8, %v12689_v46  ;;  %v12739_v26 = vsel %vm458_vm2, %v12727_v3, 0.0 }
0x1d33   : > { %12740 = vadd.xlane.f32.xlu1 %v12739_v26  ;;  %v14529_v53 = vpop.f32.mrf.mxu1 }
0x1d34   : > { %v12729_v52 = vadd.f32 %v12721_v11, %v12559_v60  ;;  %v12720_v14 = vmax.f32 %v12690_v38, 0.0  ;;  %v12705_v37 = vadd.f32 %v14529_v53, %v13225_v8  ;;  %v12736_v30 = vsel %vm458_vm2, %v12726_v45, 0.0 }
0x1d35   : > { %v12699_v39 = vpop.f32.mrf.mxu1  ;;  %12737 = vadd.xlane.f32.xlu0 %v12736_v30 }
0x1d36   : > { %v12700_v54 = vadd.f32 %v13225_v8, %v12699_v39  ;;  %v12728_v7 = vadd.f32 %v12720_v14, %v12558_v59  ;;  %v12723_v47 = vmax.f32 %v12705_v37, 0.0  ;;  %v12745_v25 = vsel %vm458_vm2, %v12729_v52, 0.0 }
0x1d38   : > { %v12722_v4 = vmax.f32 %v12700_v54, 0.0  ;;  %v12731_v48 = vadd.f32 %v12723_v47, %v12561_v33  ;;  %v12742_v19 = vsel %vm458_vm2, %v12728_v7, 0.0 }
0x1d39   : > { %12746 = vadd.xlane.f32.xlu0 %v12745_v25 }
0x1d3a   : > { %v12730_v56 = vadd.f32 %v12722_v4, %v12560_v0  ;;  %v12751_v32 = vsel %vm458_vm2, %v12731_v48, 0.0 }
0x1d3c   : > { %v12748_v16 = vsel %vm458_vm2, %v12730_v56, 0.0 }
0x1d3d   : > { %12749 = vadd.xlane.f32.xlu1 %v12748_v16  ;;  %12743 = vadd.xlane.f32.xlu0 %v12742_v19 }
0x1d3e   : > { %v14532_v2 = vpop.f32.mrf.mxu1 }
0x1d3f   : > { %v12715_v21 = vadd.f32 %v14532_v2, %v13225_v8 }
0x1d40   : > { %v12709_v49 = vpop.f32.mrf.mxu1 }
0x1d41   : > { %v12725_v13 = vmax.f32 %v12715_v21, 0.0  ;;  %v12710_v31 = vadd.f32 %v13225_v8, %v12709_v49  ;;  %12752 = vadd.xlane.f32.xlu0 %v12751_v32 }
0x1d43   : > { %v12733_v40 = vadd.f32 %v12725_v13, %v12563_v1  ;;  %v12724_v6 = vmax.f32 %v12710_v31, 0.0 }
0x1d45   : > { %v12732_v29 = vadd.f32 %v12724_v6, %v12562_v24  ;;  %v12757_v63 = vsel %vm458_vm2, %v12733_v40, 0.0 }
0x1d46   : > { %12758 = vadd.xlane.f32.xlu0 %v12757_v63 }
0x1d47   : > { %v12754_v15 = vsel %vm458_vm2, %v12732_v29, 0.0 }
0x1d48   : > { %12755 = vadd.xlane.f32.xlu1 %v12754_v15  ;;  %v13235_v15 = vld [vmem:[%s17623_s4 + $0x10] ss:$0 sm:$0xff] }
0x1dbc   : > { %v12741_v43 = vpop.xlane.xlu1 %12740 }
0x1dbd   : > { %v12761_v23 = vmul.f32 0.03125, %v12741_v43 }
0x1dbe   : > { %v12738_v18 = vpop.xlane.xlu0 %12737 }
0x1dbf   : > { %v17539_v51 = vsub.f32 %v12727_v3, %v12761_v23  ;;  %v12760_v35 = vmul.f32 0.03125, %v12738_v18 }
0x1dc1   : > { %v17541_v55 = vsub.f32 %v12726_v45, %v12760_v35  ;;  %v12777_v5 = vmul.f32 %v17539_v51, %v17539_v51 }
0x1dc2   : > { %v12747_v28 = vpop.xlane.xlu0 %12746 }
0x1dc3   : > { %v12763_v62 = vmul.f32 0.03125, %v12747_v28  ;;  %v12787_v59 = vsel %vm458_vm2, %v12777_v5, 0.0  ;;  %v12776_v50 = vmul.f32 %v17541_v55, %v17541_v55 }
0x1dc4   : > { %12788 = vadd.xlane.f32.xlu0 %v12787_v59 }
0x1dc5   : > { %v17548_v60 = vsub.f32 %v12729_v52, %v12763_v62  ;;  %v12784_v34 = vsel %vm458_vm2, %v12776_v50, 0.0 }
0x1dc6   : > { %v12750_v0 = vpop.xlane.xlu1 %12749  ;;  %12785 = vadd.xlane.f32.xlu1 %v12784_v34  ;;  %v12744_v12 = vpop.xlane.xlu0 %12743 }
0x1dc7   : > { %v12764_v33 = vmul.f32 0.03125, %v12750_v0  ;;  %v12762_v22 = vmul.f32 0.03125, %v12744_v12  ;;  %v12779_v36 = vmul.f32 %v17548_v60, %v17548_v60 }
0x1dc9   : > { %v17553_v20 = vsub.f32 %v12730_v56, %v12764_v33  ;;  %v17555_v61 = vsub.f32 %v12728_v7, %v12762_v22  ;;  %v12793_v41 = vsel %vm458_vm2, %v12779_v36, 0.0 }
0x1dca   : > { %12794 = vadd.xlane.f32.xlu0 %v12793_v41  ;;  %v12753_v24 = vpop.xlane.xlu0 %12752 }
0x1dcb   : > { %v12765_v1 = vmul.f32 0.03125, %v12753_v24  ;;  %v12778_v8 = vmul.f32 %v17555_v61, %v17555_v61  ;;  %v12780_v9 = vmul.f32 %v17553_v20, %v17553_v20 }
0x1dcd   : > { %v17560_v57 = vsub.f32 %v12731_v48, %v12765_v1  ;;  %v12790_v58 = vsel %vm458_vm2, %v12778_v8, 0.0  ;;  %v12796_v10 = vsel %vm458_vm2, %v12780_v9, 0.0 }
0x1dce   : > { %12791 = vadd.xlane.f32.xlu1 %v12790_v58 }
0x1dcf   : > { %v12759_v44 = vpop.xlane.xlu0 %12758  ;;  %v12781_v27 = vmul.f32 %v17560_v57, %v17560_v57 }
0x1dd0   : > { %v12767_v42 = vmul.f32 0.03125, %v12759_v44 }
0x1dd1   : > { %v12756_v3 = vpop.xlane.xlu1 %12755  ;;  %v12799_v17 = vsel %vm458_vm2, %v12781_v27, 0.0 }
0x1dd2   : > { %v17569_v46 = vsub.f32 %v12733_v40, %v12767_v42  ;;  %v12766_v45 = vmul.f32 0.03125, %v12756_v3  ;;  %12797 = vadd.xlane.f32.xlu1 %v12796_v10  ;;  %12800 = vadd.xlane.f32.xlu0 %v12799_v17  ;;  %v13234_v40 = vld [vmem:[%s17623_s4 + $0xf] ss:$0 sm:$0xff] }
0x1dd4   : > { %v17571_v11 = vsub.f32 %v12732_v29, %v12766_v45  ;;  %v12783_v38 = vmul.f32 %v17569_v46, %v17569_v46 }
0x1dd6   : > { %v12805_v26 = vsel %vm458_vm2, %v12783_v38, 0.0  ;;  %v12782_v53 = vmul.f32 %v17571_v11, %v17571_v11 }
0x1dd7   : > { %12806 = vadd.xlane.f32.xlu0 %v12805_v26 }
0x1dd8   : > { %v12802_v52 = vsel %vm458_vm2, %v12782_v53, 0.0 }
0x1dd9   : > { %12803 = vadd.xlane.f32.xlu1 %v12802_v52 }
0x1e4d   : > { %v12789_v14 = vpop.xlane.xlu0 %12788 }
0x1e4e   : > { %v12809_v37 = vmul.f32 0.03125, %v12789_v14 }
0x1e4f   : > { %v12786_v30 = vpop.xlane.xlu1 %12785 }
0x1e50   : > { %v12817_v39 = vadd.f32 1e-05, %v12809_v37  ;;  %v12808_v54 = vmul.f32 0.03125, %v12786_v30 }
0x1e52   : > { %14862 = vrsqrt.f32 %v12817_v39  ;;  %v12816_v7 = vadd.f32 1e-05, %v12808_v54 }
0x1e53   : > { %v12795_v47 = vpop.xlane.xlu0 %12794 }
0x1e54   : > { %14864 = vrsqrt.f32 %v12816_v7  ;;  %v12811_v4 = vmul.f32 0.03125, %v12795_v47 }
0x1e56   : > { %v12819_v25 = vadd.f32 1e-05, %v12811_v4 }
0x1e57   : > { %v12792_v56 = vpop.xlane.xlu1 %12791 }
0x1e58   : > { %14866 = vrsqrt.f32 %v12819_v25  ;;  %v12810_v48 = vmul.f32 0.03125, %v12792_v56 }
0x1e5a   : > { %v12818_v16 = vadd.f32 1e-05, %v12810_v48 }
0x1e5b   : > { %v12798_v19 = vpop.xlane.xlu1 %12797  ;;  %v12801_v2 = vpop.xlane.xlu0 %12800 }
0x1e5c   : > { %14868 = vrsqrt.f32 %v12818_v16  ;;  %v12812_v21 = vmul.f32 0.03125, %v12798_v19  ;;  %v12813_v49 = vmul.f32 0.03125, %v12801_v2 }
0x1e5e   : > { %v12820_v32 = vadd.f32 1e-05, %v12812_v21  ;;  %v12821_v13 = vadd.f32 1e-05, %v12813_v49 }
0x1e5f   : > { %v14863_v31 = vpop.eup %14862 }
0x1e60   : > { %v12833_v6 = vmul.f32 %v14863_v31, %v17539_v51  ;;  %14870 = vrsqrt.f32 %v12820_v32  ;;  %v12807_v29 = vpop.xlane.xlu0 %12806 }
0x1e61   : > { %v14865_v63 = vpop.eup %14864  ;;  %14872 = vrsqrt.f32 %v12821_v13  ;;  %v12815_v43 = vmul.f32 0.03125, %v12807_v29 }
0x1e62   : > { %v12845_v23 = vmul.f32 %v13234_v40, %v12833_v6  ;;  %v12832_v18 = vmul.f32 %v14865_v63, %v17541_v55  ;;  %v12804_v35 = vpop.xlane.xlu1 %12803 }
0x1e63   : > { %v12823_v51 = vadd.f32 1e-05, %v12815_v43  ;;  %v12814_v5 = vmul.f32 0.03125, %v12804_v35 }
0x1e64   : > { %v12857_v28 = vadd.f32 %v13235_v15, %v12845_v23  ;;  %v12844_v62 = vmul.f32 %v13234_v40, %v12832_v18 }
0x1e65   : > { %v14867_v59 = vpop.eup %14866  ;;  %14874 = vrsqrt.f32 %v12823_v51  ;;  %v12822_v50 = vadd.f32 1e-05, %v12814_v5 }
0x1e66   : > { %12865 = vst.msk [vmem:[%s17592_s25 + $0x8] sm:$0xff] %vm458_vm2, %v12857_v28  ;;  %v12856_v55 = vadd.f32 %v13235_v15, %v12844_v62  ;;  %v12835_v34 = vmul.f32 %v14867_v59, %v17548_v60 }
0x1e67   : > { %14876 = vrsqrt.f32 %v12822_v50 }
0x1e68   : > { %12864 = vst.msk [vmem:[%s17592_s25] sm:$0xff] %vm458_vm2, %v12856_v55  ;;  %v12847_v0 = vmul.f32 %v13234_v40, %v12835_v34 }
0x1e69   : > { %v14869_v12 = vpop.eup %14868 }
0x1e6a   : > { %v12859_v33 = vadd.f32 %v13235_v15, %v12847_v0  ;;  %v12834_v22 = vmul.f32 %v14869_v12, %v17555_v61 }
0x1e6c   : > { %12867 = vst.msk [vmem:[%s17592_s25 + $0x18] sm:$0xff] %vm458_vm2, %v12859_v33  ;;  %v12846_v36 = vmul.f32 %v13234_v40, %v12834_v22 }
0x1e6d   : > { %v14871_v41 = vpop.eup %14870 }
0x1e6e   : > { %v14873_v24 = vpop.eup %14872  ;;  %v12858_v1 = vadd.f32 %v13235_v15, %v12846_v36  ;;  %v12836_v8 = vmul.f32 %v14871_v41, %v17553_v20 }
0x1e6f   : > { %v12837_v60 = vmul.f32 %v14873_v24, %v17560_v57 }
0x1e70   : > { %12866 = vst.msk [vmem:[%s17592_s25 + $0x10] sm:$0xff] %vm458_vm2, %v12858_v1  ;;  %v12848_v58 = vmul.f32 %v13234_v40, %v12836_v8 }
0x1e71   : > { %v12849_v9 = vmul.f32 %v13234_v40, %v12837_v60 }
0x1e72   : > { %v14875_v44 = vpop.eup %14874  ;;  %v12860_v61 = vadd.f32 %v13235_v15, %v12848_v58 }
0x1e73   : > { %v12861_v27 = vadd.f32 %v13235_v15, %v12849_v9  ;;  %v12839_v42 = vmul.f32 %v14875_v44, %v17569_v46 }
0x1e74   : > { %v14877_v3 = vpop.eup %14876  ;;  %12868 = vst.msk [vmem:[%s17592_s25 + $0x20] sm:$0xff] %vm458_vm2, %v12860_v61 }
0x1e75   : > { %12869 = vst.msk [vmem:[%s17592_s25 + $0x28] sm:$0xff] %vm458_vm2, %v12861_v27  ;;  %v12851_v10 = vmul.f32 %v13234_v40, %v12839_v42  ;;  %v12838_v20 = vmul.f32 %v14877_v3, %v17571_v11 }
0x1e77   : > { %v12863_v17 = vadd.f32 %v13235_v15, %v12851_v10  ;;  %v12850_v57 = vmul.f32 %v13234_v40, %v12838_v20 }
0x1e79   : > { %12871 = vst.msk [vmem:[%s17592_s25 + $0x38] sm:$0xff] %vm458_vm2, %v12863_v17  ;;  %v12862_v45 = vadd.f32 %v13235_v15, %v12850_v57 }
0x1e7b   : > { %12870 = vst.msk [vmem:[%s17592_s25 + $0x30] sm:$0xff] %vm458_vm2, %v12862_v45 }
0x1e7c PF: > { %s15_s18 = sadd.s32 1, %s14884_s18  }
0x1e7d   : > { %p12_p5 = scmp.ge.s32.totalorder %s15_s18, 4  }
0x1e7f   :  { %14 = sbr.rel (!%p12_p5) target bundleno = 1 (0x1), region = 70 }

</bundles_post_ra>
